<compile_context>
chip_gen: v5e
topology: v5e:2x2
jax: 0.10.0
libtpu: 0.0.40
codegen_flags: <defaults>
</compile_context>

<pallas_src>
import jax
import jax.numpy as jnp
from jax.experimental import pallas as pl
from jax.experimental.pallas import tpu as pltpu

_LANE = 128


def _round_up(x, m):
    return (x + m - 1) // m * m


# ---------------------------------------------------------------------------
# Kernels
# ---------------------------------------------------------------------------
def _conv_core(a, w_ref, y_ref, sum_ref, ssq_ref, pad_ref):
    """3x3 'same' conv of a (H, W, Cin) tile, plus per-image BN partial sums.

    pad_ref is a (H+2, W+2, Cin) VMEM scratch used as a zero halo buffer.
    w_ref is the packed weight (9*Cin, CoutP).
    """
    h, w, cin = a.shape
    cout_p = y_ref.shape[-1]

    # Zero halo buffer, then write the interior (border stays zero => 'same' padding).
    pad_ref[...] = jnp.zeros_like(pad_ref)
    pad_ref[1:h + 1, 1:w + 1, :] = a

    if cin % _LANE == 0:
        # Lane-aligned taps: concatenate along the minor (lane) axis and do ONE
        # K = 9*Cin MXU matmul.
        taps = [pad_ref[kh:kh + h, kw:kw + w, :]
                for kh in range(3) for kw in range(3)]
        im2col = jnp.concatenate(taps, axis=-1).reshape(h * w, 9 * cin)
        acc = jnp.dot(im2col, w_ref[...], preferred_element_type=jnp.float32)
    else:
        # Per-tap channel width not lane-aligned (network input, Cin=3/4): keep the
        # nine small accumulating dots (negligible FLOPs) instead of an unaligned
        # lane concat.
        acc = jnp.zeros((h * w, cout_p), jnp.float32)
        k = 0
        for kh in range(3):
            for kw in range(3):
                tap = pad_ref[kh:kh + h, kw:kw + w, :].reshape(h * w, cin)
                acc = acc + jnp.dot(tap, w_ref[k * cin:(k + 1) * cin, :],
                                    preferred_element_type=jnp.float32)
                k += 1

    y_ref[0] = acc.reshape(h, w, cout_p)
    # Per-image partial sums for the BatchNorm batch statistics.
    # TODO(synk): E[x^2]-mean^2 finalization can cancel catastrophically at
    # production scales; switch to shifted/Welford accumulation if needed.
    sum_ref[0, 0] = jnp.sum(acc, axis=0)
    ssq_ref[0, 0] = jnp.sum(acc * acc, axis=0)


def _conv_kernel(x_ref, w_ref, y_ref, sum_ref, ssq_ref, pad_ref):
    # Plain conv (first layer): input is the raw image tile.
    _conv_core(x_ref[0], w_ref, y_ref, sum_ref, ssq_ref, pad_ref)


def _bn_relu_conv_kernel(x_ref, scale_ref, shift_ref, w_ref,
                         y_ref, sum_ref, ssq_ref, pad_ref):
    # Fused: BN(scale,shift)+ReLU of the previous layer's pre-BN output, then conv.
    a = jnp.maximum(x_ref[0] * scale_ref[0] + shift_ref[0], 0.0)
    _conv_core(a, w_ref, y_ref, sum_ref, ssq_ref, pad_ref)


def _bn_relu_kernel(y_ref, scale_ref, shift_ref, o_ref):
    # Final BN(scale,shift)+ReLU, lane-dense channels.
    o_ref[0] = jnp.maximum(y_ref[0] * scale_ref[0] + shift_ref[0], 0.0)


# ---------------------------------------------------------------------------
# pallas_call wrappers
# ---------------------------------------------------------------------------
def _run_conv(x, w_packed, scale=None, shift=None):
    """One conv layer. x: (N, H, W, Cin'); w_packed: (9*Cin', CoutP).

    If scale/shift (each (1, 1, Cin')) are given, BN+ReLU of the previous layer is
    applied to x inside the kernel before the conv (fusion, no HBM round trip).
    Returns the pre-BN conv output (N, H, W, CoutP) and per-image stats (N, 1, CoutP).
    """
    n, h, w, cin = x.shape
    kdim, cout_p = w_packed.shape
    assert kdim == 9 * cin

    if scale is None:
        kernel = _conv_kernel
        in_specs = [pl.BlockSpec((1, h, w, cin), lambda b: (b, 0, 0, 0)),
                    pl.BlockSpec((kdim, cout_p), lambda b: (0, 0))]
        args = (x, w_packed)
    else:
        kernel = _bn_relu_conv_kernel
        in_specs = [pl.BlockSpec((1, h, w, cin), lambda b: (b, 0, 0, 0)),
                    pl.BlockSpec((1, 1, cin), lambda b: (0, 0, 0)),
                    pl.BlockSpec((1, 1, cin), lambda b: (0, 0, 0)),
                    pl.BlockSpec((kdim, cout_p), lambda b: (0, 0))]
        args = (x, scale, shift, w_packed)

    return pl.pallas_call(
        kernel,
        out_shape=(jax.ShapeDtypeStruct((n, h, w, cout_p), jnp.float32),
                   jax.ShapeDtypeStruct((n, 1, cout_p), jnp.float32),
                   jax.ShapeDtypeStruct((n, 1, cout_p), jnp.float32)),
        grid=(n,),
        in_specs=in_specs,
        out_specs=(pl.BlockSpec((1, h, w, cout_p), lambda b: (b, 0, 0, 0)),
                   pl.BlockSpec((1, 1, cout_p), lambda b: (b, 0, 0)),
                   pl.BlockSpec((1, 1, cout_p), lambda b: (b, 0, 0))),
        scratch_shapes=[pltpu.VMEM((h + 2, w + 2, cin), jnp.float32)],
        compiler_params=pltpu.CompilerParams(
            dimension_semantics=("parallel",),
            vmem_limit_bytes=32 * 1024 * 1024),
    )(*args)


def _run_bn_relu(y, scale, shift):
    n, h, w, c = y.shape
    return pl.pallas_call(
        _bn_relu_kernel,
        out_shape=jax.ShapeDtypeStruct((n, h, w, c), jnp.float32),
        grid=(n,),
        in_specs=[pl.BlockSpec((1, h, w, c), lambda b: (b, 0, 0, 0)),
                  pl.BlockSpec((1, 1, c), lambda b: (0, 0, 0)),
                  pl.BlockSpec((1, 1, c), lambda b: (0, 0, 0))],
        out_specs=pl.BlockSpec((1, h, w, c), lambda b: (b, 0, 0, 0)),
        compiler_params=pltpu.CompilerParams(dimension_semantics=("parallel",)),
    )(y, scale, shift)


# ---------------------------------------------------------------------------
# Parameter packing + BN finalization (tiny JAX glue)
# ---------------------------------------------------------------------------
def _prep_weight(w_oihw, cin_p, cout_p):
    cout, cin, kh, kw = w_oihw.shape
    assert (kh, kw) == (3, 3)
    wt = jnp.transpose(w_oihw.astype(jnp.float32), (2, 3, 1, 0))      # (3,3,Cin,Cout)
    wt = jnp.pad(wt, ((0, 0), (0, 0), (0, cin_p - cin), (0, cout_p - cout)))
    return wt.reshape(9 * cin_p, cout_p)                              # (9*Cin', CoutP)


def _bn_scale_shift(psum, pssq, count, gamma, beta, eps):
    cout_p = psum.shape[-1]
    g = jnp.pad(gamma.astype(jnp.float32), (0, cout_p - gamma.shape[0]))
    b = jnp.pad(beta.astype(jnp.float32), (0, cout_p - beta.shape[0]))
    mean = jnp.sum(psum[:, 0, :], axis=0) / count
    var = jnp.sum(pssq[:, 0, :], axis=0) / count - mean * mean        # biased variance
    scale = g * jax.lax.rsqrt(var + eps)
    shift = b - mean * scale
    return scale.reshape(1, 1, cout_p), shift.reshape(1, 1, cout_p)


def double_conv(x_nchw, params, eps=1e-5):
    w1, g1, b1, w2, g2, b2 = params
    n, cin, h, w = x_nchw.shape
    cout1, cout2 = w1.shape[0], w2.shape[0]
    c1p = _round_up(cout1, _LANE)          # lane-dense layer-1 channels
    c2p = _round_up(cout2, _LANE)          # lane-dense layer-2 channels

    x = jnp.transpose(x_nchw.astype(jnp.float32), (0, 2, 3, 1))       # NCHW -> NHWC
    wp1 = _prep_weight(w1, cin_p=cin, cout_p=c1p)                     # (9*Cin,  C1P)
    wp2 = _prep_weight(w2, cin_p=c1p, cout_p=c2p)                     # (9*C1P, C2P)
    count = n * h * w

    # conv1 (pre-BN output + per-image BN partial sums)
    y1, s1, q1 = _run_conv(x, wp1)
    scale1, shift1 = _bn_scale_shift(s1, q1, count, g1, b1, eps)
    # TODO(synk): BatchNorm2d running_mean/running_var buffer updates (training side
    # effect, not part of the forward output) are not reproduced.

    # BN1 + ReLU fused into conv2's load path (no HBM round trip of the activation)
    y2, s2, q2 = _run_conv(y1, wp2, scale1, shift1)
    scale2, shift2 = _bn_scale_shift(s2, q2, count, g2, b2, eps)

    # final BN2 + ReLU (lane-dense elementwise kernel)
    out = _run_bn_relu(y2, scale2, shift2)

    out = out[..., :cout2]                                            # drop lane padding
    return jnp.transpose(out, (0, 3, 1, 2))                           # NHWC -> NCHW


# ---------------------------------------------------------------------------
# Pure-JAX reference
# ---------------------------------------------------------------------------
def _ref_double_conv(x, params, eps=1e-5):
    w1, g1, b1, w2, g2, b2 = params

    def block(x, w, g, b):
        y = jax.lax.conv_general_dilated(
            x, w, window_strides=(1, 1), padding=((1, 1), (1, 1)),
            dimension_numbers=("NCHW", "OIHW", "NCHW"))
        mean = jnp.mean(y, axis=(0, 2, 3), keepdims=True)
        var = jnp.var(y, axis=(0, 2, 3), keepdims=True)
        y = (y - mean) / jnp.sqrt(var + eps)
        y = y * g.reshape(1, -1, 1, 1) + b.reshape(1, -1, 1, 1)
        return jnp.maximum(y, 0.0)

    return block(block(x, w1, g1, b1), w2, g2, b2)


if __name__ == "__main__":
    N, C_IN, C_OUT, H, W = 2, 4, 8, 16, 16

    key = jax.random.PRNGKey(0)
    kx, kw1, kw2, kg1, kb1, kg2, kb2 = jax.random.split(key, 7)
    x = jax.random.normal(kx, (N, C_IN, H, W), dtype=jnp.float32)

    # deterministic synthetic parameters (Conv2d weights OIHW, BN affine params)
    w1 = 0.2 * jax.random.normal(kw1, (C_OUT, C_IN, 3, 3), dtype=jnp.float32)
    w2 = 0.2 * jax.random.normal(kw2, (C_OUT, C_OUT, 3, 3), dtype=jnp.float32)
    g1 = 1.0 + 0.1 * jax.random.normal(kg1, (C_OUT,), dtype=jnp.float32)
    b1 = 0.1 * jax.random.normal(kb1, (C_OUT,), dtype=jnp.float32)
    g2 = 1.0 + 0.1 * jax.random.normal(kg2, (C_OUT,), dtype=jnp.float32)
    b2 = 0.1 * jax.random.normal(kb2, (C_OUT,), dtype=jnp.float32)
    params = (w1, g1, b1, w2, g2, b2)

    out = jax.block_until_ready(jax.jit(double_conv)(x, params))
    assert out.shape == (N, C_OUT, H, W), out.shape

    ref = _ref_double_conv(x, params)
    max_err = float(jnp.max(jnp.abs(out - ref)))
    assert jnp.allclose(out, ref, rtol=2e-4, atol=2e-4), max_err

    print("KERNEL_OK")
</pallas_src>

<mosaic_0001>
module attributes {stable_mosaic.version = 11 : i64} {
  func.func @_conv_kernel(%arg0: i32, %arg1: memref<1x16x16x4xf32, #tpu.memory_space<vmem>>, %arg2: memref<36x128xf32, #tpu.memory_space<vmem>>, %arg3: memref<1x16x16x128xf32, #tpu.memory_space<vmem>>, %arg4: memref<1x1x128xf32, #tpu.memory_space<vmem>>, %arg5: memref<1x1x128xf32, #tpu.memory_space<vmem>>, %arg6: memref<18x18x4xf32, #tpu.memory_space<vmem>>) attributes {dimension_semantics = [#tpu.dimension_semantics<parallel>], iteration_bounds = array<i64: 2>, scalar_prefetch = 0 : i64, scratch_operands = 1 : i64, tpu.core_type = #tpu.core_type<tc>, window_params = [{transform_indices = @transform_0, window_bounds = array<i64: 1, 16, 16, 4>}, {pipeline_mode = #tpu.pipeline_mode<synchronous>, transform_indices = @transform_1, window_bounds = array<i64: 36, 128>}, {transform_indices = @transform_2, window_bounds = array<i64: 1, 16, 16, 128>}, {transform_indices = @transform_3, window_bounds = array<i64: 1, 1, 128>}, {transform_indices = @transform_4, window_bounds = array<i64: 1, 1, 128>}]} {
    %c0 = arith.constant 0 : index
    %c0_0 = arith.constant 0 : index
    %c0_1 = arith.constant 0 : index
    %c0_2 = arith.constant 0 : index
    %0 = vector.load %arg1[%c0, %c0_0, %c0_1, %c0_2] : memref<1x16x16x4xf32, #tpu.memory_space<vmem>>, vector<1x16x16x4xf32>
    %1 = vector.shape_cast %0 : vector<1x16x16x4xf32> to vector<16x16x4xf32>
    %cst = arith.constant 0.000000e+00 : f32
    %2 = vector.broadcast %cst : f32 to vector<18x18x4xf32>
    %c0_3 = arith.constant 0 : index
    %c0_4 = arith.constant 0 : index
    %c0_5 = arith.constant 0 : index
    %3 = vector.load %arg6[%c0_3, %c0_4, %c0_5] : memref<18x18x4xf32, #tpu.memory_space<vmem>>, vector<18x18x4xf32>
    tpu.vector_store %arg6[%c0_3, %c0_4, %c0_5], %2 {strides = array<i32>} : memref<18x18x4xf32, #tpu.memory_space<vmem>>, vector<18x18x4xf32>,
    %c1 = arith.constant 1 : index
    %c1_6 = arith.constant 1 : index
    %c0_7 = arith.constant 0 : index
    %4 = vector.load %arg6[%c1, %c1_6, %c0_7] : memref<18x18x4xf32, #tpu.memory_space<vmem>>, vector<16x16x4xf32>
    tpu.vector_store %arg6[%c1, %c1_6, %c0_7], %1 {strides = array<i32>} : memref<18x18x4xf32, #tpu.memory_space<vmem>>, vector<16x16x4xf32>,
    %cst_8 = arith.constant 0.000000e+00 : f32
    %5 = vector.broadcast %cst_8 : f32 to vector<256x128xf32>
    %c0_9 = arith.constant 0 : index
    %c0_10 = arith.constant 0 : index
    %c0_11 = arith.constant 0 : index
    %6 = vector.load %arg6[%c0_9, %c0_10, %c0_11] : memref<18x18x4xf32, #tpu.memory_space<vmem>>, vector<16x16x4xf32>
    %7 = vector.shape_cast %6 : vector<16x16x4xf32> to vector<256x4xf32>
    %c0_12 = arith.constant 0 : index
    %c0_13 = arith.constant 0 : index
    %8 = vector.load %arg2[%c0_12, %c0_13] : memref<36x128xf32, #tpu.memory_space<vmem>>, vector<4x128xf32>
    %cst_14 = arith.constant dense<0.000000e+00> : vector<256x128xf32>
    %9 = tpu.matmul %7, %8, %cst_14 {dimension_numbers = #tpu.dot_dimension_numbers<[1], [0], [0], [1], [0, 0, 1, 1], [], []>} : vector<256x4xf32>, vector<4x128xf32>, vector<256x128xf32> -> vector<256x128xf32>
    %10 = arith.addf %5, %9 : vector<256x128xf32>
    %c0_15 = arith.constant 0 : index
    %c1_16 = arith.constant 1 : index
    %c0_17 = arith.constant 0 : index
    %11 = vector.load %arg6[%c0_15, %c1_16, %c0_17] : memref<18x18x4xf32, #tpu.memory_space<vmem>>, vector<16x16x4xf32>
    %12 = vector.shape_cast %11 : vector<16x16x4xf32> to vector<256x4xf32>
    %c4 = arith.constant 4 : index
    %c0_18 = arith.constant 0 : index
    %13 = vector.load %arg2[%c4, %c0_18] : memref<36x128xf32, #tpu.memory_space<vmem>>, vector<4x128xf32>
    %cst_19 = arith.constant dense<0.000000e+00> : vector<256x128xf32>
    %14 = tpu.matmul %12, %13, %cst_19 {dimension_numbers = #tpu.dot_dimension_numbers<[1], [0], [0], [1], [0, 0, 1, 1], [], []>} : vector<256x4xf32>, vector<4x128xf32>, vector<256x128xf32> -> vector<256x128xf32>
    %15 = arith.addf %10, %14 : vector<256x128xf32>
    %c0_20 = arith.constant 0 : index
    %c2 = arith.constant 2 : index
    %c0_21 = arith.constant 0 : index
    %16 = vector.load %arg6[%c0_20, %c2, %c0_21] : memref<18x18x4xf32, #tpu.memory_space<vmem>>, vector<16x16x4xf32>
    %17 = vector.shape_cast %16 : vector<16x16x4xf32> to vector<256x4xf32>
    %c8 = arith.constant 8 : index
    %c0_22 = arith.constant 0 : index
    %18 = vector.load %arg2[%c8, %c0_22] : memref<36x128xf32, #tpu.memory_space<vmem>>, vector<4x128xf32>
    %cst_23 = arith.constant dense<0.000000e+00> : vector<256x128xf32>
    %19 = tpu.matmul %17, %18, %cst_23 {dimension_numbers = #tpu.dot_dimension_numbers<[1], [0], [0], [1], [0, 0, 1, 1], [], []>} : vector<256x4xf32>, vector<4x128xf32>, vector<256x128xf32> -> vector<256x128xf32>
    %20 = arith.addf %15, %19 : vector<256x128xf32>
    %c1_24 = arith.constant 1 : index
    %c0_25 = arith.constant 0 : index
    %c0_26 = arith.constant 0 : index
    %21 = vector.load %arg6[%c1_24, %c0_25, %c0_26] : memref<18x18x4xf32, #tpu.memory_space<vmem>>, vector<16x16x4xf32>
    %22 = vector.shape_cast %21 : vector<16x16x4xf32> to vector<256x4xf32>
    %c12 = arith.constant 12 : index
    %c0_27 = arith.constant 0 : index
    %23 = vector.load %arg2[%c12, %c0_27] : memref<36x128xf32, #tpu.memory_space<vmem>>, vector<4x128xf32>
    %cst_28 = arith.constant dense<0.000000e+00> : vector<256x128xf32>
    %24 = tpu.matmul %22, %23, %cst_28 {dimension_numbers = #tpu.dot_dimension_numbers<[1], [0], [0], [1], [0, 0, 1, 1], [], []>} : vector<256x4xf32>, vector<4x128xf32>, vector<256x128xf32> -> vector<256x128xf32>
    %25 = arith.addf %20, %24 : vector<256x128xf32>
    %c1_29 = arith.constant 1 : index
    %c1_30 = arith.constant 1 : index
    %c0_31 = arith.constant 0 : index
    %26 = vector.load %arg6[%c1_29, %c1_30, %c0_31] : memref<18x18x4xf32, #tpu.memory_space<vmem>>, vector<16x16x4xf32>
    %27 = vector.shape_cast %26 : vector<16x16x4xf32> to vector<256x4xf32>
    %c16 = arith.constant 16 : index
    %c0_32 = arith.constant 0 : index
    %28 = vector.load %arg2[%c16, %c0_32] : memref<36x128xf32, #tpu.memory_space<vmem>>, vector<4x128xf32>
    %cst_33 = arith.constant dense<0.000000e+00> : vector<256x128xf32>
    %29 = tpu.matmul %27, %28, %cst_33 {dimension_numbers = #tpu.dot_dimension_numbers<[1], [0], [0], [1], [0, 0, 1, 1], [], []>} : vector<256x4xf32>, vector<4x128xf32>, vector<256x128xf32> -> vector<256x128xf32>
    %30 = arith.addf %25, %29 : vector<256x128xf32>
    %c1_34 = arith.constant 1 : index
    %c2_35 = arith.constant 2 : index
    %c0_36 = arith.constant 0 : index
    %31 = vector.load %arg6[%c1_34, %c2_35, %c0_36] : memref<18x18x4xf32, #tpu.memory_space<vmem>>, vector<16x16x4xf32>
    %32 = vector.shape_cast %31 : vector<16x16x4xf32> to vector<256x4xf32>
    %c20 = arith.constant 20 : index
    %c0_37 = arith.constant 0 : index
    %33 = vector.load %arg2[%c20, %c0_37] : memref<36x128xf32, #tpu.memory_space<vmem>>, vector<4x128xf32>
    %cst_38 = arith.constant dense<0.000000e+00> : vector<256x128xf32>
    %34 = tpu.matmul %32, %33, %cst_38 {dimension_numbers = #tpu.dot_dimension_numbers<[1], [0], [0], [1], [0, 0, 1, 1], [], []>} : vector<256x4xf32>, vector<4x128xf32>, vector<256x128xf32> -> vector<256x128xf32>
    %35 = arith.addf %30, %34 : vector<256x128xf32>
    %c2_39 = arith.constant 2 : index
    %c0_40 = arith.constant 0 : index
    %c0_41 = arith.constant 0 : index
    %36 = vector.load %arg6[%c2_39, %c0_40, %c0_41] : memref<18x18x4xf32, #tpu.memory_space<vmem>>, vector<16x16x4xf32>
    %37 = vector.shape_cast %36 : vector<16x16x4xf32> to vector<256x4xf32>
    %c24 = arith.constant 24 : index
    %c0_42 = arith.constant 0 : index
    %38 = vector.load %arg2[%c24, %c0_42] : memref<36x128xf32, #tpu.memory_space<vmem>>, vector<4x128xf32>
    %cst_43 = arith.constant dense<0.000000e+00> : vector<256x128xf32>
    %39 = tpu.matmul %37, %38, %cst_43 {dimension_numbers = #tpu.dot_dimension_numbers<[1], [0], [0], [1], [0, 0, 1, 1], [], []>} : vector<256x4xf32>, vector<4x128xf32>, vector<256x128xf32> -> vector<256x128xf32>
    %40 = arith.addf %35, %39 : vector<256x128xf32>
    %c2_44 = arith.constant 2 : index
    %c1_45 = arith.constant 1 : index
    %c0_46 = arith.constant 0 : index
    %41 = vector.load %arg6[%c2_44, %c1_45, %c0_46] : memref<18x18x4xf32, #tpu.memory_space<vmem>>, vector<16x16x4xf32>
    %42 = vector.shape_cast %41 : vector<16x16x4xf32> to vector<256x4xf32>
    %c28 = arith.constant 28 : index
    %c0_47 = arith.constant 0 : index
    %43 = vector.load %arg2[%c28, %c0_47] : memref<36x128xf32, #tpu.memory_space<vmem>>, vector<4x128xf32>
    %cst_48 = arith.constant dense<0.000000e+00> : vector<256x128xf32>
    %44 = tpu.matmul %42, %43, %cst_48 {dimension_numbers = #tpu.dot_dimension_numbers<[1], [0], [0], [1], [0, 0, 1, 1], [], []>} : vector<256x4xf32>, vector<4x128xf32>, vector<256x128xf32> -> vector<256x128xf32>
    %45 = arith.addf %40, %44 : vector<256x128xf32>
    %c2_49 = arith.constant 2 : index
    %c2_50 = arith.constant 2 : index
    %c0_51 = arith.constant 0 : index
    %46 = vector.load %arg6[%c2_49, %c2_50, %c0_51] : memref<18x18x4xf32, #tpu.memory_space<vmem>>, vector<16x16x4xf32>
    %47 = vector.shape_cast %46 : vector<16x16x4xf32> to vector<256x4xf32>
    %c32 = arith.constant 32 : index
    %c0_52 = arith.constant 0 : index
    %48 = vector.load %arg2[%c32, %c0_52] : memref<36x128xf32, #tpu.memory_space<vmem>>, vector<4x128xf32>
    %cst_53 = arith.constant dense<0.000000e+00> : vector<256x128xf32>
    %49 = tpu.matmul %47, %48, %cst_53 {dimension_numbers = #tpu.dot_dimension_numbers<[1], [0], [0], [1], [0, 0, 1, 1], [], []>} : vector<256x4xf32>, vector<4x128xf32>, vector<256x128xf32> -> vector<256x128xf32>
    %50 = arith.addf %45, %49 : vector<256x128xf32>
    %51 = vector.shape_cast %50 : vector<256x128xf32> to vector<16x16x128xf32>
    %c0_54 = arith.constant 0 : index
    %c0_55 = arith.constant 0 : index
    %c0_56 = arith.constant 0 : index
    %c0_57 = arith.constant 0 : index
    %52 = vector.load %arg3[%c0_54, %c0_55, %c0_56, %c0_57] : memref<1x16x16x128xf32, #tpu.memory_space<vmem>>, vector<1x16x16x128xf32>
    %53 = vector.shape_cast %52 : vector<1x16x16x128xf32> to vector<16x16x128xf32>
    %54 = vector.shape_cast %51 : vector<16x16x128xf32> to vector<1x16x16x128xf32>
    tpu.vector_store %arg3[%c0_54, %c0_55, %c0_56, %c0_57], %54 {strides = array<i32>} : memref<1x16x16x128xf32, #tpu.memory_space<vmem>>, vector<1x16x16x128xf32>,
    %cst_58 = arith.constant dense<0.000000e+00> : vector<128xf32>
    %55 = vector.multi_reduction <add>, %50, %cst_58 [0] : vector<256x128xf32> to vector<128xf32>
    %c0_59 = arith.constant 0 : index
    %c0_60 = arith.constant 0 : index
    %c0_61 = arith.constant 0 : index
    %56 = vector.load %arg4[%c0_59, %c0_60, %c0_61] : memref<1x1x128xf32, #tpu.memory_space<vmem>>, vector<1x1x128xf32>
    %57 = vector.shape_cast %56 : vector<1x1x128xf32> to vector<128xf32>
    %58 = vector.shape_cast %55 : vector<128xf32> to vector<1x1x128xf32>
    tpu.vector_store %arg4[%c0_59, %c0_60, %c0_61], %58 {strides = array<i32>} : memref<1x1x128xf32, #tpu.memory_space<vmem>>, vector<1x1x128xf32>,
    %59 = arith.mulf %50, %50 : vector<256x128xf32>
    %cst_62 = arith.constant dense<0.000000e+00> : vector<128xf32>
    %60 = vector.multi_reduction <add>, %59, %cst_62 [0] : vector<256x128xf32> to vector<128xf32>
    %c0_63 = arith.constant 0 : index
    %c0_64 = arith.constant 0 : index
    %c0_65 = arith.constant 0 : index
    %61 = vector.load %arg5[%c0_63, %c0_64, %c0_65] : memref<1x1x128xf32, #tpu.memory_space<vmem>>, vector<1x1x128xf32>
    %62 = vector.shape_cast %61 : vector<1x1x128xf32> to vector<128xf32>
    %63 = vector.shape_cast %60 : vector<128xf32> to vector<1x1x128xf32>
    tpu.vector_store %arg5[%c0_63, %c0_64, %c0_65], %63 {strides = array<i32>} : memref<1x1x128xf32, #tpu.memory_space<vmem>>, vector<1x1x128xf32>,
    return
  }
  func.func @transform_0(%arg0: i32) -> (i32, i32, i32, i32) {
    %c0_i32 = arith.constant 0 : i32
    %c0_i32_0 = arith.constant 0 : i32
    %c0_i32_1 = arith.constant 0 : i32
    %c0_i32_2 = arith.constant 0 : i32
    return %arg0, %c0_i32, %c0_i32_0, %c0_i32_1 : i32, i32, i32, i32
  }
  func.func @transform_1(%arg0: i32) -> (i32, i32) {
    %c0_i32 = arith.constant 0 : i32
    %c0_i32_0 = arith.constant 0 : i32
    %c0_i32_1 = arith.constant 0 : i32
    return %c0_i32, %c0_i32_0 : i32, i32
  }
  func.func @transform_2(%arg0: i32) -> (i32, i32, i32, i32) {
    %c0_i32 = arith.constant 0 : i32
    %c0_i32_0 = arith.constant 0 : i32
    %c0_i32_1 = arith.constant 0 : i32
    %c0_i32_2 = arith.constant 0 : i32
    return %arg0, %c0_i32, %c0_i32_0, %c0_i32_1 : i32, i32, i32, i32
  }
  func.func @transform_3(%arg0: i32) -> (i32, i32, i32) {
    %c0_i32 = arith.constant 0 : i32
    %c0_i32_0 = arith.constant 0 : i32
    %c0_i32_1 = arith.constant 0 : i32
    return %arg0, %c0_i32, %c0_i32_0 : i32, i32, i32
  }
  func.func @transform_4(%arg0: i32) -> (i32, i32, i32) {
    %c0_i32 = arith.constant 0 : i32
    %c0_i32_0 = arith.constant 0 : i32
    %c0_i32_1 = arith.constant 0 : i32
    return %arg0, %c0_i32, %c0_i32_0 : i32, i32, i32
  }
}

module attributes {stable_mosaic.version = 11 : i64} {
  func.func @_bn_relu_kernel(%arg0: i32, %arg1: memref<1x16x16x128xf32, #tpu.memory_space<vmem>>, %arg2: memref<1x1x128xf32, #tpu.memory_space<vmem>>, %arg3: memref<1x1x128xf32, #tpu.memory_space<vmem>>, %arg4: memref<1x16x16x128xf32, #tpu.memory_space<vmem>>) attributes {dimension_semantics = [#tpu.dimension_semantics<parallel>], iteration_bounds = array<i64: 2>, scalar_prefetch = 0 : i64, scratch_operands = 0 : i64, tpu.core_type = #tpu.core_type<tc>, window_params = [{transform_indices = @transform_0, window_bounds = array<i64: 1, 16, 16, 128>}, {pipeline_mode = #tpu.pipeline_mode<synchronous>, transform_indices = @transform_1, window_bounds = array<i64: 1, 1, 128>}, {pipeline_mode = #tpu.pipeline_mode<synchronous>, transform_indices = @transform_2, window_bounds = array<i64: 1, 1, 128>}, {transform_indices = @transform_3, window_bounds = array<i64: 1, 16, 16, 128>}]} {
    %c0 = arith.constant 0 : index
    %c0_0 = arith.constant 0 : index
    %c0_1 = arith.constant 0 : index
    %c0_2 = arith.constant 0 : index
    %0 = vector.load %arg1[%c0, %c0_0, %c0_1, %c0_2] : memref<1x16x16x128xf32, #tpu.memory_space<vmem>>, vector<1x16x16x128xf32>
    %1 = vector.shape_cast %0 : vector<1x16x16x128xf32> to vector<16x16x128xf32>
    %c0_3 = arith.constant 0 : index
    %c0_4 = arith.constant 0 : index
    %c0_5 = arith.constant 0 : index
    %2 = vector.load %arg2[%c0_3, %c0_4, %c0_5] : memref<1x1x128xf32, #tpu.memory_space<vmem>>, vector<1x1x128xf32>
    %3 = vector.shape_cast %2 : vector<1x1x128xf32> to vector<1x128xf32>
    %4 = vector.shape_cast %3 : vector<1x128xf32> to vector<1x1x128xf32>
    %5 = vector.broadcast %4 : vector<1x1x128xf32> to vector<16x16x128xf32>
    %6 = arith.mulf %1, %5 : vector<16x16x128xf32>
    %c0_6 = arith.constant 0 : index
    %c0_7 = arith.constant 0 : index
    %c0_8 = arith.constant 0 : index
    %7 = vector.load %arg3[%c0_6, %c0_7, %c0_8] : memref<1x1x128xf32, #tpu.memory_space<vmem>>, vector<1x1x128xf32>
    %8 = vector.shape_cast %7 : vector<1x1x128xf32> to vector<1x128xf32>
    %9 = vector.shape_cast %8 : vector<1x128xf32> to vector<1x1x128xf32>
    %10 = vector.broadcast %9 : vector<1x1x128xf32> to vector<16x16x128xf32>
    %11 = arith.addf %6, %10 : vector<16x16x128xf32>
    %cst = arith.constant 0.000000e+00 : f32
    %12 = vector.broadcast %cst : f32 to vector<16x16x128xf32>
    %13 = arith.maximumf %11, %12 : vector<16x16x128xf32>
    %c0_9 = arith.constant 0 : index
    %c0_10 = arith.constant 0 : index
    %c0_11 = arith.constant 0 : index
    %c0_12 = arith.constant 0 : index
    %14 = vector.load %arg4[%c0_9, %c0_10, %c0_11, %c0_12] : memref<1x16x16x128xf32, #tpu.memory_space<vmem>>, vector<1x16x16x128xf32>
    %15 = vector.shape_cast %14 : vector<1x16x16x128xf32> to vector<16x16x128xf32>
    %16 = vector.shape_cast %13 : vector<16x16x128xf32> to vector<1x16x16x128xf32>
    tpu.vector_store %arg4[%c0_9, %c0_10, %c0_11, %c0_12], %16 {strides = array<i32>} : memref<1x16x16x128xf32, #tpu.memory_space<vmem>>, vector<1x16x16x128xf32>,
    return
  }
  func.func @transform_0(%arg0: i32) -> (i32, i32, i32, i32) {
    %c0_i32 = arith.constant 0 : i32
    %c0_i32_0 = arith.constant 0 : i32
    %c0_i32_1 = arith.constant 0 : i32
    %c0_i32_2 = arith.constant 0 : i32
    return %arg0, %c0_i32, %c0_i32_0, %c0_i32_1 : i32, i32, i32, i32
  }
  func.func @transform_1(%arg0: i32) -> (i32, i32, i32) {
    %c0_i32 = arith.constant 0 : i32
    %c0_i32_0 = arith.constant 0 : i32
    %c0_i32_1 = arith.constant 0 : i32
    %c0_i32_2 = arith.constant 0 : i32
    return %c0_i32, %c0_i32_0, %c0_i32_1 : i32, i32, i32
  }
  func.func @transform_2(%arg0: i32) -> (i32, i32, i32) {
    %c0_i32 = arith.constant 0 : i32
    %c0_i32_0 = arith.constant 0 : i32
    %c0_i32_1 = arith.constant 0 : i32
    %c0_i32_2 = arith.constant 0 : i32
    return %c0_i32, %c0_i32_0, %c0_i32_1 : i32, i32, i32
  }
  func.func @transform_3(%arg0: i32) -> (i32, i32, i32, i32) {
    %c0_i32 = arith.constant 0 : i32
    %c0_i32_0 = arith.constant 0 : i32
    %c0_i32_1 = arith.constant 0 : i32
    %c0_i32_2 = arith.constant 0 : i32
    return %arg0, %c0_i32, %c0_i32_0, %c0_i32_1 : i32, i32, i32, i32
  }
}

module attributes {stable_mosaic.version = 11 : i64} {
  func.func @_bn_relu_conv_kernel(%arg0: i32, %arg1: memref<1x16x16x128xf32, #tpu.memory_space<vmem>>, %arg2: memref<1x1x128xf32, #tpu.memory_space<vmem>>, %arg3: memref<1x1x128xf32, #tpu.memory_space<vmem>>, %arg4: memref<1152x128xf32, #tpu.memory_space<vmem>>, %arg5: memref<1x16x16x128xf32, #tpu.memory_space<vmem>>, %arg6: memref<1x1x128xf32, #tpu.memory_space<vmem>>, %arg7: memref<1x1x128xf32, #tpu.memory_space<vmem>>, %arg8: memref<18x18x128xf32, #tpu.memory_space<vmem>>) attributes {dimension_semantics = [#tpu.dimension_semantics<parallel>], iteration_bounds = array<i64: 2>, scalar_prefetch = 0 : i64, scratch_operands = 1 : i64, tpu.core_type = #tpu.core_type<tc>, window_params = [{transform_indices = @transform_0, window_bounds = array<i64: 1, 16, 16, 128>}, {pipeline_mode = #tpu.pipeline_mode<synchronous>, transform_indices = @transform_1, window_bounds = array<i64: 1, 1, 128>}, {pipeline_mode = #tpu.pipeline_mode<synchronous>, transform_indices = @transform_2, window_bounds = array<i64: 1, 1, 128>}, {pipeline_mode = #tpu.pipeline_mode<synchronous>, transform_indices = @transform_3, window_bounds = array<i64: 1152, 128>}, {transform_indices = @transform_4, window_bounds = array<i64: 1, 16, 16, 128>}, {transform_indices = @transform_5, window_bounds = array<i64: 1, 1, 128>}, {transform_indices = @transform_6, window_bounds = array<i64: 1, 1, 128>}]} {
    %c0 = arith.constant 0 : index
    %c0_0 = arith.constant 0 : index
    %c0_1 = arith.constant 0 : index
    %c0_2 = arith.constant 0 : index
    %0 = vector.load %arg1[%c0, %c0_0, %c0_1, %c0_2] : memref<1x16x16x128xf32, #tpu.memory_space<vmem>>, vector<1x16x16x128xf32>
    %1 = vector.shape_cast %0 : vector<1x16x16x128xf32> to vector<16x16x128xf32>
    %c0_3 = arith.constant 0 : index
    %c0_4 = arith.constant 0 : index
    %c0_5 = arith.constant 0 : index
    %2 = vector.load %arg2[%c0_3, %c0_4, %c0_5] : memref<1x1x128xf32, #tpu.memory_space<vmem>>, vector<1x1x128xf32>
    %3 = vector.shape_cast %2 : vector<1x1x128xf32> to vector<1x128xf32>
    %4 = vector.shape_cast %3 : vector<1x128xf32> to vector<1x1x128xf32>
    %5 = vector.broadcast %4 : vector<1x1x128xf32> to vector<16x16x128xf32>
    %6 = arith.mulf %1, %5 : vector<16x16x128xf32>
    %c0_6 = arith.constant 0 : index
    %c0_7 = arith.constant 0 : index
    %c0_8 = arith.constant 0 : index
    %7 = vector.load %arg3[%c0_6, %c0_7, %c0_8] : memref<1x1x128xf32, #tpu.memory_space<vmem>>, vector<1x1x128xf32>
    %8 = vector.shape_cast %7 : vector<1x1x128xf32> to vector<1x128xf32>
    %9 = vector.shape_cast %8 : vector<1x128xf32> to vector<1x1x128xf32>
    %10 = vector.broadcast %9 : vector<1x1x128xf32> to vector<16x16x128xf32>
    %11 = arith.addf %6, %10 : vector<16x16x128xf32>
    %cst = arith.constant 0.000000e+00 : f32
    %12 = vector.broadcast %cst : f32 to vector<16x16x128xf32>
    %13 = arith.maximumf %11, %12 : vector<16x16x128xf32>
    %cst_9 = arith.constant 0.000000e+00 : f32
    %14 = vector.broadcast %cst_9 : f32 to vector<18x18x128xf32>
    %c0_10 = arith.constant 0 : index
    %c0_11 = arith.constant 0 : index
    %c0_12 = arith.constant 0 : index
    %15 = vector.load %arg8[%c0_10, %c0_11, %c0_12] : memref<18x18x128xf32, #tpu.memory_space<vmem>>, vector<18x18x128xf32>
    tpu.vector_store %arg8[%c0_10, %c0_11, %c0_12], %14 {strides = array<i32>} : memref<18x18x128xf32, #tpu.memory_space<vmem>>, vector<18x18x128xf32>,
    %c1 = arith.constant 1 : index
    %c1_13 = arith.constant 1 : index
    %c0_14 = arith.constant 0 : index
    %16 = vector.load %arg8[%c1, %c1_13, %c0_14] : memref<18x18x128xf32, #tpu.memory_space<vmem>>, vector<16x16x128xf32>
    tpu.vector_store %arg8[%c1, %c1_13, %c0_14], %13 {strides = array<i32>} : memref<18x18x128xf32, #tpu.memory_space<vmem>>, vector<16x16x128xf32>,
    %c0_15 = arith.constant 0 : index
    %c0_16 = arith.constant 0 : index
    %c0_17 = arith.constant 0 : index
    %17 = vector.load %arg8[%c0_15, %c0_16, %c0_17] : memref<18x18x128xf32, #tpu.memory_space<vmem>>, vector<16x16x128xf32>
    %c0_18 = arith.constant 0 : index
    %c1_19 = arith.constant 1 : index
    %c0_20 = arith.constant 0 : index
    %18 = vector.load %arg8[%c0_18, %c1_19, %c0_20] : memref<18x18x128xf32, #tpu.memory_space<vmem>>, vector<16x16x128xf32>
    %c0_21 = arith.constant 0 : index
    %c2 = arith.constant 2 : index
    %c0_22 = arith.constant 0 : index
    %19 = vector.load %arg8[%c0_21, %c2, %c0_22] : memref<18x18x128xf32, #tpu.memory_space<vmem>>, vector<16x16x128xf32>
    %c1_23 = arith.constant 1 : index
    %c0_24 = arith.constant 0 : index
    %c0_25 = arith.constant 0 : index
    %20 = vector.load %arg8[%c1_23, %c0_24, %c0_25] : memref<18x18x128xf32, #tpu.memory_space<vmem>>, vector<16x16x128xf32>
    %c1_26 = arith.constant 1 : index
    %c1_27 = arith.constant 1 : index
    %c0_28 = arith.constant 0 : index
    %21 = vector.load %arg8[%c1_26, %c1_27, %c0_28] : memref<18x18x128xf32, #tpu.memory_space<vmem>>, vector<16x16x128xf32>
    %c1_29 = arith.constant 1 : index
    %c2_30 = arith.constant 2 : index
    %c0_31 = arith.constant 0 : index
    %22 = vector.load %arg8[%c1_29, %c2_30, %c0_31] : memref<18x18x128xf32, #tpu.memory_space<vmem>>, vector<16x16x128xf32>
    %c2_32 = arith.constant 2 : index
    %c0_33 = arith.constant 0 : index
    %c0_34 = arith.constant 0 : index
    %23 = vector.load %arg8[%c2_32, %c0_33, %c0_34] : memref<18x18x128xf32, #tpu.memory_space<vmem>>, vector<16x16x128xf32>
    %c2_35 = arith.constant 2 : index
    %c1_36 = arith.constant 1 : index
    %c0_37 = arith.constant 0 : index
    %24 = vector.load %arg8[%c2_35, %c1_36, %c0_37] : memref<18x18x128xf32, #tpu.memory_space<vmem>>, vector<16x16x128xf32>
    %c2_38 = arith.constant 2 : index
    %c2_39 = arith.constant 2 : index
    %c0_40 = arith.constant 0 : index
    %25 = vector.load %arg8[%c2_38, %c2_39, %c0_40] : memref<18x18x128xf32, #tpu.memory_space<vmem>>, vector<16x16x128xf32>
    %26 = tpu.concatenate %17, %18, %19, %20, %21, %22, %23, %24, %25 in 2 : vector<16x16x128xf32>, vector<16x16x128xf32>, vector<16x16x128xf32>, vector<16x16x128xf32>, vector<16x16x128xf32>, vector<16x16x128xf32>, vector<16x16x128xf32>, vector<16x16x128xf32>, vector<16x16x128xf32> -> vector<16x16x1152xf32>
    %27 = vector.shape_cast %26 : vector<16x16x1152xf32> to vector<256x1152xf32>
    %c0_41 = arith.constant 0 : index
    %c0_42 = arith.constant 0 : index
    %28 = vector.load %arg4[%c0_41, %c0_42] : memref<1152x128xf32, #tpu.memory_space<vmem>>, vector<1152x128xf32>
    %cst_43 = arith.constant dense<0.000000e+00> : vector<256x128xf32>
    %29 = tpu.matmul %27, %28, %cst_43 {dimension_numbers = #tpu.dot_dimension_numbers<[1], [0], [0], [1], [0, 0, 1, 1], [], []>} : vector<256x1152xf32>, vector<1152x128xf32>, vector<256x128xf32> -> vector<256x128xf32>
    %30 = vector.shape_cast %29 : vector<256x128xf32> to vector<16x16x128xf32>
    %c0_44 = arith.constant 0 : index
    %c0_45 = arith.constant 0 : index
    %c0_46 = arith.constant 0 : index
    %c0_47 = arith.constant 0 : index
    %31 = vector.load %arg5[%c0_44, %c0_45, %c0_46, %c0_47] : memref<1x16x16x128xf32, #tpu.memory_space<vmem>>, vector<1x16x16x128xf32>
    %32 = vector.shape_cast %31 : vector<1x16x16x128xf32> to vector<16x16x128xf32>
    %33 = vector.shape_cast %30 : vector<16x16x128xf32> to vector<1x16x16x128xf32>
    tpu.vector_store %arg5[%c0_44, %c0_45, %c0_46, %c0_47], %33 {strides = array<i32>} : memref<1x16x16x128xf32, #tpu.memory_space<vmem>>, vector<1x16x16x128xf32>,
    %cst_48 = arith.constant dense<0.000000e+00> : vector<128xf32>
    %34 = vector.multi_reduction <add>, %29, %cst_48 [0] : vector<256x128xf32> to vector<128xf32>
    %c0_49 = arith.constant 0 : index
    %c0_50 = arith.constant 0 : index
    %c0_51 = arith.constant 0 : index
    %35 = vector.load %arg6[%c0_49, %c0_50, %c0_51] : memref<1x1x128xf32, #tpu.memory_space<vmem>>, vector<1x1x128xf32>
    %36 = vector.shape_cast %35 : vector<1x1x128xf32> to vector<128xf32>
    %37 = vector.shape_cast %34 : vector<128xf32> to vector<1x1x128xf32>
    tpu.vector_store %arg6[%c0_49, %c0_50, %c0_51], %37 {strides = array<i32>} : memref<1x1x128xf32, #tpu.memory_space<vmem>>, vector<1x1x128xf32>,
    %38 = arith.mulf %29, %29 : vector<256x128xf32>
    %cst_52 = arith.constant dense<0.000000e+00> : vector<128xf32>
    %39 = vector.multi_reduction <add>, %38, %cst_52 [0] : vector<256x128xf32> to vector<128xf32>
    %c0_53 = arith.constant 0 : index
    %c0_54 = arith.constant 0 : index
    %c0_55 = arith.constant 0 : index
    %40 = vector.load %arg7[%c0_53, %c0_54, %c0_55] : memref<1x1x128xf32, #tpu.memory_space<vmem>>, vector<1x1x128xf32>
    %41 = vector.shape_cast %40 : vector<1x1x128xf32> to vector<128xf32>
    %42 = vector.shape_cast %39 : vector<128xf32> to vector<1x1x128xf32>
    tpu.vector_store %arg7[%c0_53, %c0_54, %c0_55], %42 {strides = array<i32>} : memref<1x1x128xf32, #tpu.memory_space<vmem>>, vector<1x1x128xf32>,
    return
  }
  func.func @transform_0(%arg0: i32) -> (i32, i32, i32, i32) {
    %c0_i32 = arith.constant 0 : i32
    %c0_i32_0 = arith.constant 0 : i32
    %c0_i32_1 = arith.constant 0 : i32
    %c0_i32_2 = arith.constant 0 : i32
    return %arg0, %c0_i32, %c0_i32_0, %c0_i32_1 : i32, i32, i32, i32
  }
  func.func @transform_1(%arg0: i32) -> (i32, i32, i32) {
    %c0_i32 = arith.constant 0 : i32
    %c0_i32_0 = arith.constant 0 : i32
    %c0_i32_1 = arith.constant 0 : i32
    %c0_i32_2 = arith.constant 0 : i32
    return %c0_i32, %c0_i32_0, %c0_i32_1 : i32, i32, i32
  }
  func.func @transform_2(%arg0: i32) -> (i32, i32, i32) {
    %c0_i32 = arith.constant 0 : i32
    %c0_i32_0 = arith.constant 0 : i32
    %c0_i32_1 = arith.constant 0 : i32
    %c0_i32_2 = arith.constant 0 : i32
    return %c0_i32, %c0_i32_0, %c0_i32_1 : i32, i32, i32
  }
  func.func @transform_3(%arg0: i32) -> (i32, i32) {
    %c0_i32 = arith.constant 0 : i32
    %c0_i32_0 = arith.constant 0 : i32
    %c0_i32_1 = arith.constant 0 : i32
    return %c0_i32, %c0_i32_0 : i32, i32
  }
  func.func @transform_4(%arg0: i32) -> (i32, i32, i32, i32) {
    %c0_i32 = arith.constant 0 : i32
    %c0_i32_0 = arith.constant 0 : i32
    %c0_i32_1 = arith.constant 0 : i32
    %c0_i32_2 = arith.constant 0 : i32
    return %arg0, %c0_i32, %c0_i32_0, %c0_i32_1 : i32, i32, i32, i32
  }
  func.func @transform_5(%arg0: i32) -> (i32, i32, i32) {
    %c0_i32 = arith.constant 0 : i32
    %c0_i32_0 = arith.constant 0 : i32
    %c0_i32_1 = arith.constant 0 : i32
    return %arg0, %c0_i32, %c0_i32_0 : i32, i32, i32
  }
  func.func @transform_6(%arg0: i32) -> (i32, i32, i32) {
    %c0_i32 = arith.constant 0 : i32
    %c0_i32_0 = arith.constant 0 : i32
    %c0_i32_1 = arith.constant 0 : i32
    return %arg0, %c0_i32, %c0_i32_0 : i32, i32, i32
  }
}

</mosaic_0001>

<bundles_post_ra>
// kernel: double_conv.5
= control target key start
LH: loop header
LB: loop body
LE: loop exit
PB: predicated region body
PF: predicated region fallthrough
CT: control target
= control target key end

     0   :  { %s445_s12 = smov 0   ;;  %s604_s0 = inlined_call_operand.vmem [shape: f32[2,16,16,128], index: 0, kind: input, shape index: {}]   ;;  %s605_s1 = inlined_call_operand.vmem [shape: f32[1,1,128], index: 1, kind: input, shape index: {}]   ;;  %s606_s2 = inlined_call_operand.vmem [shape: f32[1,1,128], index: 2, kind: input, shape index: {}]   ;;  %s607_s3 = inlined_call_operand.vmem [shape: f32[2,16,16,128], index: 3, kind: output, shape index: {}]  }
   0x1 LB: > { %s394_s13 = sadd.s32 4294967295, %s423_s12   ;;  %p398_p0 = scmp.ge.s32.totalorder %s423_s12, 1  ;;  %s423_s12 = sphi %s445_s12, %s13_s12  }
   0x2   : > { %p137_p1 = scmp.lt.s32.totalorder %s423_s12, 3 }
   0x4   : > { %p138_p2 = pnand %p398_p0, %p137_p1 }
   0x5   : > { %p161_p3 = scmp.lt.s32.totalorder (!%p138_p2), %s394_s13, 1 }
   0x6   : > { %141 = sbr.rel (%p138_p2) target bundleno = 53 (0x35), region = 32 }
   0xb   : > { %s609_s13 = smov (!%p161_p3, %s394_s13), 1  ;;  %v456_v0 = vld [vmem:[%s605_s1] ss:$0 sm:$0xff] }
   0xc   : > { %s405_s16 = sshll.u32 %s609_s13, 8  ;;  %v466_v1 = vld [vmem:[%s606_s2] ss:$0 sm:$0xff] }
   0xd   : > { %s461_s19 = scalar_lea.vmem %s604_s0, %s405_s16  ;;  %s489_s24 = scalar_lea.vmem %s607_s3, %s405_s16 }
   0xe   : > { %v171_v2 = vld [vmem:[%s461_s19] sm:$0xff]  ;;  %v172_v3 = vld [vmem:[%s461_s19 + $0x8] sm:$0xff]  ;;  %v173_v4 = vld [vmem:[%s461_s19 + $0x10] sm:$0xff] }
   0xf   : > { %v207_v5 = vmul.f32 %v456_v0, %v171_v2  ;;  %v208_v6 = vmul.f32 %v456_v0, %v172_v3  ;;  %v209_v7 = vmul.f32 %v456_v0, %v173_v4  ;;  %v174_v8 = vld [vmem:[%s461_s19 + $0x18] sm:$0xff]  ;;  %v175_v9 = vld [vmem:[%s461_s19 + $0x20] sm:$0xff]  ;;  %v176_v10 = vld [vmem:[%s461_s19 + $0x28] sm:$0xff] }
  0x10   : > { %v210_v11 = vmul.f32 %v456_v0, %v174_v8  ;;  %v211_v12 = vmul.f32 %v456_v0, %v175_v9  ;;  %v212_v13 = vmul.f32 %v456_v0, %v176_v10  ;;  %v177_v14 = vld [vmem:[%s461_s19 + $0x30] sm:$0xff]  ;;  %v178_v15 = vld [vmem:[%s461_s19 + $0x38] sm:$0xff]  ;;  %v179_v24 = vld [vmem:[%s461_s19 + $0x40] sm:$0xff] }
  0x11   : > { %v243_v16 = vadd.f32 %v466_v1, %v207_v5  ;;  %v244_v17 = vadd.f32 %v466_v1, %v208_v6  ;;  %v245_v18 = vadd.f32 %v466_v1, %v209_v7  ;;  %v213_v19 = vmul.f32 %v456_v0, %v177_v14  ;;  %v180_v25 = vld [vmem:[%s461_s19 + $0x48] sm:$0xff]  ;;  %v181_v26 = vld [vmem:[%s461_s19 + $0x50] sm:$0xff]  ;;  %v182_v31 = vld [vmem:[%s461_s19 + $0x58] sm:$0xff] }
  0x12   : > { %v246_v20 = vadd.f32 %v466_v1, %v210_v11  ;;  %v247_v21 = vadd.f32 %v466_v1, %v211_v12  ;;  %v248_v22 = vadd.f32 %v466_v1, %v212_v13  ;;  %v214_v23 = vmul.f32 %v456_v0, %v178_v15  ;;  %v183_v32 = vld [vmem:[%s461_s19 + $0x60] sm:$0xff]  ;;  %v184_v33 = vld [vmem:[%s461_s19 + $0x68] sm:$0xff]  ;;  %v185_v37 = vld [vmem:[%s461_s19 + $0x70] sm:$0xff] }
  0x13   : > { %v275_v27 = vmax.f32 %v243_v16, 0.0  ;;  %v276_v28 = vmax.f32 %v244_v17, 0.0  ;;  %v277_v29 = vmax.f32 %v245_v18, 0.0  ;;  %v249_v30 = vadd.f32 %v466_v1, %v213_v19  ;;  %v186_v42 = vld [vmem:[%s461_s19 + $0x78] sm:$0xff]  ;;  %v187_v54 = vld [vmem:[%s461_s19 + $0x80] sm:$0xff]  ;;  %v188_v55 = vld [vmem:[%s461_s19 + $0x88] sm:$0xff] }
  0x14   : > { %v278_v34 = vmax.f32 %v246_v20, 0.0  ;;  %v279_v35 = vmax.f32 %v247_v21, 0.0  ;;  %v250_v36 = vadd.f32 %v466_v1, %v214_v23  ;;  %v280_v38 = vmax.f32 %v248_v22, 0.0  ;;  %v189_v56 = vld [vmem:[%s461_s19 + $0x90] sm:$0xff]  ;;  %v190_v59 = vld [vmem:[%s461_s19 + $0x98] sm:$0xff]  ;;  %v191_v63 = vld [vmem:[%s461_s19 + $0xa0] sm:$0xff] }
  0x15   : > { %307 = vst [vmem:[%s489_s24] sm:$0xff] %v275_v27  ;;  %v215_v39 = vmul.f32 %v456_v0, %v179_v24  ;;  %v216_v40 = vmul.f32 %v456_v0, %v180_v25  ;;  %v217_v41 = vmul.f32 %v456_v0, %v181_v26  ;;  %v281_v43 = vmax.f32 %v249_v30, 0.0  ;;  %v192_v6 = vld [vmem:[%s461_s19 + $0xa8] sm:$0xff]  ;;  %v193_v10 = vld [vmem:[%s461_s19 + $0xb0] sm:$0xff]  ;;  %v194_v14 = vld [vmem:[%s461_s19 + $0xb8] sm:$0xff] }
  0x16   : > { %308 = vst [vmem:[%s489_s24 + $0x8] sm:$0xff] %v276_v28  ;;  %v218_v44 = vmul.f32 %v456_v0, %v182_v31  ;;  %v219_v45 = vmul.f32 %v456_v0, %v183_v32  ;;  %v220_v46 = vmul.f32 %v456_v0, %v184_v33  ;;  %v221_v50 = vmul.f32 %v456_v0, %v185_v37  ;;  %v195_v18 = vld [vmem:[%s461_s19 + $0xc0] sm:$0xff]  ;;  %v196_v22 = vld [vmem:[%s461_s19 + $0xc8] sm:$0xff]  ;;  %v197_v26 = vld [vmem:[%s461_s19 + $0xd0] sm:$0xff] }
  0x17   : > { %309 = vst [vmem:[%s489_s24 + $0x10] sm:$0xff] %v277_v29  ;;  %v251_v47 = vadd.f32 %v466_v1, %v215_v39  ;;  %v252_v48 = vadd.f32 %v466_v1, %v216_v40  ;;  %v253_v49 = vadd.f32 %v466_v1, %v217_v41  ;;  %v282_v51 = vmax.f32 %v250_v36, 0.0  ;;  %v198_v30 = vld [vmem:[%s461_s19 + $0xd8] sm:$0xff] }
  0x18   : > { %310 = vst [vmem:[%s489_s24 + $0x18] sm:$0xff] %v278_v34  ;;  %v254_v52 = vadd.f32 %v466_v1, %v218_v44  ;;  %v222_v53 = vmul.f32 %v456_v0, %v186_v42  ;;  %v255_v58 = vadd.f32 %v466_v1, %v219_v45  ;;  %v256_v62 = vadd.f32 %v466_v1, %v220_v46  ;;  %v199_v34 = vld [vmem:[%s461_s19 + $0xe0] sm:$0xff]  ;;  %v201_v42 = vld [vmem:[%s461_s19 + $0xf0] sm:$0xff]  ;;  %v202_v46 = vld [vmem:[%s461_s19 + $0xf8] sm:$0xff] }
  0x19   : > { %311 = vst [vmem:[%s489_s24 + $0x20] sm:$0xff] %v279_v35  ;;  %v283_v57 = vmax.f32 %v251_v47, 0.0  ;;  %v284_v60 = vmax.f32 %v252_v48, 0.0  ;;  %v285_v61 = vmax.f32 %v253_v49, 0.0  ;;  %v257_v2 = vadd.f32 %v466_v1, %v221_v50 }
  0x1a   : > { %312 = vst [vmem:[%s489_s24 + $0x28] sm:$0xff] %v280_v38  ;;  %v223_v3 = vmul.f32 %v456_v0, %v187_v54  ;;  %v224_v4 = vmul.f32 %v456_v0, %v188_v55  ;;  %v225_v5 = vmul.f32 %v456_v0, %v189_v56  ;;  %v286_v7 = vmax.f32 %v254_v52, 0.0  ;;  %v200_v38 = vld [vmem:[%s461_s19 + $0xe8] sm:$0xff] }
  0x1b   : > { %313 = vst [vmem:[%s489_s24 + $0x30] sm:$0xff] %v281_v43  ;;  %v258_v8 = vadd.f32 %v466_v1, %v222_v53  ;;  %v226_v9 = vmul.f32 %v456_v0, %v190_v59  ;;  %v287_v11 = vmax.f32 %v255_v58, 0.0  ;;  %v227_v13 = vmul.f32 %v456_v0, %v191_v63 }
  0x1c   : > { %314 = vst [vmem:[%s489_s24 + $0x38] sm:$0xff] %v282_v51  ;;  %v259_v12 = vadd.f32 %v466_v1, %v223_v3  ;;  %v288_v15 = vmax.f32 %v256_v62, 0.0  ;;  %v260_v16 = vadd.f32 %v466_v1, %v224_v4  ;;  %v228_v17 = vmul.f32 %v456_v0, %v192_v6 }
  0x1d   : > { %315 = vst [vmem:[%s489_s24 + $0x40] sm:$0xff] %v283_v57  ;;  %v289_v19 = vmax.f32 %v257_v2, 0.0  ;;  %v261_v20 = vadd.f32 %v466_v1, %v225_v5  ;;  %v229_v21 = vmul.f32 %v456_v0, %v193_v10  ;;  %v290_v23 = vmax.f32 %v258_v8, 0.0 }
  0x1e   : > { %316 = vst [vmem:[%s489_s24 + $0x48] sm:$0xff] %v284_v60  ;;  %v262_v24 = vadd.f32 %v466_v1, %v226_v9  ;;  %v230_v25 = vmul.f32 %v456_v0, %v194_v14  ;;  %v291_v27 = vmax.f32 %v259_v12, 0.0  ;;  %v263_v28 = vadd.f32 %v466_v1, %v227_v13 }
  0x1f   : > { %317 = vst [vmem:[%s489_s24 + $0x50] sm:$0xff] %v285_v61  ;;  %v231_v29 = vmul.f32 %v456_v0, %v195_v18  ;;  %v292_v31 = vmax.f32 %v260_v16, 0.0  ;;  %v264_v32 = vadd.f32 %v466_v1, %v228_v17  ;;  %v232_v33 = vmul.f32 %v456_v0, %v196_v22 }
  0x20   : > { %318 = vst [vmem:[%s489_s24 + $0x58] sm:$0xff] %v286_v7  ;;  %v293_v35 = vmax.f32 %v261_v20, 0.0  ;;  %v265_v36 = vadd.f32 %v466_v1, %v229_v21  ;;  %v233_v37 = vmul.f32 %v456_v0, %v197_v26  ;;  %v294_v39 = vmax.f32 %v262_v24, 0.0 }
  0x21   : > { %319 = vst [vmem:[%s489_s24 + $0x60] sm:$0xff] %v287_v11  ;;  %v266_v40 = vadd.f32 %v466_v1, %v230_v25  ;;  %v234_v41 = vmul.f32 %v456_v0, %v198_v30  ;;  %v295_v43 = vmax.f32 %v263_v28, 0.0  ;;  %v267_v44 = vadd.f32 %v466_v1, %v231_v29 }
  0x22   : > { %320 = vst [vmem:[%s489_s24 + $0x68] sm:$0xff] %v288_v15  ;;  %v235_v45 = vmul.f32 %v456_v0, %v199_v34  ;;  %v296_v47 = vmax.f32 %v264_v32, 0.0  ;;  %v268_v48 = vadd.f32 %v466_v1, %v232_v33  ;;  %v236_v49 = vmul.f32 %v456_v0, %v200_v38 }
  0x23   : > { %321 = vst [vmem:[%s489_s24 + $0x70] sm:$0xff] %v289_v19  ;;  %v297_v50 = vmax.f32 %v265_v36, 0.0  ;;  %v269_v51 = vadd.f32 %v466_v1, %v233_v37  ;;  %v237_v52 = vmul.f32 %v456_v0, %v201_v42  ;;  %v298_v53 = vmax.f32 %v266_v40, 0.0 }
  0x24   : > { %322 = vst [vmem:[%s489_s24 + $0x78] sm:$0xff] %v290_v23  ;;  %v270_v54 = vadd.f32 %v466_v1, %v234_v41  ;;  %v238_v55 = vmul.f32 %v456_v0, %v202_v46  ;;  %v299_v56 = vmax.f32 %v267_v44, 0.0  ;;  %v271_v57 = vadd.f32 %v466_v1, %v235_v45 }
  0x25   : > { %323 = vst [vmem:[%s489_s24 + $0x80] sm:$0xff] %v291_v27  ;;  %v300_v58 = vmax.f32 %v268_v48, 0.0  ;;  %v272_v59 = vadd.f32 %v466_v1, %v236_v49  ;;  %v301_v60 = vmax.f32 %v269_v51, 0.0  ;;  %v273_v61 = vadd.f32 %v466_v1, %v237_v52 }
  0x26   : > { %324 = vst [vmem:[%s489_s24 + $0x88] sm:$0xff] %v292_v31  ;;  %v302_v0 = vmax.f32 %v270_v54, 0.0  ;;  %v274_v62 = vadd.f32 %v466_v1, %v238_v55  ;;  %v303_v63 = vmax.f32 %v271_v57, 0.0 }
  0x27   : > { %325 = vst [vmem:[%s489_s24 + $0x90] sm:$0xff] %v293_v35  ;;  %v304_v2 = vmax.f32 %v272_v59, 0.0  ;;  %v305_v3 = vmax.f32 %v273_v61, 0.0 }
  0x28   : > { %326 = vst [vmem:[%s489_s24 + $0x98] sm:$0xff] %v294_v39  ;;  %v306_v4 = vmax.f32 %v274_v62, 0.0 }
  0x29   : > { %327 = vst [vmem:[%s489_s24 + $0xa0] sm:$0xff] %v295_v43 }
  0x2a   : > { %328 = vst [vmem:[%s489_s24 + $0xa8] sm:$0xff] %v296_v47 }
  0x2b   : > { %329 = vst [vmem:[%s489_s24 + $0xb0] sm:$0xff] %v297_v50 }
  0x2c   : > { %330 = vst [vmem:[%s489_s24 + $0xb8] sm:$0xff] %v298_v53 }
  0x2d   : > { %331 = vst [vmem:[%s489_s24 + $0xc0] sm:$0xff] %v299_v56 }
  0x2e   : > { %332 = vst [vmem:[%s489_s24 + $0xc8] sm:$0xff] %v300_v58 }
  0x2f   : > { %333 = vst [vmem:[%s489_s24 + $0xd0] sm:$0xff] %v301_v60 }
  0x30   : > { %334 = vst [vmem:[%s489_s24 + $0xd8] sm:$0xff] %v302_v0 }
  0x31   : > { %335 = vst [vmem:[%s489_s24 + $0xe0] sm:$0xff] %v303_v63 }
  0x32   : > { %336 = vst [vmem:[%s489_s24 + $0xe8] sm:$0xff] %v304_v2 }
  0x33   : > { %337 = vst [vmem:[%s489_s24 + $0xf0] sm:$0xff] %v305_v3 }
  0x34   : > { %338 = vst [vmem:[%s489_s24 + $0xf8] sm:$0xff] %v306_v4 }
  0x35 PF: > { %s13_s12 = sadd.s32 1, %s423_s12  }
  0x36   : > { %p10_p4 = scmp.ge.s32.totalorder %s13_s12, 4  }
  0x38   :  { %12 = sbr.rel (!%p10_p4) target bundleno = 1 (0x1), region = 62 }

// kernel: double_conv.4
= control target key start
LH: loop header
LB: loop body
LE: loop exit
PB: predicated region body
PF: predicated region fallthrough
CT: control target
= control target key end

     0   :  { %s2307_s21 = smov 0   ;;  %s3354_s0 = inlined_call_operand.vmem [shape: f32[2,16,16,128], index: 0, kind: input, shape index: {}]   ;;  %s3355_s1 = inlined_call_operand.vmem [shape: f32[1,1,128], index: 1, kind: input, shape index: {}]   ;;  %s3356_s2 = inlined_call_operand.vmem [shape: f32[1,1,128], index: 2, kind: input, shape index: {}]   ;;  %s3357_s3 = inlined_call_operand.vmem [shape: f32[1152,128], index: 3, kind: input, shape index: {}]   ;;  %s3358_s4 = inlined_call_operand.vmem [shape: f32[2,16,16,128], index: 4, kind: output, shape index: {0}]   ;;  %s3359_s5 = inlined_call_operand.vmem [shape: f32[2,1,128], index: 5, kind: output, shape index: {1}]   ;;  %s3360_s6 = inlined_call_operand.vmem [shape: f32[2,1,128], index: 6, kind: output, shape index: {2}]  }
   0x1 LB: > { %s2187_s22 = sadd.s32 4294967295, %s2269_s21   ;;  %p2191_p0 = scmp.ge.s32.totalorder %s2269_s21, 1  ;;  %s2269_s21 = sphi %s2307_s21, %s17_s21  }
   0x2   : > { %p217_p1 = scmp.lt.s32.totalorder %s2269_s21, 3 }
   0x4   : > { %p218_p2 = pnand %p2191_p0, %p217_p1 }
   0x5   : > { %p253_p3 = scmp.lt.s32.totalorder (!%p218_p2), %s2187_s22, 1 }
   0x6   : > { %221 = sbr.rel (%p218_p2) target bundleno = 798 (0x31e), region = 36 }
   0xb   : > { %v796_v0 = vld [vmem:[%s3357_s3 + $0x78] sm:$0xff]  ;;  %v795_v1 = vld [vmem:[%s3357_s3 + $0x70] sm:$0xff]  ;;  %v2271_v2 = vmov 0.0   ;;  %v794_v3 = vld [vmem:[%s3357_s3 + $0x68] sm:$0xff]  ;;  %s3362_s22 = smov (!%p253_p3, %s2187_s22), 1 }
   0xc   : > { %2200 = vmatpush.msra.mxu1 %v796_v0  ;;  %2201 = vmatpush.msra.mxu2 %v796_v0  ;;  %417 = vst [vmem:[#allocation2 + $0x60] sm:$0xff] %v2271_v2  ;;  %v793_v4 = vld [vmem:[%s3357_s3 + $0x60] sm:$0xff]  ;;  %s2198_s7 = sshll.u32 %s3362_s22, 8  ;;  %v792_v5 = vld [vmem:[%s3357_s3 + $0x58] sm:$0xff]  ;;  %v791_v10 = vld [vmem:[%s3357_s3 + $0x50] sm:$0xff]  ;;  %s265_s24 = scalar_lea.vmem %s3359_s5, %s3362_s22 }
   0xd   : > { %2202 = vmatpush.msra.mxu3 %v796_v0  ;;  %925 = vmatpush.msra.mxu0 %v796_v0  ;;  %418 = vst [vmem:[#allocation2 + $0x68] sm:$0xff] %v2271_v2  ;;  %s2342_s12 = scalar_lea.vmem %s3354_s0, %s2198_s7  ;;  %v2347_v6 = vld [vmem:[%s3355_s1] ss:$0 sm:$0xff]  ;;  %v790_v12 = vld [vmem:[%s3357_s3 + $0x48] sm:$0xff]  ;;  %v788_v15 = vld [vmem:[%s3357_s3 + $0x38] sm:$0xff]  ;;  %s3278_s20 = scalar_lea.vmem %s3358_s4, %s2198_s7 }
   0xe   : > { %2203 = vmatpush.msra.mxu1 %v795_v1  ;;  %2204 = vmatpush.msra.mxu2 %v795_v1  ;;  %405 = vst [vmem:[#allocation2] sm:$0xff] %v2271_v2  ;;  %v275_v7 = vld [vmem:[%s2342_s12 + $0x30] sm:$0xff]  ;;  %v2354_v8 = vld [vmem:[%s3356_s2] ss:$0 sm:$0xff]  ;;  %v786_v17 = vld [vmem:[%s3357_s3 + $0x28] sm:$0xff]  ;;  %s268_s27 = scalar_lea.vmem %s3360_s6, %s3362_s22 }
   0xf   : > { %2205 = vmatpush.msra.mxu3 %v795_v1  ;;  %926 = vmatpush.msra.mxu0 %v795_v1  ;;  %406 = vst [vmem:[#allocation2 + $0x8] sm:$0xff] %v2271_v2  ;;  %v311_v9 = vmul.f32 %v2347_v6, %v275_v7  ;;  %v789_v14 = vld [vmem:[%s3357_s3 + $0x40] sm:$0xff]  ;;  %v787_v16 = vld [vmem:[%s3357_s3 + $0x30] sm:$0xff]  ;;  %v784_v19 = vld [vmem:[%s3357_s3 + $0x18] sm:$0xff] }
  0x10   : > { %2206 = vmatpush.msra.mxu1 %v794_v3  ;;  %2207 = vmatpush.msra.mxu2 %v794_v3  ;;  %408 = vst [vmem:[#allocation2 + $0x18] sm:$0xff] %v2271_v2  ;;  %v785_v18 = vld [vmem:[%s3357_s3 + $0x20] sm:$0xff]  ;;  %v783_v20 = vld [vmem:[%s3357_s3 + $0x10] sm:$0xff]  ;;  %v782_v21 = vld [vmem:[%s3357_s3 + $0x8] sm:$0xff] }
  0x11   : > { %2208 = vmatpush.msra.mxu3 %v794_v3  ;;  %927 = vmatpush.msra.mxu0 %v794_v3  ;;  %409 = vst [vmem:[#allocation2 + $0x20] sm:$0xff] %v2271_v2  ;;  %v2364_v11 = vadd.f32 %v2354_v8, %v311_v9  ;;  %v781_v22 = vld [vmem:[%s3357_s3] sm:$0xff]  ;;  %v828_v24 = vld [vmem:[%s3357_s3 + $0x178] sm:$0xff]  ;;  %v827_v27 = vld [vmem:[%s3357_s3 + $0x170] sm:$0xff] }
  0x12   : > { %2209 = vmatpush.msra.mxu1 %v793_v4  ;;  %2210 = vmatpush.msra.mxu2 %v793_v4  ;;  %407 = vst [vmem:[#allocation2 + $0x10] sm:$0x3] %v2271_v2  ;;  %v844_v25 = vld [vmem:[%s3357_s3 + $0x1f8] sm:$0xff]  ;;  %v843_v28 = vld [vmem:[%s3357_s3 + $0x1f0] sm:$0xff]  ;;  %v826_v32 = vld [vmem:[%s3357_s3 + $0x168] sm:$0xff] }
  0x13   : > { %2211 = vmatpush.msra.mxu3 %v793_v4  ;;  %928 = vmatpush.msra.mxu0 %v793_v4  ;;  %410 = vst [vmem:[#allocation2 + $0x28] sm:$0x3] %v2271_v2  ;;  %v379_v13 = vmax.f32 %v2364_v11, 0.0  ;;  %v812_v26 = vld [vmem:[%s3357_s3 + $0xf8] sm:$0xff]  ;;  %v283_v29 = vld [vmem:[%s2342_s12 + $0x70] sm:$0xff]  ;;  %v842_v33 = vld [vmem:[%s3357_s3 + $0x1e8] sm:$0xff] }
  0x14   : > { %2212 = vmatpush.msra.mxu1 %v792_v5  ;;  %2213 = vmatpush.msra.mxu2 %v792_v5  ;;  %411 = vst [vmem:[#allocation2 + $0x30] sm:$0xff] %v2271_v2  ;;  %v291_v30 = vld [vmem:[%s2342_s12 + $0xb0] sm:$0xff]  ;;  %v860_v34 = vld [vmem:[%s3357_s3 + $0x278] sm:$0xff]  ;;  %v810_v35 = vld [vmem:[%s3357_s3 + $0xe8] sm:$0xff]  ;;  %v319_v40 = vmul.f32 %v2347_v6, %v283_v29 }
  0x15   : > { %2214 = vmatpush.msra.mxu3 %v792_v5  ;;  %929 = vmatpush.msra.mxu0 %v792_v5  ;;  %412 = vst [vmem:[#allocation2 + $0x38] sm:$0xff] %v2271_v2  ;;  %v811_v31 = vld [vmem:[%s3357_s3 + $0xf0] sm:$0xff]  ;;  %v825_v36 = vld [vmem:[%s3357_s3 + $0x160] sm:$0xff]  ;;  %v276_v39 = vld [vmem:[%s2342_s12 + $0x38] sm:$0xff]  ;;  %v327_v42 = vmul.f32 %v2347_v6, %v291_v30 }
  0x16   : > { %2215 = vmatpush.msra.mxu1 %v791_v10  ;;  %2216 = vmatpush.msra.mxu2 %v791_v10  ;;  %413 = vst [vmem:[#allocation2 + $0x40] sm:$0x3] %v2271_v2  ;;  %v841_v37 = vld [vmem:[%s3357_s3 + $0x1e0] sm:$0xff]  ;;  %v859_v38 = vld [vmem:[%s3357_s3 + $0x270] sm:$0xff]  ;;  %v284_v41 = vld [vmem:[%s2342_s12 + $0x78] sm:$0xff]  ;;  %v312_v44 = vmul.f32 %v2347_v6, %v276_v39  ;;  %v355_v50 = vadd.f32 %v2354_v8, %v319_v40 }
  0x17   : > { %2217 = vmatpush.msra.mxu3 %v791_v10  ;;  %930 = vmatpush.msra.mxu0 %v791_v10  ;;  %414 = vst [vmem:[#allocation2 + $0x48] sm:$0xff] %v2271_v2  ;;  %v292_v43 = vld [vmem:[%s2342_s12 + $0xb8] sm:$0xff]  ;;  %v277_v45 = vld [vmem:[%s2342_s12 + $0x40] sm:$0xff]  ;;  %v320_v46 = vmul.f32 %v2347_v6, %v284_v41  ;;  %v278_v49 = vld [vmem:[%s2342_s12 + $0x48] sm:$0xff]  ;;  %v363_v55 = vadd.f32 %v2354_v8, %v327_v42 }
  0x18   : > { %2218 = vmatpush.msra.mxu1 %v790_v12  ;;  %2219 = vmatpush.msra.mxu2 %v790_v12  ;;  %466 = vst [vmem:[#allocation2 + $0x61] sm:$0xff] %v379_v13  ;;  %v285_v47 = vld [vmem:[%s2342_s12 + $0x80] sm:$0xff]  ;;  %v328_v51 = vmul.f32 %v2347_v6, %v292_v43  ;;  %v824_v53 = vld [vmem:[%s3357_s3 + $0x158] sm:$0xff]  ;;  %v286_v54 = vld [vmem:[%s2342_s12 + $0x88] sm:$0xff]  ;;  %v313_v56 = vmul.f32 %v2347_v6, %v277_v45  ;;  %v387_v5 = vmax.f32 %v355_v50, 0.0 }
  0x19   : > { %2220 = vmatpush.msra.mxu3 %v790_v12  ;;  %931 = vmatpush.msra.mxu0 %v790_v12  ;;  %415 = vst [vmem:[#allocation2 + $0x50] sm:$0xff] %v2271_v2  ;;  %v293_v48 = vld [vmem:[%s2342_s12 + $0xc0] sm:$0xff]  ;;  %v840_v57 = vld [vmem:[%s3357_s3 + $0x1d8] sm:$0xff]  ;;  %v858_v58 = vld [vmem:[%s3357_s3 + $0x268] sm:$0xff]  ;;  %v348_v60 = vadd.f32 %v2354_v8, %v312_v44  ;;  %v321_v61 = vmul.f32 %v2347_v6, %v285_v47  ;;  %v395_v12 = vmax.f32 %v363_v55, 0.0 }
  0x1a   : > { %2221 = vmatpush.msra.mxu1 %v789_v14  ;;  %2222 = vmatpush.msra.mxu2 %v789_v14  ;;  %416 = vst [vmem:[#allocation2 + $0x58] sm:$0x3] %v2271_v2  ;;  %v809_v52 = vld [vmem:[%s3357_s3 + $0xe0] sm:$0xff]  ;;  %v808_v59 = vld [vmem:[%s3357_s3 + $0xd8] sm:$0xff]  ;;  %v823_v62 = vld [vmem:[%s3357_s3 + $0x150] sm:$0xff]  ;;  %v356_v1 = vadd.f32 %v2354_v8, %v320_v46  ;;  %v329_v3 = vmul.f32 %v2347_v6, %v293_v48 }
  0x1b   : > { %2223 = vmatpush.msra.mxu3 %v789_v14  ;;  %932 = vmatpush.msra.mxu0 %v789_v14  ;;  %419 = vst [vmem:[#allocation2 + $0x70] sm:$0x3] %v2271_v2  ;;  %v839_v63 = vld [vmem:[%s3357_s3 + $0x1d0] sm:$0xff]  ;;  %v857_v0 = vld [vmem:[%s3357_s3 + $0x260] sm:$0xff]  ;;  %v364_v7 = vadd.f32 %v2354_v8, %v328_v51  ;;  %v314_v9 = vmul.f32 %v2347_v6, %v278_v49  ;;  %v294_v10 = vld [vmem:[%s2342_s12 + $0xc8] sm:$0xff] }
  0x1c   : > { %2224 = vmatpush.msra.mxu1 %v788_v15  ;;  %2225 = vmatpush.msra.mxu2 %v788_v15  ;;  %420 = vst [vmem:[#allocation2 + $0x78] sm:$0xff] %v2271_v2  ;;  %v269_v4 = vld [vmem:[%s2342_s12] sm:$0xff]  ;;  %v349_v14 = vadd.f32 %v2354_v8, %v313_v56  ;;  %v822_v29 = vld [vmem:[%s3357_s3 + $0x148] sm:$0xff]  ;;  %v295_v30 = vld [vmem:[%s2342_s12 + $0xd0] sm:$0xff] }
  0x1d   : > { %2226 = vmatpush.msra.mxu3 %v788_v15  ;;  %933 = vmatpush.msra.mxu0 %v788_v15  ;;  %421 = vst [vmem:[#allocation2 + $0x80] sm:$0xff] %v2271_v2  ;;  %v322_v15 = vmul.f32 %v2347_v6, %v286_v54  ;;  %v821_v39 = vld [vmem:[%s3357_s3 + $0x140] sm:$0xff]  ;;  %v855_v41 = vld [vmem:[%s3357_s3 + $0x250] sm:$0xff]  ;;  %v331_v45 = vmul.f32 %v2347_v6, %v295_v30  ;;  %v280_v46 = vld [vmem:[%s2342_s12 + $0x58] sm:$0xff] }
  0x1e   : > { %2227 = vmatpush.msra.mxu1 %v787_v16  ;;  %2228 = vmatpush.msra.mxu2 %v787_v16  ;;  %422 = vst [vmem:[#allocation2 + $0x88] sm:$0x3] %v2271_v2  ;;  %v837_v40 = vld [vmem:[%s3357_s3 + $0x1c0] sm:$0xff]  ;;  %v288_v47 = vld [vmem:[%s2342_s12 + $0x98] sm:$0xff]  ;;  %v271_v48 = vld [vmem:[%s2342_s12 + $0x10] sm:$0xff]  ;;  %v316_v51 = vmul.f32 %v2347_v6, %v280_v46 }
  0x1f   : > { %2229 = vmatpush.msra.mxu3 %v787_v16  ;;  %934 = vmatpush.msra.mxu0 %v787_v16  ;;  %423 = vst [vmem:[#allocation2 + $0x90] sm:$0xff] %v2271_v2  ;;  %v2418_v23 = vld [vmem:[#allocation2 + $0x60] sm:$0xff]  ;;  %v279_v16 = vld [vmem:[%s2342_s12 + $0x50] sm:$0xff]  ;;  %v324_v55 = vmul.f32 %v2347_v6, %v288_v47  ;;  %v272_v30 = vld [vmem:[%s2342_s12 + $0x18] sm:$0xff] }
  0x20   : > { %2230 = vmatpush.msra.mxu1 %v786_v17  ;;  %2231 = vmatpush.msra.mxu2 %v786_v17  ;;  %424 = vst [vmem:[#allocation2 + $0x98] sm:$0xff] %v2271_v2  ;;  %v834_v46 = vld [vmem:[%s3357_s3 + $0x1a8] sm:$0xff]  ;;  %v852_v47 = vld [vmem:[%s3357_s3 + $0x238] sm:$0xff] }
  0x21   : > { %2232 = vmatpush.msra.mxu3 %v786_v17  ;;  %935 = vmatpush.msra.mxu0 %v786_v17  ;;  %425 = vst [vmem:[#allocation2 + $0xa0] sm:$0x3] %v2271_v2  ;;  %v2541_v17 = vmax.f32 %v348_v60, 0.0 }
  0x22   : > { %2233 = vmatpush.msra.mxu1 %v785_v18  ;;  %2234 = vmatpush.msra.mxu2 %v785_v18  ;;  %426 = vst [vmem:[#allocation2 + $0xa8] sm:$0xff] %v2271_v2 }
  0x23   : > { %2235 = vmatpush.msra.mxu3 %v785_v18  ;;  %427 = vst [vmem:[#allocation2 + $0xb0] sm:$0xff] %v2271_v2  ;;  %936 = vmatpush.msra.mxu0 %v785_v18  ;;  %v357_v18 = vadd.f32 %v2354_v8, %v321_v61  ;;  %v367_v61 = vadd.f32 %v2354_v8, %v331_v45 }
  0x24   : > { %2236 = vmatpush.msra.mxu1 %v784_v19  ;;  %2237 = vmatpush.msra.mxu2 %v784_v19  ;;  %428 = vst [vmem:[#allocation2 + $0xb8] sm:$0x3] %v2271_v2 }
  0x25   : > { %2238 = vmatpush.msra.mxu3 %v784_v19  ;;  %429 = vst [vmem:[#allocation2 + $0xc0] sm:$0xff] %v2271_v2  ;;  %937 = vmatpush.msra.mxu0 %v784_v19  ;;  %v305_v19 = vmul.f32 %v2347_v6, %v269_v4  ;;  %v352_v4 = vadd.f32 %v2354_v8, %v316_v51  ;;  %v802_v51 = vld [vmem:[%s3357_s3 + $0xa8] sm:$0xff] }
  0x26   : > { %2239 = vmatpush.msra.mxu1 %v783_v20  ;;  %2240 = vmatpush.msra.mxu2 %v783_v20  ;;  %430 = vst [vmem:[#allocation2 + $0xc8] sm:$0xff] %v2271_v2 }
  0x27   : > { %2241 = vmatpush.msra.mxu3 %v783_v20  ;;  %431 = vst [vmem:[#allocation2 + $0xd0] sm:$0x3] %v2271_v2  ;;  %938 = vmatpush.msra.mxu0 %v783_v20  ;;  %v287_v20 = vld [vmem:[%s2342_s12 + $0x90] sm:$0xff] }
  0x28   : > { %2242 = vmatpush.msra.mxu1 %v782_v21  ;;  %2243 = vmatpush.msra.mxu2 %v782_v21  ;;  %432 = vst [vmem:[#allocation2 + $0xd8] sm:$0xff] %v2271_v2 }
  0x29   : > { %2244 = vmatpush.msra.mxu3 %v782_v21  ;;  %433 = vst [vmem:[#allocation2 + $0xe0] sm:$0xff] %v2271_v2  ;;  %939 = vmatpush.msra.mxu0 %v782_v21  ;;  %v388_v21 = vmax.f32 %v356_v1, 0.0  ;;  %v805_v1 = vld [vmem:[%s3357_s3 + $0xc0] sm:$0xff] }
  0x2a   : > { %2245 = vmatpush.msra.mxu1 %v781_v22  ;;  %2246 = vmatpush.msra.mxu2 %v781_v22  ;;  %434 = vst [vmem:[#allocation2 + $0xe8] sm:$0x3] %v2271_v2 }
  0x2b   : > { %965 = vmatmul.f32.vlgmr.msra.gmra.mxu1 %v2418_v23  ;;  %435 = vst [vmem:[#allocation2 + $0xf0] sm:$0xff] %v2271_v2  ;;  %2247 = vmatpush.msra.mxu3 %v781_v22 }
  0x2c   : > { %436 = vst [vmem:[#allocation2 + $0xf8] sm:$0xff] %v2271_v2  ;;  %1151 = vmatpush.msrb.mxu2 %v828_v24  ;;  %940 = vmatpush.msra.mxu0 %v781_v22  ;;  %v365_v22 = vadd.f32 %v2354_v8, %v329_v3  ;;  %v330_v24 = vmul.f32 %v2347_v6, %v294_v10  ;;  %v820_v3 = vld [vmem:[%s3357_s3 + $0x138] sm:$0xff]  ;;  %v854_v10 = vld [vmem:[%s3357_s3 + $0x248] sm:$0xff] }
  0x2d   : > { %437 = vst [vmem:[#allocation2 + $0x100] sm:$0x3] %v2271_v2  ;;  %1264 = vmatpush.msrb.mxu3 %v844_v25  ;;  %1038 = vmatpush.msrb.mxu1 %v812_v26  ;;  %v270_v25 = vld [vmem:[%s2342_s12 + $0x8] sm:$0xff]  ;;  %v396_v26 = vmax.f32 %v364_v7, 0.0 }
  0x2e   : > { %438 = vst [vmem:[#allocation2 + $0x108] sm:$0xff] %v2271_v2  ;;  %1152 = vmatpush.msrb.mxu2 %v827_v27  ;;  %941 = vmatmul.f32.vlgmr.msra.gmra.mxu0 %v2271_v2  ;;  %v350_v27 = vadd.f32 %v2354_v8, %v314_v9  ;;  %v306_v42 = vmul.f32 %v2347_v6, %v270_v25  ;;  %v397_v43 = vmax.f32 %v365_v22, 0.0  ;;  %v836_v9 = vld [vmem:[%s3357_s3 + $0x1b8] sm:$0xff]  ;;  %v281_v25 = vld [vmem:[%s2342_s12 + $0x60] sm:$0xff] }
  0x2f   : > { %439 = vst [vmem:[#allocation2 + $0x110] sm:$0xff] %v2271_v2  ;;  %1265 = vmatpush.msrb.mxu3 %v843_v28  ;;  %1039 = vmatpush.msrb.mxu1 %v811_v31  ;;  %v807_v28 = vld [vmem:[%s3357_s3 + $0xd0] sm:$0xff]  ;;  %v2559_v31 = vmax.f32 %v349_v14, 0.0  ;;  %v366_v44 = vadd.f32 %v2354_v8, %v330_v24  ;;  %v2646_v24 = vmax.f32 %v352_v4, 0.0 }
  0x30   : > { %440 = vst [vmem:[#allocation2 + $0x118] sm:$0x3] %v2271_v2  ;;  %1153 = vmatpush.msrb.mxu2 %v826_v32  ;;  %1377 = vmatpush.msrb.mxu0 %v860_v34  ;;  %v358_v32 = vadd.f32 %v2354_v8, %v322_v15  ;;  %v856_v34 = vld [vmem:[%s3357_s3 + $0x258] sm:$0xff]  ;;  %v2589_v49 = vmax.f32 %v350_v27, 0.0 }
  0x31   : > { %441 = vst [vmem:[#allocation2 + $0x120] sm:$0xff] %v2271_v2  ;;  %1266 = vmatpush.msrb.mxu3 %v842_v33  ;;  %1040 = vmatpush.msrb.mxu1 %v810_v35  ;;  %v838_v33 = vld [vmem:[%s3357_s3 + $0x1c8] sm:$0xff]  ;;  %v398_v60 = vmax.f32 %v366_v44, 0.0  ;;  %v804_v15 = vld [vmem:[%s3357_s3 + $0xb8] sm:$0xff] }
  0x32   : > { %442 = vst [vmem:[#allocation2 + $0x128] sm:$0xff] %v2271_v2  ;;  %1154 = vmatpush.msrb.mxu2 %v825_v36  ;;  %1378 = vmatpush.msrb.mxu0 %v859_v38  ;;  %v806_v35 = vld [vmem:[%s3357_s3 + $0xc8] sm:$0xff]  ;;  %v323_v36 = vmul.f32 %v2347_v6, %v287_v20  ;;  %v341_v38 = vadd.f32 %v2354_v8, %v305_v19  ;;  %v399_v19 = vmax.f32 %v367_v61, 0.0  ;;  %v835_v20 = vld [vmem:[%s3357_s3 + $0x1b0] sm:$0xff] }
  0x33   : > { %443 = vst [vmem:[#allocation2 + $0x130] sm:$0x3] %v2271_v2  ;;  %1267 = vmatpush.msrb.mxu3 %v841_v37  ;;  %1041 = vmatpush.msrb.mxu1 %v809_v52  ;;  %v389_v37 = vmax.f32 %v357_v18, 0.0  ;;  %v296_v52 = vld [vmem:[%s2342_s12 + $0xd8] sm:$0xff] }
  0x34   : > { %444 = vst [vmem:[#allocation2 + $0x138] sm:$0xff] %v2271_v2  ;;  %1155 = vmatpush.msrb.mxu2 %v824_v53  ;;  %1379 = vmatpush.msrb.mxu0 %v858_v58  ;;  %v2595_v53 = vmax.f32 %v358_v32, 0.0  ;;  %v359_v54 = vadd.f32 %v2354_v8, %v323_v36  ;;  %v2599_v56 = vmax.f32 %v341_v38, 0.0  ;;  %v307_v58 = vmul.f32 %v2347_v6, %v271_v48  ;;  %v297_v32 = vld [vmem:[%s2342_s12 + $0xe0] sm:$0xff] }
  0x35   : > { %445 = vst [vmem:[#allocation2 + $0x140] sm:$0xff] %v2271_v2  ;;  %1268 = vmatpush.msrb.mxu3 %v840_v57  ;;  %1042 = vmatpush.msrb.mxu1 %v808_v59  ;;  %v342_v57 = vadd.f32 %v2354_v8, %v306_v42  ;;  %v333_v36 = vmul.f32 %v2347_v6, %v297_v32  ;;  %v818_v42 = vld [vmem:[%s3357_s3 + $0x128] sm:$0xff] }
  0x36   : > { %446 = vst [vmem:[#allocation2 + $0x148] sm:$0x3] %v2271_v2  ;;  %944 = vmatmul.f32.gmra.mxu0 %v2271_v2  ;;  %1156 = vmatpush.msrb.mxu2 %v823_v62  ;;  %v332_v62 = vmul.f32 %v2347_v6, %v296_v52  ;;  %v2618_v7 = vmax.f32 %v359_v54, 0.0  ;;  %v343_v18 = vadd.f32 %v2354_v8, %v307_v58  ;;  %v817_v52 = vld [vmem:[%s3357_s3 + $0x120] sm:$0xff] }
  0x37   : > { %447 = vst [vmem:[#allocation2 + $0x150] sm:$0xff] %v2271_v2  ;;  %1269 = vmatpush.msrb.mxu3 %v839_v63  ;;  %1380 = vmatpush.msrb.mxu0 %v857_v0  ;;  %v2629_v14 = vmax.f32 %v342_v57, 0.0  ;;  %v369_v44 = vadd.f32 %v2354_v8, %v333_v36  ;;  %v851_v57 = vld [vmem:[%s3357_s3 + $0x230] sm:$0xff]  ;;  %v849_v36 = vld [vmem:[%s3357_s3 + $0x220] sm:$0xff] }
  0x38   : > { %448 = vst [vmem:[#allocation2 + $0x158] sm:$0xff] %v2271_v2  ;;  %1043 = vmatpush.msrb.mxu1 %v807_v28  ;;  %1157 = vmatpush.msrb.mxu2 %v822_v29  ;;  %v368_v22 = vadd.f32 %v2354_v8, %v332_v62  ;;  %v317_v29 = vmul.f32 %v2347_v6, %v281_v25  ;;  %v832_v25 = vld [vmem:[%s3357_s3 + $0x198] sm:$0xff] }
  0x39   : > { %449 = vst [vmem:[#allocation2 + $0x160] sm:$0x3] %v2271_v2  ;;  %1270 = vmatpush.msrb.mxu3 %v838_v33  ;;  %1381 = vmatpush.msrb.mxu0 %v856_v34  ;;  %v2658_v34 = vmax.f32 %v343_v18, 0.0  ;;  %v401_v58 = vmax.f32 %v369_v44, 0.0 }
  0x3a   : > { %450 = vst [vmem:[#allocation2 + $0x168] sm:$0xff] %v2271_v2  ;;  %1044 = vmatpush.msrb.mxu1 %v806_v35  ;;  %1158 = vmatpush.msrb.mxu2 %v821_v39  ;;  %v308_v35 = vmul.f32 %v2347_v6, %v272_v30  ;;  %v400_v38 = vmax.f32 %v368_v22, 0.0  ;;  %v353_v39 = vadd.f32 %v2354_v8, %v317_v29  ;;  %v815_v30 = vld [vmem:[%s3357_s3 + $0x110] sm:$0xff] }
  0x3b   : > { %451 = vst [vmem:[#allocation2 + $0x170] sm:$0xff] %v2271_v2  ;;  %1271 = vmatpush.msrb.mxu3 %v837_v40  ;;  %1382 = vmatpush.msrb.mxu0 %v855_v41  ;;  %v803_v41 = vld [vmem:[%s3357_s3 + $0xb0] sm:$0xff] }
  0x3c   : > { %452 = vst [vmem:[#allocation2 + $0x178] sm:$0x3] %v2271_v2  ;;  %1045 = vmatpush.msrb.mxu1 %v805_v1  ;;  %1159 = vmatpush.msrb.mxu2 %v820_v3  ;;  %v2684_v48 = vmax.f32 %v353_v39, 0.0  ;;  %v273_v1 = vld [vmem:[%s2342_s12 + $0x20] sm:$0xff]  ;;  %v298_v3 = vld [vmem:[%s2342_s12 + $0xe8] sm:$0xff] }
  0x3d   : > { %453 = vst [vmem:[#allocation2 + $0x180] sm:$0xff] %v2271_v2  ;;  %1272 = vmatpush.msrb.mxu3 %v836_v9  ;;  %1383 = vmatpush.msrb.mxu0 %v854_v10  ;;  %v309_v9 = vmul.f32 %v2347_v6, %v273_v1  ;;  %v334_v10 = vmul.f32 %v2347_v6, %v298_v3  ;;  %v892_v3 = vld [vmem:[%s3357_s3 + $0x378] sm:$0xff] }
  0x3e   : > { %454 = vst [vmem:[#allocation2 + $0x188] sm:$0xff] %v2271_v2  ;;  %1046 = vmatpush.msrb.mxu1 %v804_v15 }
  0x3f   : > { %455 = vst [vmem:[#allocation2 + $0x190] sm:$0x3] %v2271_v2  ;;  %1273 = vmatpush.msrb.mxu3 %v835_v20  ;;  %v816_v20 = vld [vmem:[%s3357_s3 + $0x118] sm:$0xff]  ;;  %v370_v22 = vadd.f32 %v2354_v8, %v334_v10 }
  0x40   : > { %456 = vst [vmem:[#allocation2 + $0x198] sm:$0xff] %v2271_v2  ;;  %1047 = vmatpush.msrb.mxu1 %v803_v41  ;;  %v876_v10 = vld [vmem:[%s3357_s3 + $0x2f8] sm:$0xff] }
  0x41   : > { %457 = vst [vmem:[#allocation2 + $0x1a0] sm:$0xff] %v2271_v2  ;;  %1274 = vmatpush.msrb.mxu3 %v834_v46  ;;  %v799_v46 = vld [vmem:[%s3357_s3 + $0x90] sm:$0xff] }
  0x42   : > { %458 = vst [vmem:[#allocation2 + $0x1a8] sm:$0x3] %v2271_v2  ;;  %v315_v2 = vmul.f32 %v2347_v6, %v279_v16  ;;  %v819_v16 = vld [vmem:[%s3357_s3 + $0x130] sm:$0xff]  ;;  %1048 = vmatpush.msrb.mxu1 %v802_v51  ;;  %v798_v51 = vld [vmem:[%s3357_s3 + $0x88] sm:$0xff] }
  0x43   : > { %474 = vst [vmem:[#allocation2 + $0xc1] sm:$0xff] %v387_v5  ;;  %1160 = vmatpush.msrb.mxu2 %v819_v16 }
  0x44   : > { %482 = vst [vmem:[#allocation2 + $0x121] sm:$0xff] %v395_v12  ;;  %v351_v50 = vadd.f32 %v2354_v8, %v315_v2  ;;  %v360_v12 = vadd.f32 %v2354_v8, %v324_v55  ;;  %v833_v55 = vld [vmem:[%s3357_s3 + $0x1a0] sm:$0xff] }
  0x45   : > { %467 = vst [vmem:[#allocation2 + $0x69] sm:$0xff] %v2541_v17  ;;  %1161 = vmatpush.msrb.mxu2 %v818_v42  ;;  %1275 = vmatpush.msrb.mxu3 %v833_v55  ;;  %v813_v55 = vld [vmem:[%s3357_s3 + $0x100] sm:$0xff] }
  0x46   : > { %475 = vst [vmem:[#allocation2 + $0xc9] sm:$0xff] %v388_v21  ;;  %v2606_v0 = vmax.f32 %v351_v50, 0.0  ;;  %v853_v21 = vld [vmem:[%s3357_s3 + $0x240] sm:$0xff]  ;;  %v2651_v28 = vmax.f32 %v360_v12, 0.0 }
  0x47   : > { %483 = vst [vmem:[#allocation2 + $0x129] sm:$0xff] %v396_v26  ;;  %v289_v26 = vld [vmem:[%s2342_s12 + $0xa0] sm:$0xff]  ;;  %1384 = vmatpush.msrb.mxu0 %v853_v21  ;;  %1162 = vmatpush.msrb.mxu2 %v817_v52  ;;  %v345_v21 = vadd.f32 %v2354_v8, %v309_v9  ;;  %v908_v9 = vld [vmem:[%s3357_s3 + $0x3f8] sm:$0xff] }
  0x48   : > { %468 = vst [vmem:[#allocation2 + $0x79] sm:$0xff] %v2559_v31  ;;  %v325_v2 = vmul.f32 %v2347_v6, %v289_v26  ;;  %v850_v26 = vld [vmem:[%s3357_s3 + $0x228] sm:$0xff]  ;;  %1276 = vmatpush.msrb.mxu3 %v832_v25 }
  0x49   : > { %476 = vst [vmem:[#allocation2 + $0xd9] sm:$0xff] %v389_v37  ;;  %1385 = vmatpush.msrb.mxu0 %v852_v47  ;;  %v2751_v32 = vmax.f32 %v345_v21, 0.0  ;;  %1163 = vmatpush.msrb.mxu2 %v816_v20  ;;  %v814_v47 = vld [vmem:[%s3357_s3 + $0x108] sm:$0xff] }
  0x4a   : > { %v508_v59 = vld [vmem:[#allocation2 + $0xc0] sm:$0xff]  ;;  %484 = vst [vmem:[#allocation2 + $0x139] sm:$0xff] %v397_v43  ;;  %v361_v40 = vadd.f32 %v2354_v8, %v325_v2  ;;  %v344_v43 = vadd.f32 %v2354_v8, %v308_v35  ;;  %v800_v2 = vld [vmem:[%s3357_s3 + $0x98] sm:$0xff]  ;;  %v831_v35 = vld [vmem:[%s3357_s3 + $0x190] sm:$0xff] }
  0x4b   : > { %989 = vmatmul.f32.vlgmr.msra.gmra.mxu2 %v508_v59  ;;  %v516_v63 = vld [vmem:[#allocation2 + $0x120] sm:$0xff]  ;;  %469 = vst [vmem:[#allocation2 + $0x81] sm:$0xff] %v2589_v49  ;;  %v282_v59 = vld [vmem:[%s2342_s12 + $0x68] sm:$0xff]  ;;  %1386 = vmatpush.msrb.mxu0 %v851_v57 }
  0x4c   : > { %1013 = vmatmul.f32.vlgmr.msra.gmra.mxu3 %v516_v63  ;;  %v2615_v5 = vld [vmem:[#allocation2 + $0x68] sm:$0xff]  ;;  %477 = vst [vmem:[#allocation2 + $0xe1] sm:$0xff] %v2595_v53  ;;  %v2686_v50 = vmax.f32 %v361_v40, 0.0  ;;  %v2697_v54 = vmax.f32 %v344_v43, 0.0  ;;  %v318_v62 = vmul.f32 %v2347_v6, %v282_v59  ;;  %1164 = vmatpush.msrb.mxu2 %v815_v30  ;;  %v829_v57 = vld [vmem:[%s3357_s3 + $0x180] sm:$0xff] }
  0x4d   : > { %968 = vmatmul.f32.gmra.mxu1 %v2615_v5  ;;  %460 = vst [vmem:[#allocation2 + $0x19] sm:$0xff] %v2599_v56  ;;  %v509_v27 = vld [vmem:[#allocation2 + $0xc8] sm:$0xff]  ;;  %1387 = vmatpush.msrb.mxu0 %v850_v26  ;;  %v797_v59 = vld [vmem:[%s3357_s3 + $0x80] sm:$0xff] }
  0x4e   : > { %485 = vst [vmem:[#allocation2 + $0x141] sm:$0xff] %v398_v60  ;;  %v517_v33 = vld [vmem:[#allocation2 + $0x128] sm:$0xff]  ;;  %v354_v16 = vadd.f32 %v2354_v8, %v318_v62  ;;  %1277 = vmatpush.msrb.mxu3 %v831_v35  ;;  %1165 = vmatpush.msrb.mxu2 %v814_v47  ;;  %v907_v35 = vld [vmem:[%s3357_s3 + $0x3f0] sm:$0xff] }
  0x4f   : > { %470 = vst [vmem:[#allocation2 + $0x91] sm:$0xff] %v2606_v0  ;;  %v2662_v37 = vld [vmem:[#allocation2 + $0x78] sm:$0xff]  ;;  %v290_v60 = vld [vmem:[%s2342_s12 + $0xa8] sm:$0xff]  ;;  %1388 = vmatpush.msrb.mxu0 %v849_v36  ;;  %v875_v36 = vld [vmem:[%s3357_s3 + $0x2f0] sm:$0xff] }
  0x50   : > { %478 = vst [vmem:[#allocation2 + $0xf1] sm:$0xff] %v2618_v7  ;;  %v2708_v61 = vld [vmem:[#allocation2 + $0xd8] sm:$0xff]  ;;  %v326_v63 = vmul.f32 %v2347_v6, %v290_v60  ;;  %1166 = vmatpush.msrb.mxu2 %v813_v55  ;;  %v525_v47 = vld [vmem:[#allocation2 + $0x9] sm:$0xff] }
  0x51   : > { %461 = vst [vmem:[#allocation2 + $0x21] sm:$0xff] %v2629_v14  ;;  %v518_v4 = vld [vmem:[#allocation2 + $0x138] sm:$0xff]  ;;  %v557_v55 = vld [vmem:[#allocation2 + $0xa] sm:$0xff] }
  0x52   : > { %486 = vst [vmem:[#allocation2 + $0x151] sm:$0xff] %v399_v19  ;;  %v2718_v12 = vld [vmem:[#allocation2 + $0x80] sm:$0xff]  ;;  %v362_v18 = vadd.f32 %v2354_v8, %v326_v63  ;;  %1603 = vmatpush.msra.mxu2 %v892_v3 }
  0x53   : > { %992 = vmatmul.f32.gmra.mxu2 %v509_v27  ;;  %471 = vst [vmem:[#allocation2 + $0x99] sm:$0xff] %v2646_v24  ;;  %v801_v19 = vld [vmem:[%s3357_s3 + $0xa0] sm:$0xff]  ;;  %v2739_v27 = vmax.f32 %v354_v16, 0.0 }
  0x54   : > { %1016 = vmatmul.f32.gmra.mxu3 %v517_v33  ;;  %v2675_v45 = vld [vmem:[#allocation2 + $0x18] sm:$0xff]  ;;  %479 = vst [vmem:[#allocation2 + $0xf9] sm:$0xff] %v2651_v28  ;;  %1049 = vmatpush.msrb.mxu1 %v801_v19  ;;  %v2741_v29 = vmax.f32 %v362_v18, 0.0  ;;  %v402_v33 = vmax.f32 %v370_v22, 0.0  ;;  %v2762_v39 = vld [vmem:[#allocation2 + $0xe0] sm:$0xff] }
  0x55   : > { %971 = vmatmul.f32.gmra.mxu1 %v2662_v37  ;;  %947 = vmatmul.f32.gmra.mxu0 %v2675_v45  ;;  %462 = vst [vmem:[#allocation2 + $0x31] sm:$0xff] %v2658_v34  ;;  %v519_v41 = vld [vmem:[#allocation2 + $0x140] sm:$0xff]  ;;  %v924_v22 = vld [vmem:[%s3357_s3 + $0x478] sm:$0xff] }
  0x56   : > { %487 = vst [vmem:[#allocation2 + $0x159] sm:$0xff] %v400_v38  ;;  %1050 = vmatpush.msrb.mxu1 %v800_v2  ;;  %v274_v38 = vld [vmem:[%s2342_s12 + $0x28] sm:$0xff]  ;;  %v2766_v42 = vld [vmem:[#allocation2 + $0x90] sm:$0xff]  ;;  %v845_v16 = vld [vmem:[%s3357_s3 + $0x200] sm:$0xff] }
  0x57   : > { %472 = vst [vmem:[#allocation2 + $0xa9] sm:$0xff] %v2684_v48  ;;  %v310_v40 = vmul.f32 %v2347_v6, %v274_v38  ;;  %v830_v6 = vld [vmem:[%s3357_s3 + $0x188] sm:$0xff]  ;;  %v2804_v60 = vld [vmem:[#allocation2 + $0xf0] sm:$0xff] }
  0x58   : > { %480 = vst [vmem:[#allocation2 + $0x109] sm:$0xff] %v2686_v50  ;;  %v2720_v15 = vld [vmem:[#allocation2 + $0x20] sm:$0xff]  ;;  %1051 = vmatpush.msrb.mxu1 %v799_v46  ;;  %1278 = vmatpush.msrb.mxu3 %v830_v6  ;;  %v890_v6 = vld [vmem:[%s3357_s3 + $0x368] sm:$0xff] }
  0x59   : > { %463 = vst [vmem:[#allocation2 + $0x39] sm:$0xff] %v2697_v54  ;;  %v346_v44 = vadd.f32 %v2354_v8, %v310_v40  ;;  %v848_v8 = vld [vmem:[%s3357_s3 + $0x218] sm:$0xff]  ;;  %v520_v62 = vld [vmem:[#allocation2 + $0x150] sm:$0xff]  ;;  %v556_v46 = vld [vmem:[#allocation2 + $0x2] sm:$0xff] }
  0x5a   : > { %488 = vst [vmem:[#allocation2 + $0x169] sm:$0xff] %v401_v58  ;;  %v847_v58 = vld [vmem:[%s3357_s3 + $0x210] sm:$0xff]  ;;  %1389 = vmatpush.msrb.mxu0 %v848_v8  ;;  %1052 = vmatpush.msrb.mxu1 %v798_v51  ;;  %v2806_v63 = vld [vmem:[#allocation2 + $0x98] sm:$0xff]  ;;  %v906_v8 = vld [vmem:[%s3357_s3 + $0x3e8] sm:$0xff] }
  0x5b   : > { %995 = vmatmul.f32.gmra.mxu2 %v2708_v61  ;;  %473 = vst [vmem:[#allocation2 + $0xb1] sm:$0xff] %v2739_v27  ;;  %v2787_v52 = vmax.f32 %v346_v44, 0.0  ;;  %1279 = vmatpush.msrb.mxu3 %v829_v57  ;;  %v2828_v18 = vld [vmem:[#allocation2 + $0xf8] sm:$0xff]  ;;  %v923_v44 = vld [vmem:[%s3357_s3 + $0x470] sm:$0xff]  ;;  %v874_v51 = vld [vmem:[%s3357_s3 + $0x2e8] sm:$0xff] }
  0x5c   : > { %1019 = vmatmul.f32.gmra.mxu3 %v518_v4  ;;  %481 = vst [vmem:[#allocation2 + $0x111] sm:$0xff] %v2741_v29  ;;  %v2768_v43 = vld [vmem:[#allocation2 + $0x30] sm:$0xff]  ;;  %1390 = vmatpush.msrb.mxu0 %v847_v58  ;;  %v846_v4 = vld [vmem:[%s3357_s3 + $0x208] sm:$0xff]  ;;  %v558_v57 = vld [vmem:[#allocation2 + $0x1a] sm:$0xff] }
  0x5d   : > { %974 = vmatmul.f32.gmra.mxu1 %v2718_v12  ;;  %950 = vmatmul.f32.gmra.mxu0 %v2720_v15  ;;  %464 = vst [vmem:[#allocation2 + $0x49] sm:$0xff] %v2751_v32  ;;  %v521_v19 = vld [vmem:[#allocation2 + $0x158] sm:$0xff]  ;;  %v889_v58 = vld [vmem:[%s3357_s3 + $0x360] sm:$0xff] }
  0x5e   : > { %489 = vst [vmem:[#allocation2 + $0x171] sm:$0xff] %v402_v33  ;;  %1053 = vmatpush.msrb.mxu1 %v797_v59  ;;  %1391 = vmatpush.msrb.mxu0 %v846_v4  ;;  %v2830_v20 = vld [vmem:[#allocation2 + $0xa8] sm:$0xff]  ;;  %v891_v33 = vld [vmem:[%s3357_s3 + $0x370] sm:$0xff]  ;;  %v920_v4 = vld [vmem:[%s3357_s3 + $0x458] sm:$0xff] }
  0x5f   : > { %465 = vst [vmem:[#allocation2 + $0x51] sm:$0xff] %v2787_v52  ;;  %1716 = vmatpush.msra.mxu3 %v908_v9  ;;  %v2840_v25 = vld [vmem:[#allocation2 + $0x108] sm:$0xff]  ;;  %1604 = vmatpush.msra.mxu2 %v891_v33  ;;  %v887_v9 = vld [vmem:[%s3357_s3 + $0x350] sm:$0xff] }
  0x60   : > { %v2808_v1 = vld [vmem:[#allocation2 + $0x38] sm:$0xff]  ;;  %1490 = vmatpush.msra.mxu1 %v876_v10  ;;  %1392 = vmatpush.msrb.mxu0 %v845_v16  ;;  %v559_v59 = vld [vmem:[#allocation2 + $0x22] sm:$0xff]  ;;  %v903_v10 = vld [vmem:[%s3357_s3 + $0x3d0] sm:$0xff] }
  0x61   : > { %v522_v26 = vld [vmem:[#allocation2 + $0x168] sm:$0xff]  ;;  %1717 = vmatpush.msra.mxu3 %v907_v35  ;;  %1605 = vmatpush.msra.mxu2 %v890_v6  ;;  %v561_v3 = vld [vmem:[#allocation2 + $0x3a] sm:$0xff] }
  0x62   : > { %1829 = vmatpush.msra.mxu0 %v924_v22  ;;  %v2842_v2 = vld [vmem:[#allocation2 + $0xb0] sm:$0xff]  ;;  %1491 = vmatpush.msra.mxu1 %v875_v36  ;;  %v870_v33 = vld [vmem:[%s3357_s3 + $0x2c8] sm:$0xff] }
  0x63   : > { %998 = vmatmul.f32.gmra.mxu2 %v2762_v39  ;;  %v2858_v38 = vld [vmem:[#allocation2 + $0x110] sm:$0xff]  ;;  %1718 = vmatpush.msra.mxu3 %v906_v8 }
  0x64   : > { %1022 = vmatmul.f32.gmra.mxu3 %v519_v41  ;;  %v2832_v21 = vld [vmem:[#allocation2 + $0x48] sm:$0xff]  ;;  %1830 = vmatpush.msra.mxu0 %v923_v44 }
  0x65   : > { %977 = vmatmul.f32.gmra.mxu1 %v2766_v42  ;;  %953 = vmatmul.f32.gmra.mxu0 %v2768_v43  ;;  %v523_v40 = vld [vmem:[#allocation2 + $0x170] sm:$0xff]  ;;  %v524_v41 = vld [vmem:[#allocation2 + $0x1] sm:$0xff] }
  0x66   : > { %v2844_v30 = vld [vmem:[#allocation2 + $0x50] sm:$0xff]  ;;  %1492 = vmatpush.msra.mxu1 %v874_v51  ;;  %1606 = vmatpush.msra.mxu2 %v889_v58  ;;  %v869_v51 = vld [vmem:[%s3357_s3 + $0x2c0] sm:$0xff] }
  0x6b   : > { %1001 = vmatmul.f32.gmra.mxu2 %v2804_v60 }
  0x6c   : > { %1025 = vmatmul.f32.gmra.mxu3 %v520_v62  ;;  %v560_v62 = vld [vmem:[#allocation2 + $0x32] sm:$0xff] }
  0x6d   : > { %980 = vmatmul.f32.gmra.mxu1 %v2806_v63  ;;  %956 = vmatmul.f32.gmra.mxu0 %v2808_v1 }
  0x73   : > { %1004 = vmatmul.f32.gmra.mxu2 %v2828_v18 }
  0x74   : > { %1028 = vmatmul.f32.gmra.mxu3 %v521_v19  ;;  %v564_v19 = vld [vmem:[#allocation2 + $0x62] sm:$0xff] }
  0x75   : > { %983 = vmatmul.f32.gmra.mxu1 %v2830_v20  ;;  %959 = vmatmul.f32.gmra.mxu0 %v2832_v21 }
  0x7b   : > { %1007 = vmatmul.f32.gmra.mxu2 %v2840_v25 }
  0x7c   : > { %1031 = vmatmul.f32.gmra.mxu3 %v522_v26  ;;  %v886_v26 = vld [vmem:[%s3357_s3 + $0x348] sm:$0xff] }
  0x7d   : > { %986 = vmatmul.f32.gmra.mxu1 %v2842_v2  ;;  %962 = vmatmul.f32.gmra.mxu0 %v2844_v30 }
  0x83   : > { %1010 = vmatmul.f32.gmra.mxu2 %v2858_v38 }
  0x84   : > { %1034 = vmatmul.f32.gmra.mxu3 %v523_v40 }
  0x85   : > { %1054 = vmatmul.f32.vlgmr.msrb.gmra.mxu1 %v524_v41  ;;  %1393 = vmatmul.f32.vlgmr.msrb.gmra.mxu0 %v2599_v56 }
  0x8b   : > { %1167 = vmatmul.f32.vlgmr.msrb.gmra.mxu2 %v556_v46  ;;  %v566_v46 = vld [vmem:[#allocation2 + $0x7a] sm:$0xff] }
  0x8c   : > { %1280 = vmatmul.f32.vlgmr.msrb.gmra.mxu3 %v2675_v45  ;;  %v922_v45 = vld [vmem:[%s3357_s3 + $0x468] sm:$0xff] }
  0x8d   : > { %1057 = vmatmul.f32.gmra.mxu1 %v525_v47  ;;  %1396 = vmatmul.f32.gmra.mxu0 %v2629_v14 }
  0x8e   : > { %1831 = vmatpush.msra.mxu0 %v922_v45 }
  0x93   : > { %1170 = vmatmul.f32.gmra.mxu2 %v557_v55 }
  0x94   : > { %1283 = vmatmul.f32.gmra.mxu3 %v2720_v15  ;;  %v905_v15 = vld [vmem:[%s3357_s3 + $0x3e0] sm:$0xff] }
  0x95   : > { %1060 = vmatmul.f32.gmra.mxu1 %v2599_v56  ;;  %1399 = vmatmul.f32.gmra.mxu0 %v2658_v34  ;;  %v873_v56 = vld [vmem:[%s3357_s3 + $0x2e0] sm:$0xff] }
  0x96   : > { %1719 = vmatpush.msra.mxu3 %v905_v15  ;;  %1493 = vmatpush.msra.mxu1 %v873_v56  ;;  %v568_v56 = vld [vmem:[#allocation2 + $0x92] sm:$0xff] }
  0x9b   : > { %1173 = vmatmul.f32.gmra.mxu2 %v558_v57 }
  0x9c   : > { %1286 = vmatmul.f32.gmra.mxu3 %v2768_v43  ;;  %v921_v43 = vld [vmem:[%s3357_s3 + $0x460] sm:$0xff] }
  0x9d   : > { %1063 = vmatmul.f32.gmra.mxu1 %v2629_v14  ;;  %1402 = vmatmul.f32.gmra.mxu0 %v2697_v54  ;;  %v888_v14 = vld [vmem:[%s3357_s3 + $0x358] sm:$0xff] }
  0x9e   : > { %1832 = vmatpush.msra.mxu0 %v921_v43  ;;  %1607 = vmatpush.msra.mxu2 %v888_v14 }
  0xa0   : > { %1833 = vmatpush.msra.mxu0 %v920_v4  ;;  %1608 = vmatpush.msra.mxu2 %v887_v9  ;;  %v634_v4 = vld [vmem:[#allocation2 + $0xc1] sm:$0xff] }
  0xa2   : > { %1609 = vmatpush.msra.mxu2 %v886_v26 }
  0xa3   : > { %1176 = vmatmul.f32.gmra.mxu2 %v559_v59 }
  0xa4   : > { %1289 = vmatmul.f32.gmra.mxu3 %v2808_v1  ;;  %v904_v1 = vld [vmem:[%s3357_s3 + $0x3d8] sm:$0xff] }
  0xa5   : > { %1066 = vmatmul.f32.gmra.mxu1 %v2658_v34  ;;  %1405 = vmatmul.f32.gmra.mxu0 %v2751_v32  ;;  %v872_v34 = vld [vmem:[%s3357_s3 + $0x2d8] sm:$0xff] }
  0xa6   : > { %1720 = vmatpush.msra.mxu3 %v904_v1  ;;  %1494 = vmatpush.msra.mxu1 %v872_v34  ;;  %v868_v1 = vld [vmem:[%s3357_s3 + $0x2b8] sm:$0xff] }
  0xa7   : > { %v569_v34 = vld [vmem:[#allocation2 + $0x9a] sm:$0xff] }
  0xa8   : > { %1721 = vmatpush.msra.mxu3 %v903_v10  ;;  %v2933_v16 = vpop.f32.mrf.mxu1  ;;  %v570_v10 = vld [vmem:[#allocation2 + $0xaa] sm:$0xff] }
  0xab   : > { %1179 = vmatmul.f32.gmra.mxu2 %v560_v62  ;;  %v2928_v11 = vpop.f32.mrf.mxu0 }
  0xac   : > { %1292 = vmatmul.f32.gmra.mxu3 %v2832_v21 }
  0xad   : > { %1069 = vmatmul.f32.gmra.mxu1 %v2697_v54  ;;  %1408 = vmatmul.f32.gmra.mxu0 %v2787_v52  ;;  %v562_v54 = vld [vmem:[#allocation2 + $0x4a] sm:$0xff] }
  0xb3   : > { %1182 = vmatmul.f32.gmra.mxu2 %v561_v3  ;;  %v2940_v21 = vpop.f32.mrf.mxu0 }
  0xb4   : > { %1295 = vmatmul.f32.gmra.mxu3 %v2844_v30 }
  0xb5   : > { %1072 = vmatmul.f32.gmra.mxu1 %v2751_v32  ;;  %1411 = vmatmul.f32.gmra.mxu0 %v379_v13  ;;  %v871_v13 = vld [vmem:[%s3357_s3 + $0x2d0] sm:$0xff] }
  0xb6   : > { %1495 = vmatpush.msra.mxu1 %v871_v13  ;;  %v563_v32 = vld [vmem:[#allocation2 + $0x52] sm:$0xff]  ;;  %v602_v13 = vld [vmem:[#allocation2 + $0xc0] sm:$0xff] }
  0xb8   : > { %1496 = vmatpush.msra.mxu1 %v870_v33  ;;  %v571_v33 = vld [vmem:[#allocation2 + $0xb2] sm:$0xff] }
  0xba   : > { %1497 = vmatpush.msra.mxu1 %v869_v51 }
  0xbb   : > { %1185 = vmatmul.f32.gmra.mxu2 %v562_v54 }
  0xbc   : > { %1298 = vmatmul.f32.gmra.mxu3 %v2418_v23  ;;  %v919_v23 = vld [vmem:[%s3357_s3 + $0x450] sm:$0xff]  ;;  %1498 = vmatpush.msra.mxu1 %v868_v1 }
  0xbd   : > { %1075 = vmatmul.f32.gmra.mxu1 %v2787_v52  ;;  %1414 = vmatmul.f32.gmra.mxu0 %v2541_v17  ;;  %v2259_v52 = vld [vmem:[#allocation2 + $0x61] sm:$0xff] }
  0xbe   : > { %1834 = vmatpush.msra.mxu0 %v919_v23 }
  0xc3   : > { %1188 = vmatmul.f32.gmra.mxu2 %v563_v32 }
  0xc4   : > { %1301 = vmatmul.f32.gmra.mxu3 %v2615_v5  ;;  %v902_v5 = vld [vmem:[%s3357_s3 + $0x3c8] sm:$0xff] }
  0xc5   : > { %1078 = vmatmul.f32.gmra.mxu1 %v2259_v52  ;;  %1417 = vmatmul.f32.gmra.mxu0 %v2559_v31  ;;  %v635_v52 = vld [vmem:[#allocation2 + $0xc9] sm:$0xff] }
  0xc6   : > { %1722 = vmatpush.msra.mxu3 %v902_v5  ;;  %v867_v5 = vld [vmem:[%s3357_s3 + $0x2b0] sm:$0xff] }
  0xc7   : > { %1499 = vmatpush.msra.mxu1 %v867_v5 }
  0xca   : > { %v2942_v22 = vpop.f32.mrf.mxu1 }
  0xcb   : > { %1191 = vmatmul.f32.gmra.mxu2 %v564_v19 }
  0xcc   : > { %1304 = vmatmul.f32.gmra.mxu3 %v2662_v37  ;;  %v565_v37 = vld [vmem:[#allocation2 + $0x6a] sm:$0xff] }
  0xcd   : > { %1081 = vmatmul.f32.gmra.mxu1 %v2541_v17  ;;  %1420 = vmatmul.f32.gmra.mxu0 %v2589_v49  ;;  %v918_v17 = vld [vmem:[%s3357_s3 + $0x448] sm:$0xff] }
  0xce   : > { %v2953_v30 = vpop.f32.mrf.mxu2  ;;  %1835 = vmatpush.msra.mxu0 %v918_v17 }
  0xcf   : > { %v2958_v35 = vpop.f32.mrf.mxu3 }
  0xd2   : > { %v2960_v36 = vpop.f32.mrf.mxu1  ;;  %v2962_v40 = vpop.f32.mrf.mxu0 }
  0xd3   : > { %1194 = vmatmul.f32.gmra.mxu2 %v565_v37  ;;  %v603_v37 = vld [vmem:[#allocation2 + $0xc8] sm:$0xff] }
  0xd4   : > { %1307 = vmatmul.f32.gmra.mxu3 %v2718_v12  ;;  %v885_v12 = vld [vmem:[%s3357_s3 + $0x340] sm:$0xff] }
  0xd5   : > { %1084 = vmatmul.f32.gmra.mxu1 %v2559_v31  ;;  %1423 = vmatmul.f32.gmra.mxu0 %v2606_v0  ;;  %v901_v31 = vld [vmem:[%s3357_s3 + $0x3c0] sm:$0xff] }
  0xd6   : > { %v2970_v41 = vpop.f32.mrf.mxu2  ;;  %1610 = vmatpush.msra.mxu2 %v885_v12  ;;  %1723 = vmatpush.msra.mxu3 %v901_v31  ;;  %v636_v12 = vld [vmem:[#allocation2 + $0xd9] sm:$0xff] }
  0xd7   : > { %v2972_v44 = vpop.f32.mrf.mxu3 }
  0xda   : > { %v2974_v47 = vpop.f32.mrf.mxu1  ;;  %v2976_v6 = vpop.f32.mrf.mxu0 }
  0xdb   : > { %1197 = vmatmul.f32.gmra.mxu2 %v566_v46 }
  0xdc   : > { %1310 = vmatmul.f32.gmra.mxu3 %v2766_v42  ;;  %v567_v42 = vld [vmem:[#allocation2 + $0x82] sm:$0xff] }
  0xdd   : > { %1087 = vmatmul.f32.gmra.mxu1 %v2589_v49  ;;  %1426 = vmatmul.f32.gmra.mxu0 %v2646_v24  ;;  %v917_v49 = vld [vmem:[%s3357_s3 + $0x440] sm:$0xff] }
  0xde   : > { %v2987_v8 = vpop.f32.mrf.mxu2  ;;  %1836 = vmatpush.msra.mxu0 %v917_v49 }
  0xdf   : > { %v2992_v55 = vpop.f32.mrf.mxu3 }
  0xe2   : > { %v2994_v45 = vpop.f32.mrf.mxu1  ;;  %v2996_v57 = vpop.f32.mrf.mxu0 }
  0xe3   : > { %1200 = vmatmul.f32.gmra.mxu2 %v567_v42  ;;  %v572_v42 = vld [vmem:[#allocation2 + $0xc2] sm:$0xff] }
  0xe4   : > { %1313 = vmatmul.f32.gmra.mxu3 %v2806_v63  ;;  %v884_v63 = vld [vmem:[%s3357_s3 + $0x338] sm:$0xff] }
  0xe5   : > { %1090 = vmatmul.f32.gmra.mxu1 %v2606_v0  ;;  %1429 = vmatmul.f32.gmra.mxu0 %v2684_v48  ;;  %v900_v0 = vld [vmem:[%s3357_s3 + $0x3b8] sm:$0xff] }
  0xe6   : > { %v3004_v58 = vpop.f32.mrf.mxu2  ;;  %1611 = vmatpush.msra.mxu2 %v884_v63  ;;  %1724 = vmatpush.msra.mxu3 %v900_v0  ;;  %v882_v63 = vld [vmem:[%s3357_s3 + $0x328] sm:$0xff] }
  0xe7   : > { %v3006_v15 = vpop.f32.mrf.mxu3  ;;  %v898_v0 = vld [vmem:[%s3357_s3 + $0x3a8] sm:$0xff] }
  0xea   : > { %v3008_v59 = vpop.f32.mrf.mxu1  ;;  %v3010_v43 = vpop.f32.mrf.mxu0 }
  0xeb   : > { %1203 = vmatmul.f32.gmra.mxu2 %v568_v56 }
  0xec   : > { %1316 = vmatmul.f32.gmra.mxu3 %v2830_v20 }
  0xed   : > { %1093 = vmatmul.f32.gmra.mxu1 %v2646_v24  ;;  %1432 = vmatmul.f32.gmra.mxu0 %v2739_v27  ;;  %v916_v24 = vld [vmem:[%s3357_s3 + $0x438] sm:$0xff] }
  0xee   : > { %v3021_v62 = vpop.f32.mrf.mxu2  ;;  %1837 = vmatpush.msra.mxu0 %v916_v24 }
  0xef   : > { %v3023_v14 = vpop.f32.mrf.mxu3 }
  0xf2   : > { %v3028_v20 = vpop.f32.mrf.mxu1  ;;  %v3030_v3 = vpop.f32.mrf.mxu0 }
  0xf3   : > { %1206 = vmatmul.f32.gmra.mxu2 %v569_v34 }
  0xf4   : > { %1319 = vmatmul.f32.gmra.mxu3 %v2842_v2  ;;  %v883_v2 = vld [vmem:[%s3357_s3 + $0x330] sm:$0xff] }
  0xf5   : > { %1096 = vmatmul.f32.gmra.mxu1 %v2684_v48  ;;  %1435 = vmatmul.f32.gmra.mxu0 %v634_v4  ;;  %v899_v48 = vld [vmem:[%s3357_s3 + $0x3b0] sm:$0xff] }
  0xf6   : > { %v3037_v54 = vpop.f32.mrf.mxu2  ;;  %1612 = vmatpush.msra.mxu2 %v883_v2  ;;  %1725 = vmatpush.msra.mxu3 %v899_v48 }
  0xf7   : > { %v3039_v9 = vpop.f32.mrf.mxu3 }
  0xf8   : > { %1613 = vmatpush.msra.mxu2 %v882_v63  ;;  %1726 = vmatpush.msra.mxu3 %v898_v0 }
  0xfa   : > { %v3041_v32 = vpop.f32.mrf.mxu1  ;;  %v3043_v23 = vpop.f32.mrf.mxu0 }
  0xfb   : > { %1209 = vmatmul.f32.gmra.mxu2 %v570_v10  ;;  %v866_v10 = vld [vmem:[%s3357_s3 + $0x2a8] sm:$0xff] }
  0xfc   : > { %1322 = vmatmul.f32.gmra.mxu3 %v602_v13  ;;  %v573_v13 = vld [vmem:[#allocation2 + $0xca] sm:$0xff]  ;;  %1500 = vmatpush.msra.mxu1 %v866_v10 }
  0xfd   : > { %1099 = vmatmul.f32.gmra.mxu1 %v2739_v27  ;;  %1438 = vmatmul.f32.gmra.mxu0 %v635_v52  ;;  %v915_v27 = vld [vmem:[%s3357_s3 + $0x430] sm:$0xff] }
  0xfe   : > { %v3052_v19 = vpop.f32.mrf.mxu2  ;;  %1838 = vmatpush.msra.mxu0 %v915_v27  ;;  %v574_v27 = vld [vmem:[#allocation2 + $0xda] sm:$0xff] }
  0xff   : > { %v3054_v26 = vpop.f32.mrf.mxu3 }
 0x102   : > { %v1055_v17 = vpop.f32.mrf.mxu1  ;;  %v1394_v46 = vpop.f32.mrf.mxu0 }
 0x103   : > { %1212 = vmatmul.f32.gmra.mxu2 %v571_v33  ;;  %v1056_v1 = vadd.f32 %v1055_v17, %v2928_v11  ;;  %v914_v11 = vld [vmem:[%s3357_s3 + $0x428] sm:$0xff] }
 0x104   : > { %1325 = vmatmul.f32.gmra.mxu3 %v603_v37  ;;  %1839 = vmatpush.msra.mxu0 %v914_v11 }
 0x105   : > { %1102 = vmatmul.f32.gmra.mxu1 %v634_v4  ;;  %1441 = vmatmul.f32.gmra.mxu0 %v636_v12 }
 0x106   : > { %v3062_v31 = vpop.f32.mrf.mxu2 }
 0x107   : > { %v3064_v51 = vpop.f32.mrf.mxu3 }
 0x10a   : > { %v1058_v49 = vpop.f32.mrf.mxu1  ;;  %v1397_v56 = vpop.f32.mrf.mxu0 }
 0x10b   : > { %1215 = vmatmul.f32.gmra.mxu2 %v572_v42 }
 0x10c   : > { %1328 = vmatmul.f32.gmra.mxu3 %v2708_v61 }
 0x10d   : > { %1105 = vmatmul.f32.gmra.mxu1 %v635_v52  ;;  %1444 = vmatmul.f32.gmra.mxu0 %v2595_v53  ;;  %v1059_v52 = vadd.f32 %v1058_v49, %v2940_v21  ;;  %v897_v21 = vld [vmem:[%s3357_s3 + $0x3a0] sm:$0xff] }
 0x10e   : > { %v1168_v34 = vpop.f32.mrf.mxu2  ;;  %1727 = vmatpush.msra.mxu3 %v897_v21 }
 0x10f   : > { %v1169_v4 = vadd.f32 %v1168_v34, %v1056_v1  ;;  %v1281_v24 = vpop.f32.mrf.mxu3  ;;  %v865_v34 = vld [vmem:[%s3357_s3 + $0x2a0] sm:$0xff] }
 0x110   : > { %1501 = vmatpush.msra.mxu1 %v865_v34 }
 0x111   : > { %v1282_v61 = vadd.f32 %v1281_v24, %v1169_v4 }
 0x112   : > { %v1061_v2 = vpop.f32.mrf.mxu1  ;;  %v1400_v48 = vpop.f32.mrf.mxu0 }
 0x113   : > { %v3078_v5 = vadd.f32 %v1394_v46, %v1282_v61  ;;  %1218 = vmatmul.f32.gmra.mxu2 %v573_v13 }
 0x114   : > { %1331 = vmatmul.f32.gmra.mxu3 %v2762_v39  ;;  %v881_v39 = vld [vmem:[%s3357_s3 + $0x320] sm:$0xff] }
 0x115   : > { %1108 = vmatmul.f32.gmra.mxu1 %v636_v12  ;;  %1447 = vmatmul.f32.gmra.mxu0 %v2618_v7  ;;  %v1062_v12 = vadd.f32 %v1061_v2, %v2962_v40 }
 0x116   : > { %v1171_v33 = vpop.f32.mrf.mxu2  ;;  %1614 = vmatpush.msra.mxu2 %v881_v39 }
 0x117   : > { %v1172_v37 = vadd.f32 %v1171_v33, %v1059_v52  ;;  %v1284_v17 = vpop.f32.mrf.mxu3  ;;  %v576_v52 = vld [vmem:[#allocation2 + $0xf2] sm:$0xff] }
 0x119   : > { %v1285_v42 = vadd.f32 %v1284_v17, %v1172_v37 }
 0x11a   : > { %v1064_v46 = vpop.f32.mrf.mxu1  ;;  %v1403_v63 = vpop.f32.mrf.mxu0 }
 0x11b   : > { %v3086_v0 = vadd.f32 %v1397_v56, %v1285_v42  ;;  %1221 = vmatmul.f32.gmra.mxu2 %v574_v27  ;;  %v1065_v40 = vadd.f32 %v1064_v46, %v2976_v6 }
 0x11c   : > { %1334 = vmatmul.f32.gmra.mxu3 %v2804_v60  ;;  %v575_v60 = vld [vmem:[#allocation2 + $0xe2] sm:$0xff] }
 0x11d   : > { %1111 = vmatmul.f32.gmra.mxu1 %v2595_v53  ;;  %1450 = vmatmul.f32.gmra.mxu0 %v2651_v28  ;;  %v913_v53 = vld [vmem:[%s3357_s3 + $0x420] sm:$0xff] }
 0x11e   : > { %v1174_v49 = vpop.f32.mrf.mxu2  ;;  %1840 = vmatpush.msra.mxu0 %v913_v53 }
 0x11f   : > { %v1175_v56 = vadd.f32 %v1174_v49, %v1062_v12  ;;  %v1287_v1 = vpop.f32.mrf.mxu3  ;;  %v642_v49 = vld [vmem:[#allocation2 + $0x121] sm:$0xff] }
 0x121   : > { %v1288_v4 = vadd.f32 %v1287_v1, %v1175_v56 }
 0x122   : > { %v1067_v24 = vpop.f32.mrf.mxu1  ;;  %v1406_v10 = vpop.f32.mrf.mxu0 }
 0x123   : > { %v3101_v13 = vadd.f32 %v1400_v48, %v1288_v4  ;;  %1224 = vmatmul.f32.gmra.mxu2 %v575_v60  ;;  %v1068_v6 = vadd.f32 %v1067_v24, %v2996_v57  ;;  %v578_v4 = vld [vmem:[#allocation2 + $0x10a] sm:$0xff] }
 0x124   : > { %1337 = vmatmul.f32.gmra.mxu3 %v2828_v18  ;;  %v880_v18 = vld [vmem:[%s3357_s3 + $0x318] sm:$0xff] }
 0x125   : > { %1114 = vmatmul.f32.gmra.mxu1 %v2618_v7  ;;  %1453 = vmatmul.f32.gmra.mxu0 %v2686_v50  ;;  %v896_v7 = vld [vmem:[%s3357_s3 + $0x398] sm:$0xff] }
 0x126   : > { %v1177_v61 = vpop.f32.mrf.mxu2  ;;  %1615 = vmatpush.msra.mxu2 %v880_v18  ;;  %1728 = vmatpush.msra.mxu3 %v896_v7  ;;  %v611_v7 = vld [vmem:[#allocation2 + $0x128] sm:$0xff] }
 0x127   : > { %v1178_v2 = vadd.f32 %v1177_v61, %v1065_v40  ;;  %v1290_v11 = vpop.f32.mrf.mxu3  ;;  %v643_v61 = vld [vmem:[#allocation2 + $0x129] sm:$0xff] }
 0x129   : > { %v1291_v48 = vadd.f32 %v1290_v11, %v1178_v2 }
 0x12a   : > { %v1070_v33 = vpop.f32.mrf.mxu1  ;;  %v1409_v37 = vpop.f32.mrf.mxu0 }
 0x12b   : > { %v3110_v17 = vadd.f32 %v1403_v63, %v1291_v48  ;;  %1227 = vmatmul.f32.gmra.mxu2 %v576_v52  ;;  %v864_v63 = vld [vmem:[%s3357_s3 + $0x298] sm:$0xff]  ;;  %v1071_v57 = vadd.f32 %v1070_v33, %v3010_v43  ;;  %v879_v43 = vld [vmem:[%s3357_s3 + $0x310] sm:$0xff] }
 0x12c   : > { %1340 = vmatmul.f32.gmra.mxu3 %v2840_v25  ;;  %v577_v25 = vld [vmem:[#allocation2 + $0xfa] sm:$0xff]  ;;  %1502 = vmatpush.msra.mxu1 %v864_v63  ;;  %v863_v33 = vld [vmem:[%s3357_s3 + $0x290] sm:$0xff] }
 0x12d   : > { %1117 = vmatmul.f32.gmra.mxu1 %v2651_v28  ;;  %1456 = vmatmul.f32.gmra.mxu0 %v2741_v29  ;;  %v912_v28 = vld [vmem:[%s3357_s3 + $0x418] sm:$0xff] }
 0x12e   : > { %v1180_v27 = vpop.f32.mrf.mxu2  ;;  %1841 = vmatpush.msra.mxu0 %v912_v28  ;;  %1616 = vmatpush.msra.mxu2 %v879_v43  ;;  %v862_v43 = vld [vmem:[%s3357_s3 + $0x288] sm:$0xff] }
 0x12f   : > { %v1181_v42 = vadd.f32 %v1180_v27, %v1068_v6  ;;  %v1293_v46 = vpop.f32.mrf.mxu3  ;;  %1503 = vmatpush.msra.mxu1 %v863_v33 }
 0x131   : > { %v1294_v39 = vadd.f32 %v1293_v46, %v1181_v42  ;;  %v644_v42 = vld [vmem:[#allocation2 + $0x139] sm:$0xff]  ;;  %1504 = vmatpush.msra.mxu1 %v862_v43 }
 0x132   : > { %v1073_v21 = vpop.f32.mrf.mxu1  ;;  %v1412_v12 = vpop.f32.mrf.mxu0 }
 0x133   : > { %v3125_v56 = vadd.f32 %v1406_v10, %v1294_v39  ;;  %1230 = vmatmul.f32.gmra.mxu2 %v577_v25  ;;  %v610_v10 = vld [vmem:[#allocation2 + $0x120] sm:$0xff]  ;;  %v1074_v2 = vadd.f32 %v1073_v21, %v3030_v3 }
 0x134   : > { %1343 = vmatmul.f32.gmra.mxu3 %v2858_v38  ;;  %v580_v21 = vld [vmem:[#allocation2 + $0x122] sm:$0xff] }
 0x135   : > { %1120 = vmatmul.f32.gmra.mxu1 %v2686_v50  ;;  %1459 = vmatmul.f32.gmra.mxu0 %v642_v49  ;;  %v895_v50 = vld [vmem:[%s3357_s3 + $0x390] sm:$0xff] }
 0x136   : > { %v1183_v1 = vpop.f32.mrf.mxu2  ;;  %1729 = vmatpush.msra.mxu3 %v895_v50  ;;  %v2260_v50 = vld [vmem:[%s3355_s1] ss:$0 sm:$0xff] }
 0x137   : > { %v1184_v34 = vadd.f32 %v1183_v1, %v1071_v57  ;;  %v1296_v60 = vpop.f32.mrf.mxu3  ;;  %v612_v57 = vld [vmem:[#allocation2 + $0x138] sm:$0xff] }
 0x139   : > { %v1297_v24 = vadd.f32 %v1296_v60, %v1184_v34  ;;  %v645_v34 = vld [vmem:[#allocation2 + $0x141] sm:$0xff] }
 0x13a   : > { %v1076_v53 = vpop.f32.mrf.mxu1  ;;  %v1415_v40 = vpop.f32.mrf.mxu0 }
 0x13b   : > { %v3133_v38 = vadd.f32 %v1409_v37, %v1297_v24  ;;  %1233 = vmatmul.f32.gmra.mxu2 %v578_v4  ;;  %v579_v37 = vld [vmem:[#allocation2 + $0x112] sm:$0xff]  ;;  %v1077_v3 = vadd.f32 %v1076_v53, %v3043_v23  ;;  %v878_v23 = vld [vmem:[%s3357_s3 + $0x308] sm:$0xff] }
 0x13c   : > { %1346 = vmatmul.f32.gmra.mxu3 %v610_v10  ;;  %1617 = vmatpush.msra.mxu2 %v878_v23  ;;  %v299_v10 = vld [vmem:[%s2342_s12 + $0xf0] sm:$0xff] }
 0x13d   : > { %1123 = vmatmul.f32.gmra.mxu1 %v2741_v29  ;;  %1462 = vmatmul.f32.gmra.mxu0 %v643_v61  ;;  %v911_v29 = vld [vmem:[%s3357_s3 + $0x410] sm:$0xff] }
 0x13e   : > { %v1186_v11 = vpop.f32.mrf.mxu2  ;;  %1842 = vmatpush.msra.mxu0 %v911_v29  ;;  %v910_v29 = vld [vmem:[%s3357_s3 + $0x408] sm:$0xff]  ;;  %v614_v23 = vld [vmem:[#allocation2 + $0x150] sm:$0xff] }
 0x13f   : > { %v1187_v52 = vadd.f32 %v1186_v11, %v1074_v2  ;;  %v1299_v48 = vpop.f32.mrf.mxu3  ;;  %v335_v2 = vmul.f32 %v2260_v50, %v299_v10  ;;  %v581_v11 = vld [vmem:[#allocation2 + $0x12a] sm:$0xff]  ;;  %v647_v10 = vld [vmem:[#allocation2 + $0x159] sm:$0xff] }
 0x140   : > { %1843 = vmatpush.msra.mxu0 %v910_v29 }
 0x141   : > { %v1300_v18 = vadd.f32 %v1299_v48, %v1187_v52 }
 0x142   : > { %v1079_v6 = vpop.f32.mrf.mxu1  ;;  %v1418_v27 = vpop.f32.mrf.mxu0 }
 0x143   : > { %v3146_v46 = vadd.f32 %v1412_v12, %v1300_v18  ;;  %1236 = vmatmul.f32.gmra.mxu2 %v579_v37  ;;  %v1080_v4 = vadd.f32 %v1079_v6, %v2933_v16  ;;  %v613_v16 = vld [vmem:[#allocation2 + $0x140] sm:$0xff]  ;;  %v646_v18 = vld [vmem:[#allocation2 + $0x151] sm:$0xff] }
 0x144   : > { %1349 = vmatmul.f32.gmra.mxu3 %v611_v7 }
 0x145   : > { %1126 = vmatmul.f32.gmra.mxu1 %v642_v49  ;;  %1465 = vmatmul.f32.gmra.mxu0 %v644_v42  ;;  %v894_v49 = vld [vmem:[%s3357_s3 + $0x388] sm:$0xff] }
 0x146   : > { %v1189_v63 = vpop.f32.mrf.mxu2  ;;  %1730 = vmatpush.msra.mxu3 %v894_v49 }
 0x147   : > { %v1190_v25 = vadd.f32 %v1189_v63, %v1077_v3  ;;  %v1302_v39 = vpop.f32.mrf.mxu3 }
 0x149   : > { %v1303_v28 = vadd.f32 %v1302_v39, %v1190_v25  ;;  %v300_v25 = vld [vmem:[%s2342_s12 + $0xf8] sm:$0xff] }
 0x14a   : > { %v1082_v12 = vpop.f32.mrf.mxu1  ;;  %v1421_v1 = vpop.f32.mrf.mxu0 }
 0x14b   : > { %v3152_v60 = vadd.f32 %v1415_v40, %v1303_v28  ;;  %1239 = vmatmul.f32.gmra.mxu2 %v580_v21  ;;  %v1083_v3 = vadd.f32 %v1082_v12, %v2942_v22  ;;  %v336_v21 = vmul.f32 %v2260_v50, %v300_v25  ;;  %v582_v28 = vld [vmem:[#allocation2 + $0x13a] sm:$0xff] }
 0x14c   : > { %1352 = vmatmul.f32.gmra.mxu3 %v612_v57 }
 0x14d   : > { %1129 = vmatmul.f32.gmra.mxu1 %v643_v61  ;;  %1468 = vmatmul.f32.gmra.mxu0 %v645_v34  ;;  %v2261_v61 = vld [vmem:[%s3356_s2] ss:$0 sm:$0xff] }
 0x14e   : > { %v1192_v24 = vpop.f32.mrf.mxu2  ;;  %v3171_v48 = vadd.f32 %v2261_v61, %v335_v2  ;;  %v3183_v49 = vadd.f32 %v2261_v61, %v336_v21  ;;  %v861_v2 = vld [vmem:[%s3357_s3 + $0x280] sm:$0xff] }
 0x14f   : > { %v1193_v53 = vadd.f32 %v1192_v24, %v1080_v4  ;;  %v1305_v40 = vpop.f32.mrf.mxu3  ;;  %1505 = vmatpush.msra.mxu1 %v861_v2 }
 0x150   : > { %v403_v6 = vmax.f32 %v3171_v48, 0.0  ;;  %v404_v12 = vmax.f32 %v3183_v49, 0.0 }
 0x151   : > { %v1306_v52 = vadd.f32 %v1305_v40, %v1193_v53  ;;  %v893_v53 = vld [vmem:[%s3357_s3 + $0x380] sm:$0xff] }
 0x152   : > { %v1085_v33 = vpop.f32.mrf.mxu1  ;;  %v1424_v37 = vpop.f32.mrf.mxu0  ;;  %490 = vst [vmem:[#allocation2 + $0x181] sm:$0xff] %v403_v6  ;;  %1731 = vmatpush.msra.mxu3 %v893_v53 }
 0x153   : > { %v3173_v7 = vadd.f32 %v1418_v27, %v1306_v52  ;;  %1242 = vmatmul.f32.gmra.mxu2 %v581_v11  ;;  %v1086_v40 = vadd.f32 %v1085_v33, %v2960_v36  ;;  %491 = vst [vmem:[#allocation2 + $0x189] sm:$0xff] %v404_v12  ;;  %v583_v11 = vld [vmem:[#allocation2 + $0x142] sm:$0xff] }
 0x154   : > { %1355 = vmatmul.f32.gmra.mxu3 %v613_v16  ;;  %v615_v16 = vld [vmem:[#allocation2 + $0x158] sm:$0xff]  ;;  %v648_v36 = vld [vmem:[#allocation2 + $0x169] sm:$0xff]  ;;  %v909_v33 = vld [vmem:[%s3357_s3 + $0x400] sm:$0xff] }
 0x155   : > { %1132 = vmatmul.f32.gmra.mxu1 %v644_v42  ;;  %1471 = vmatmul.f32.gmra.mxu0 %v646_v18  ;;  %v877_v42 = vld [vmem:[%s3357_s3 + $0x300] sm:$0xff] }
 0x156   : > { %v1195_v63 = vpop.f32.mrf.mxu2  ;;  %1618 = vmatpush.msra.mxu2 %v877_v42  ;;  %1844 = vmatpush.msra.mxu0 %v909_v33 }
 0x157   : > { %v1196_v27 = vadd.f32 %v1195_v63, %v1083_v3  ;;  %v1308_v39 = vpop.f32.mrf.mxu3 }
 0x159   : > { %v1309_v57 = vadd.f32 %v1308_v39, %v1196_v27  ;;  %v584_v39 = vld [vmem:[#allocation2 + $0x152] sm:$0xff]  ;;  %v618_v33 = vld [vmem:[#allocation2 + $0x180] sm:$0xff] }
 0x15a   : > { %v1088_v4 = vpop.f32.mrf.mxu1  ;;  %v1427_v24 = vpop.f32.mrf.mxu0 }
 0x15b   : > { %v3185_v22 = vadd.f32 %v1421_v1, %v1309_v57  ;;  %1245 = vmatmul.f32.gmra.mxu2 %v582_v28  ;;  %v1089_v3 = vadd.f32 %v1088_v4, %v2974_v47  ;;  %v616_v28 = vld [vmem:[#allocation2 + $0x168] sm:$0xff] }
 0x15c   : > { %1358 = vmatmul.f32.gmra.mxu3 %v614_v23  ;;  %v649_v23 = vld [vmem:[#allocation2 + $0x171] sm:$0xff] }
 0x15d   : > { %1135 = vmatmul.f32.gmra.mxu1 %v645_v34  ;;  %1474 = vmatmul.f32.gmra.mxu0 %v647_v10 }
 0x15e   : > { %v1198_v1 = vpop.f32.mrf.mxu2 }
 0x15f   : > { %v1199_v43 = vadd.f32 %v1198_v1, %v1086_v40  ;;  %v1311_v50 = vpop.f32.mrf.mxu3  ;;  %v585_v40 = vld [vmem:[#allocation2 + $0x15a] sm:$0xff] }
 0x161   : > { %v1312_v52 = vadd.f32 %v1311_v50, %v1199_v43  ;;  %v617_v43 = vld [vmem:[#allocation2 + $0x170] sm:$0xff] }
 0x162   : > { %v1091_v61 = vpop.f32.mrf.mxu1  ;;  %v1430_v29 = vpop.f32.mrf.mxu0 }
 0x163   : > { %v3200_v34 = vadd.f32 %v1424_v37, %v1312_v52  ;;  %1248 = vmatmul.f32.gmra.mxu2 %v583_v11  ;;  %v1092_v53 = vadd.f32 %v1091_v61, %v2994_v45 }
 0x164   : > { %1361 = vmatmul.f32.gmra.mxu3 %v615_v16  ;;  %v586_v16 = vld [vmem:[#allocation2 + $0x16a] sm:$0xff] }
 0x165   : > { %1138 = vmatmul.f32.gmra.mxu1 %v646_v18  ;;  %1477 = vmatmul.f32.gmra.mxu0 %v648_v36 }
 0x166   : > { %v1201_v63 = vpop.f32.mrf.mxu2 }
 0x167   : > { %v1202_v25 = vadd.f32 %v1201_v63, %v1089_v3  ;;  %v1314_v27 = vpop.f32.mrf.mxu3 }
 0x169   : > { %v1315_v21 = vadd.f32 %v1314_v27, %v1202_v25 }
 0x16a   : > { %v1094_v57 = vpop.f32.mrf.mxu1  ;;  %v1433_v37 = vpop.f32.mrf.mxu0 }
 0x16b   : > { %v3206_v42 = vadd.f32 %v1427_v24, %v1315_v21  ;;  %1251 = vmatmul.f32.gmra.mxu2 %v584_v39  ;;  %v1095_v24 = vadd.f32 %v1094_v57, %v3008_v59  ;;  %v619_v39 = vld [vmem:[#allocation2 + $0x188] sm:$0xff] }
 0x16c   : > { %1364 = vmatmul.f32.gmra.mxu3 %v616_v28  ;;  %v652_v28 = vld [vmem:[#allocation2 + $0x1a] sm:$0xff] }
 0x16d   : > { %1141 = vmatmul.f32.gmra.mxu1 %v647_v10  ;;  %1480 = vmatmul.f32.gmra.mxu0 %v649_v23 }
 0x16e   : > { %v1204_v47 = vpop.f32.mrf.mxu2 }
 0x16f   : > { %v1205_v18 = vadd.f32 %v1204_v47, %v1092_v53  ;;  %v1317_v4 = vpop.f32.mrf.mxu3  ;;  %v749_v53 = vld [vmem:[#allocation2 + $0x32] sm:$0xff] }
 0x170   : > { %v685_v47 = vld [vmem:[#allocation2 + $0x30] sm:$0xff] }
 0x171   : > { %v1318_v1 = vadd.f32 %v1317_v4, %v1205_v18  ;;  %v717_v4 = vld [vmem:[#allocation2 + $0x31] sm:$0xff] }
 0x172   : > { %v1097_v50 = vpop.f32.mrf.mxu1  ;;  %v1436_v2 = vpop.f32.mrf.mxu0 }
 0x173   : > { %v3209_v11 = vadd.f32 %v1430_v29, %v1318_v1  ;;  %1254 = vmatmul.f32.gmra.mxu2 %v585_v40  ;;  %v1098_v29 = vadd.f32 %v1097_v50, %v3028_v20  ;;  %v653_v1 = vld [vmem:[#allocation2 + $0x22] sm:$0xff]  ;;  %v750_v50 = vld [vmem:[#allocation2 + $0x3a] sm:$0xff] }
 0x174   : > { %1367 = vmatmul.f32.gmra.mxu3 %v617_v43 }
 0x175   : > { %1144 = vmatmul.f32.gmra.mxu1 %v648_v36  ;;  %1483 = vmatmul.f32.gmra.mxu0 %v403_v6  ;;  %v587_v36 = vld [vmem:[#allocation2 + $0x172] sm:$0xff] }
 0x176   : > { %v1207_v45 = vpop.f32.mrf.mxu2 }
 0x177   : > { %v1208_v10 = vadd.f32 %v1207_v45, %v1095_v24  ;;  %v1320_v52 = vpop.f32.mrf.mxu3 }
 0x179   : > { %v1321_v61 = vadd.f32 %v1320_v52, %v1208_v10  ;;  %v686_v52 = vld [vmem:[#allocation2 + $0x38] sm:$0xff] }
 0x17a   : > { %v1100_v3 = vpop.f32.mrf.mxu1  ;;  %v1439_v63 = vpop.f32.mrf.mxu0 }
 0x17b   : > { %v3214_v25 = vadd.f32 %v1433_v37, %v1321_v61  ;;  %1257 = vmatmul.f32.gmra.mxu2 %v586_v16  ;;  %v1101_v20 = vadd.f32 %v1100_v3, %v3041_v32  ;;  %v718_v61 = vld [vmem:[#allocation2 + $0x39] sm:$0xff] }
 0x17c   : > { %1370 = vmatmul.f32.gmra.mxu3 %v618_v33 }
 0x17d   : > { %1147 = vmatmul.f32.gmra.mxu1 %v649_v23  ;;  %1486 = vmatmul.f32.gmra.mxu0 %v404_v12 }
 0x17e   : > { %v1210_v59 = vpop.f32.mrf.mxu2 }
 0x17f   : > { %v1211_v48 = vadd.f32 %v1210_v59, %v1098_v29  ;;  %v1323_v6 = vpop.f32.mrf.mxu3  ;;  %v751_v29 = vld [vmem:[#allocation2 + $0x4a] sm:$0xff] }
 0x181   : > { %v1324_v27 = vadd.f32 %v1323_v6, %v1211_v48 }
 0x182   : > { %v1103_v21 = vpop.f32.mrf.mxu1  ;;  %v1442_v57 = vpop.f32.mrf.mxu0 }
 0x183   : > { %v3219_v37 = vadd.f32 %v1436_v2, %v1324_v27  ;;  %1260 = vmatmul.f32.gmra.mxu2 %v587_v36  ;;  %v1104_v2 = vadd.f32 %v1103_v21, %v2953_v30  ;;  %v687_v36 = vld [vmem:[#allocation2 + $0x48] sm:$0xff] }
 0x184   : > { %1373 = vmatmul.f32.gmra.mxu3 %v619_v39  ;;  %v719_v39 = vld [vmem:[#allocation2 + $0x49] sm:$0xff] }
 0x185   : > { %1506 = vmatmul.f32.vlgmr.msra.gmra.mxu1 %v652_v28  ;;  %1845 = vmatmul.f32.vlgmr.msra.gmra.mxu0 %v749_v53 }
 0x186   : > { %v1213_v49 = vpop.f32.mrf.mxu2 }
 0x187   : > { %v1214_v12 = vadd.f32 %v1213_v49, %v1101_v20  ;;  %v1326_v23 = vpop.f32.mrf.mxu3  ;;  %v752_v20 = vld [vmem:[#allocation2 + $0x52] sm:$0xff] }
 0x189   : > { %v1327_v18 = vadd.f32 %v1326_v23, %v1214_v12  ;;  %v688_v23 = vld [vmem:[#allocation2 + $0x50] sm:$0xff] }
 0x18a   : > { %v1106_v40 = vpop.f32.mrf.mxu1  ;;  %v1445_v43 = vpop.f32.mrf.mxu0 }
 0x18b   : > { %v3222_v24 = vadd.f32 %v1439_v63, %v1327_v18  ;;  %1619 = vmatmul.f32.vlgmr.msra.gmra.mxu2 %v685_v47  ;;  %v1107_v63 = vadd.f32 %v1106_v40, %v2970_v41  ;;  %v720_v18 = vld [vmem:[#allocation2 + $0x51] sm:$0xff] }
 0x18c   : > { %1732 = vmatmul.f32.vlgmr.msra.gmra.mxu3 %v717_v4 }
 0x18d   : > { %1509 = vmatmul.f32.gmra.mxu1 %v653_v1  ;;  %1848 = vmatmul.f32.gmra.mxu0 %v750_v50  ;;  %v753_v1 = vld [vmem:[#allocation2 + $0x62] sm:$0xff] }
 0x18e   : > { %v1216_v32 = vpop.f32.mrf.mxu2 }
 0x18f   : > { %v1217_v45 = vadd.f32 %v1216_v32, %v1104_v2  ;;  %v1329_v10 = vpop.f32.mrf.mxu3 }
 0x191   : > { %v1330_v16 = vadd.f32 %v1329_v10, %v1217_v45  ;;  %v689_v45 = vld [vmem:[#allocation2 + $0x60] sm:$0xff] }
 0x192   : > { %v1109_v33 = vpop.f32.mrf.mxu1  ;;  %v1448_v3 = vpop.f32.mrf.mxu0 }
 0x193   : > { %v3225_v59 = vadd.f32 %v1442_v57, %v1330_v16  ;;  %1622 = vmatmul.f32.gmra.mxu2 %v686_v52  ;;  %v1110_v57 = vadd.f32 %v1109_v33, %v2987_v8  ;;  %v721_v52 = vld [vmem:[#allocation2 + $0x61] sm:$0xff]  ;;  %v754_v33 = vld [vmem:[#allocation2 + $0x6a] sm:$0xff] }
 0x194   : > { %1735 = vmatmul.f32.gmra.mxu3 %v718_v61 }
 0x195   : > { %1512 = vmatmul.f32.gmra.mxu1 %v749_v53  ;;  %1851 = vmatmul.f32.gmra.mxu0 %v751_v29 }
 0x196   : > { %v1219_v30 = vpop.f32.mrf.mxu2 }
 0x197   : > { %v1220_v48 = vadd.f32 %v1219_v30, %v1107_v63  ;;  %v1332_v6 = vpop.f32.mrf.mxu3 }
 0x199   : > { %v1333_v27 = vadd.f32 %v1332_v6, %v1220_v48  ;;  %v690_v48 = vld [vmem:[#allocation2 + $0x68] sm:$0xff] }
 0x19a   : > { %v1112_v21 = vpop.f32.mrf.mxu1  ;;  %v1451_v28 = vpop.f32.mrf.mxu0 }
 0x19b   : > { %v3228_v49 = vadd.f32 %v1445_v43, %v1333_v27  ;;  %1625 = vmatmul.f32.gmra.mxu2 %v687_v36  ;;  %v1113_v43 = vadd.f32 %v1112_v21, %v3004_v58  ;;  %v722_v36 = vld [vmem:[#allocation2 + $0x69] sm:$0xff]  ;;  %v755_v21 = vld [vmem:[#allocation2 + $0x7a] sm:$0xff] }
 0x19c   : > { %1738 = vmatmul.f32.gmra.mxu3 %v719_v39 }
 0x19d   : > { %1515 = vmatmul.f32.gmra.mxu1 %v750_v50  ;;  %1854 = vmatmul.f32.gmra.mxu0 %v752_v20 }
 0x19e   : > { %v1222_v41 = vpop.f32.mrf.mxu2 }
 0x19f   : > { %v1223_v53 = vadd.f32 %v1222_v41, %v1110_v57  ;;  %v1335_v12 = vpop.f32.mrf.mxu3 }
 0x1a1   : > { %v1336_v47 = vadd.f32 %v1335_v12, %v1223_v53  ;;  %v691_v53 = vld [vmem:[#allocation2 + $0x78] sm:$0xff] }
 0x1a2   : > { %v1115_v4 = vpop.f32.mrf.mxu1  ;;  %v1454_v40 = vpop.f32.mrf.mxu0 }
 0x1a3   : > { %v3231_v2 = vadd.f32 %v1448_v3, %v1336_v47  ;;  %1628 = vmatmul.f32.gmra.mxu2 %v688_v23  ;;  %v1116_v3 = vadd.f32 %v1115_v4, %v3021_v62  ;;  %v723_v23 = vld [vmem:[#allocation2 + $0x79] sm:$0xff]  ;;  %v756_v4 = vld [vmem:[#allocation2 + $0x82] sm:$0xff] }
 0x1a4   : > { %1741 = vmatmul.f32.gmra.mxu3 %v720_v18 }
 0x1a5   : > { %1518 = vmatmul.f32.gmra.mxu1 %v751_v29  ;;  %1857 = vmatmul.f32.gmra.mxu0 %v753_v1 }
 0x1a6   : > { %v1225_v8 = vpop.f32.mrf.mxu2 }
 0x1a7   : > { %v1226_v50 = vadd.f32 %v1225_v8, %v1113_v43  ;;  %v1338_v32 = vpop.f32.mrf.mxu3 }
 0x1a9   : > { %v1339_v10 = vadd.f32 %v1338_v32, %v1226_v50  ;;  %v692_v50 = vld [vmem:[#allocation2 + $0x80] sm:$0xff] }
 0x1aa   : > { %v1118_v16 = vpop.f32.mrf.mxu1  ;;  %v1457_v61 = vpop.f32.mrf.mxu0 }
 0x1ab   : > { %v3234_v63 = vadd.f32 %v1451_v28, %v1339_v10  ;;  %1631 = vmatmul.f32.gmra.mxu2 %v689_v45  ;;  %v1119_v28 = vadd.f32 %v1118_v16, %v3037_v54  ;;  %v724_v45 = vld [vmem:[#allocation2 + $0x81] sm:$0xff]  ;;  %v757_v16 = vld [vmem:[#allocation2 + $0x92] sm:$0xff] }
 0x1ac   : > { %1744 = vmatmul.f32.gmra.mxu3 %v721_v52 }
 0x1ad   : > { %1521 = vmatmul.f32.gmra.mxu1 %v752_v20  ;;  %1860 = vmatmul.f32.gmra.mxu0 %v754_v33 }
 0x1ae   : > { %v1228_v58 = vpop.f32.mrf.mxu2 }
 0x1af   : > { %v1229_v29 = vadd.f32 %v1228_v58, %v1116_v3  ;;  %v1341_v30 = vpop.f32.mrf.mxu3 }
 0x1b1   : > { %v1342_v6 = vadd.f32 %v1341_v30, %v1229_v29  ;;  %v693_v29 = vld [vmem:[#allocation2 + $0x90] sm:$0xff] }
 0x1b2   : > { %v1121_v27 = vpop.f32.mrf.mxu1  ;;  %v1460_v39 = vpop.f32.mrf.mxu0 }
 0x1b3   : > { %v3237_v57 = vadd.f32 %v1454_v40, %v1342_v6  ;;  %1634 = vmatmul.f32.gmra.mxu2 %v690_v48  ;;  %v1122_v40 = vadd.f32 %v1121_v27, %v3052_v19  ;;  %v725_v48 = vld [vmem:[#allocation2 + $0x91] sm:$0xff]  ;;  %v758_v27 = vld [vmem:[#allocation2 + $0x9a] sm:$0xff] }
 0x1b4   : > { %1747 = vmatmul.f32.gmra.mxu3 %v722_v36 }
 0x1b5   : > { %1524 = vmatmul.f32.gmra.mxu1 %v753_v1  ;;  %1863 = vmatmul.f32.gmra.mxu0 %v755_v21 }
 0x1b6   : > { %v1231_v62 = vpop.f32.mrf.mxu2 }
 0x1b7   : > { %v1232_v20 = vadd.f32 %v1231_v62, %v1119_v28  ;;  %v1344_v41 = vpop.f32.mrf.mxu3 }
 0x1b9   : > { %v1345_v12 = vadd.f32 %v1344_v41, %v1232_v20  ;;  %v694_v20 = vld [vmem:[#allocation2 + $0x98] sm:$0xff] }
 0x1ba   : > { %v1124_v47 = vpop.f32.mrf.mxu1  ;;  %v1463_v18 = vpop.f32.mrf.mxu0 }
 0x1bb   : > { %v3240_v43 = vadd.f32 %v1457_v61, %v1345_v12  ;;  %1637 = vmatmul.f32.gmra.mxu2 %v691_v53  ;;  %v1125_v61 = vadd.f32 %v1124_v47, %v3062_v31  ;;  %v726_v53 = vld [vmem:[#allocation2 + $0x99] sm:$0xff]  ;;  %v759_v47 = vld [vmem:[#allocation2 + $0xaa] sm:$0xff] }
 0x1bc   : > { %1750 = vmatmul.f32.gmra.mxu3 %v723_v23 }
 0x1bd   : > { %1527 = vmatmul.f32.gmra.mxu1 %v754_v33  ;;  %1866 = vmatmul.f32.gmra.mxu0 %v756_v4 }
 0x1be   : > { %v1234_v54 = vpop.f32.mrf.mxu2 }
 0x1bf   : > { %v1235_v1 = vadd.f32 %v1234_v54, %v1122_v40  ;;  %v1347_v8 = vpop.f32.mrf.mxu3 }
 0x1c1   : > { %v1348_v32 = vadd.f32 %v1347_v8, %v1235_v1  ;;  %v695_v1 = vld [vmem:[#allocation2 + $0xa8] sm:$0xff] }
 0x1c2   : > { %v1127_v10 = vpop.f32.mrf.mxu1  ;;  %v1466_v52 = vpop.f32.mrf.mxu0 }
 0x1c3   : > { %v3243_v3 = vadd.f32 %v1460_v39, %v1348_v32  ;;  %1640 = vmatmul.f32.gmra.mxu2 %v692_v50  ;;  %v1128_v39 = vadd.f32 %v1127_v10, %v2958_v35  ;;  %v727_v50 = vld [vmem:[#allocation2 + $0xa9] sm:$0xff]  ;;  %v760_v10 = vld [vmem:[#allocation2 + $0xb2] sm:$0xff] }
 0x1c4   : > { %1753 = vmatmul.f32.gmra.mxu3 %v724_v45 }
 0x1c5   : > { %1530 = vmatmul.f32.gmra.mxu1 %v755_v21  ;;  %1869 = vmatmul.f32.gmra.mxu0 %v757_v16 }
 0x1c6   : > { %v1237_v19 = vpop.f32.mrf.mxu2 }
 0x1c7   : > { %v1238_v33 = vadd.f32 %v1237_v19, %v1125_v61  ;;  %v1350_v58 = vpop.f32.mrf.mxu3 }
 0x1c9   : > { %v1351_v30 = vadd.f32 %v1350_v58, %v1238_v33  ;;  %v696_v33 = vld [vmem:[#allocation2 + $0xb0] sm:$0xff] }
 0x1ca   : > { %v1130_v6 = vpop.f32.mrf.mxu1  ;;  %v1469_v36 = vpop.f32.mrf.mxu0 }
 0x1cb   : > { %v3246_v28 = vadd.f32 %v1463_v18, %v1351_v30  ;;  %1643 = vmatmul.f32.gmra.mxu2 %v693_v29  ;;  %v1131_v18 = vadd.f32 %v1130_v6, %v2972_v44  ;;  %v728_v29 = vld [vmem:[#allocation2 + $0xb1] sm:$0xff]  ;;  %v761_v6 = vld [vmem:[#allocation2 + $0xc2] sm:$0xff] }
 0x1cc   : > { %1756 = vmatmul.f32.gmra.mxu3 %v725_v48 }
 0x1cd   : > { %1533 = vmatmul.f32.gmra.mxu1 %v756_v4  ;;  %1872 = vmatmul.f32.gmra.mxu0 %v758_v27 }
 0x1ce   : > { %v1240_v31 = vpop.f32.mrf.mxu2 }
 0x1cf   : > { %v1241_v21 = vadd.f32 %v1240_v31, %v1128_v39  ;;  %v1353_v62 = vpop.f32.mrf.mxu3 }
 0x1d1   : > { %v1354_v41 = vadd.f32 %v1353_v62, %v1241_v21  ;;  %v697_v21 = vld [vmem:[#allocation2 + $0xc0] sm:$0xff] }
 0x1d2   : > { %v1133_v12 = vpop.f32.mrf.mxu1  ;;  %v1472_v23 = vpop.f32.mrf.mxu0 }
 0x1d3   : > { %v3249_v40 = vadd.f32 %v1466_v52, %v1354_v41  ;;  %1646 = vmatmul.f32.gmra.mxu2 %v694_v20  ;;  %v1134_v52 = vadd.f32 %v1133_v12, %v2992_v55  ;;  %v729_v20 = vld [vmem:[#allocation2 + $0xc1] sm:$0xff]  ;;  %v762_v12 = vld [vmem:[#allocation2 + $0xca] sm:$0xff] }
 0x1d4   : > { %1759 = vmatmul.f32.gmra.mxu3 %v726_v53 }
 0x1d5   : > { %1536 = vmatmul.f32.gmra.mxu1 %v757_v16  ;;  %1875 = vmatmul.f32.gmra.mxu0 %v759_v47 }
 0x1d6   : > { %v1243_v35 = vpop.f32.mrf.mxu2 }
 0x1d7   : > { %v1244_v4 = vadd.f32 %v1243_v35, %v1131_v18  ;;  %v1356_v54 = vpop.f32.mrf.mxu3 }
 0x1d9   : > { %v1357_v8 = vadd.f32 %v1356_v54, %v1244_v4  ;;  %v698_v4 = vld [vmem:[#allocation2 + $0xc8] sm:$0xff] }
 0x1da   : > { %v1136_v32 = vpop.f32.mrf.mxu1  ;;  %v1475_v45 = vpop.f32.mrf.mxu0 }
 0x1db   : > { %v3252_v61 = vadd.f32 %v1469_v36, %v1357_v8  ;;  %1649 = vmatmul.f32.gmra.mxu2 %v695_v1  ;;  %v1137_v36 = vadd.f32 %v1136_v32, %v3006_v15  ;;  %v730_v1 = vld [vmem:[#allocation2 + $0xc9] sm:$0xff]  ;;  %v763_v32 = vld [vmem:[#allocation2 + $0xda] sm:$0xff] }
 0x1dc   : > { %1762 = vmatmul.f32.gmra.mxu3 %v727_v50 }
 0x1dd   : > { %1539 = vmatmul.f32.gmra.mxu1 %v758_v27  ;;  %1878 = vmatmul.f32.gmra.mxu0 %v760_v10 }
 0x1de   : > { %v1246_v44 = vpop.f32.mrf.mxu2 }
 0x1df   : > { %v1247_v16 = vadd.f32 %v1246_v44, %v1134_v52  ;;  %v1359_v19 = vpop.f32.mrf.mxu3 }
 0x1e1   : > { %v1360_v58 = vadd.f32 %v1359_v19, %v1247_v16  ;;  %v699_v16 = vld [vmem:[#allocation2 + $0xd8] sm:$0xff] }
 0x1e2   : > { %v1139_v30 = vpop.f32.mrf.mxu1  ;;  %v1478_v48 = vpop.f32.mrf.mxu0 }
 0x1e3   : > { %v3255_v39 = vadd.f32 %v1472_v23, %v1360_v58  ;;  %1652 = vmatmul.f32.gmra.mxu2 %v696_v33  ;;  %v1140_v23 = vadd.f32 %v1139_v30, %v3023_v14  ;;  %v731_v33 = vld [vmem:[#allocation2 + $0xd9] sm:$0xff]  ;;  %v764_v30 = vld [vmem:[#allocation2 + $0xe2] sm:$0xff] }
 0x1e4   : > { %1765 = vmatmul.f32.gmra.mxu3 %v728_v29 }
 0x1e5   : > { %1542 = vmatmul.f32.gmra.mxu1 %v759_v47  ;;  %1881 = vmatmul.f32.gmra.mxu0 %v761_v6 }
 0x1e6   : > { %v1249_v55 = vpop.f32.mrf.mxu2 }
 0x1e7   : > { %v1250_v27 = vadd.f32 %v1249_v55, %v1137_v36  ;;  %v1362_v31 = vpop.f32.mrf.mxu3 }
 0x1e9   : > { %v1363_v62 = vadd.f32 %v1362_v31, %v1250_v27  ;;  %v700_v27 = vld [vmem:[#allocation2 + $0xe0] sm:$0xff] }
 0x1ea   : > { %v1142_v41 = vpop.f32.mrf.mxu1  ;;  %v1481_v53 = vpop.f32.mrf.mxu0 }
 0x1eb   : > { %v3258_v18 = vadd.f32 %v1475_v45, %v1363_v62  ;;  %1655 = vmatmul.f32.gmra.mxu2 %v697_v21  ;;  %v1143_v45 = vadd.f32 %v1142_v41, %v3039_v9  ;;  %v732_v21 = vld [vmem:[#allocation2 + $0xe1] sm:$0xff]  ;;  %v765_v41 = vld [vmem:[#allocation2 + $0xf2] sm:$0xff] }
 0x1ec   : > { %1768 = vmatmul.f32.gmra.mxu3 %v729_v20 }
 0x1ed   : > { %1545 = vmatmul.f32.gmra.mxu1 %v760_v10  ;;  %1884 = vmatmul.f32.gmra.mxu0 %v762_v12 }
 0x1ee   : > { %v1252_v15 = vpop.f32.mrf.mxu2 }
 0x1ef   : > { %v1253_v47 = vadd.f32 %v1252_v15, %v1140_v23  ;;  %v1365_v35 = vpop.f32.mrf.mxu3 }
 0x1f1   : > { %v1366_v54 = vadd.f32 %v1365_v35, %v1253_v47  ;;  %v701_v47 = vld [vmem:[#allocation2 + $0xf0] sm:$0xff] }
 0x1f2   : > { %v1145_v8 = vpop.f32.mrf.mxu1  ;;  %v1484_v50 = vpop.f32.mrf.mxu0 }
 0x1f3   : > { %v3261_v52 = vadd.f32 %v1478_v48, %v1366_v54  ;;  %1658 = vmatmul.f32.gmra.mxu2 %v698_v4  ;;  %v1146_v48 = vadd.f32 %v1145_v8, %v3054_v26  ;;  %v733_v4 = vld [vmem:[#allocation2 + $0xf1] sm:$0xff]  ;;  %v766_v8 = vld [vmem:[#allocation2 + $0xfa] sm:$0xff] }
 0x1f4   : > { %1771 = vmatmul.f32.gmra.mxu3 %v730_v1 }
 0x1f5   : > { %1548 = vmatmul.f32.gmra.mxu1 %v761_v6  ;;  %1887 = vmatmul.f32.gmra.mxu0 %v763_v32 }
 0x1f6   : > { %v1255_v14 = vpop.f32.mrf.mxu2 }
 0x1f7   : > { %v1256_v10 = vadd.f32 %v1255_v14, %v1143_v45  ;;  %v1368_v44 = vpop.f32.mrf.mxu3 }
 0x1f9   : > { %v1369_v19 = vadd.f32 %v1368_v44, %v1256_v10  ;;  %v702_v10 = vld [vmem:[#allocation2 + $0xf8] sm:$0xff] }
 0x1fa   : > { %v1148_v58 = vpop.f32.mrf.mxu1  ;;  %v1487_v29 = vpop.f32.mrf.mxu0 }
 0x1fb   : > { %v3264_v36 = vadd.f32 %v1481_v53, %v1369_v19  ;;  %1661 = vmatmul.f32.gmra.mxu2 %v699_v16  ;;  %v1149_v53 = vadd.f32 %v1148_v58, %v3064_v51  ;;  %v734_v16 = vld [vmem:[#allocation2 + $0xf9] sm:$0xff]  ;;  %v767_v58 = vld [vmem:[#allocation2 + $0x10a] sm:$0xff] }
 0x1fc   : > { %1774 = vmatmul.f32.gmra.mxu3 %v731_v33 }
 0x1fd   : > { %1551 = vmatmul.f32.gmra.mxu1 %v762_v12  ;;  %1890 = vmatmul.f32.gmra.mxu0 %v764_v30 }
 0x1fe   : > { %v1258_v9 = vpop.f32.mrf.mxu2 }
 0x1ff   : > { %v1259_v6 = vadd.f32 %v1258_v9, %v1146_v48  ;;  %v1371_v55 = vpop.f32.mrf.mxu3 }
 0x201   : > { %v1372_v31 = vadd.f32 %v1371_v55, %v1259_v6  ;;  %v703_v6 = vld [vmem:[#allocation2 + $0x108] sm:$0xff] }
 0x202   : > { %v1507_v62 = vpop.f32.mrf.mxu1  ;;  %v1846_v20 = vpop.f32.mrf.mxu0 }
 0x203   : > { %v3267_v23 = vadd.f32 %v1484_v50, %v1372_v31  ;;  %1664 = vmatmul.f32.gmra.mxu2 %v700_v27  ;;  %v1508_v50 = vadd.f32 %v1507_v62, %v3078_v5  ;;  %v735_v27 = vld [vmem:[#allocation2 + $0x109] sm:$0xff]  ;;  %v768_v62 = vld [vmem:[#allocation2 + $0x112] sm:$0xff] }
 0x204   : > { %1777 = vmatmul.f32.gmra.mxu3 %v732_v21 }
 0x205   : > { %1554 = vmatmul.f32.gmra.mxu1 %v763_v32  ;;  %1893 = vmatmul.f32.gmra.mxu0 %v765_v41 }
 0x206   : > { %v1261_v26 = vpop.f32.mrf.mxu2 }
 0x207   : > { %v1262_v12 = vadd.f32 %v1261_v26, %v1149_v53  ;;  %v1374_v15 = vpop.f32.mrf.mxu3 }
 0x209   : > { %v1375_v35 = vadd.f32 %v1374_v15, %v1262_v12 }
 0x20a   : > { %v1510_v54 = vpop.f32.mrf.mxu1  ;;  %v1849_v1 = vpop.f32.mrf.mxu0 }
 0x20b   : > { %v3270_v45 = vadd.f32 %v1487_v29, %v1375_v35  ;;  %1667 = vmatmul.f32.gmra.mxu2 %v701_v47  ;;  %v1511_v5 = vadd.f32 %v1510_v54, %v3086_v0 }
 0x20c   : > { %1780 = vmatmul.f32.gmra.mxu3 %v733_v4  ;;  %v704_v4 = vld [vmem:[#allocation2 + $0x110] sm:$0xff] }
 0x20d   : > { %1557 = vmatmul.f32.gmra.mxu1 %v764_v30  ;;  %1896 = vmatmul.f32.gmra.mxu0 %v766_v8 }
 0x20e   : > { %v1620_v51 = vpop.f32.mrf.mxu2 }
 0x20f   : > { %v1621_v32 = vadd.f32 %v1620_v51, %v1508_v50  ;;  %v1733_v14 = vpop.f32.mrf.mxu3  ;;  %v736_v50 = vld [vmem:[#allocation2 + $0x111] sm:$0xff] }
 0x211   : > { %v1734_v44 = vadd.f32 %v1733_v14, %v1621_v32  ;;  %v769_v32 = vld [vmem:[#allocation2 + $0x122] sm:$0xff] }
 0x212   : > { %v1513_v19 = vpop.f32.mrf.mxu1  ;;  %v1852_v33 = vpop.f32.mrf.mxu0 }
 0x213   : > { %v1847_v29 = vadd.f32 %v1846_v20, %v1734_v44  ;;  %1670 = vmatmul.f32.gmra.mxu2 %v702_v10  ;;  %v1514_v20 = vadd.f32 %v1513_v19, %v3101_v13 }
 0x214   : > { %1783 = vmatmul.f32.gmra.mxu3 %v734_v16 }
 0x215   : > { %1942 = vst [vmem:[%s3278_s20] sm:$0xff] %v1847_v29  ;;  %1560 = vmatmul.f32.gmra.mxu1 %v765_v41  ;;  %1899 = vmatmul.f32.gmra.mxu0 %v767_v58  ;;  %v2012_v26 = vmul.f32 %v1847_v29, %v1847_v29 }
 0x216   : > { %v1623_v30 = vpop.f32.mrf.mxu2 }
 0x217   : > { %v1624_v48 = vadd.f32 %v1623_v30, %v1511_v5  ;;  %v1736_v9 = vpop.f32.mrf.mxu3  ;;  %v705_v5 = vld [vmem:[#allocation2 + $0x120] sm:$0xff] }
 0x219   : > { %v1737_v55 = vadd.f32 %v1736_v9, %v1624_v48  ;;  %v737_v48 = vld [vmem:[#allocation2 + $0x121] sm:$0xff] }
 0x21a   : > { %v1516_v31 = vpop.f32.mrf.mxu1  ;;  %v1855_v21 = vpop.f32.mrf.mxu0 }
 0x21b   : > { %v1850_v53 = vadd.f32 %v1849_v1, %v1737_v55  ;;  %1673 = vmatmul.f32.gmra.mxu2 %v703_v6  ;;  %v1517_v13 = vadd.f32 %v1516_v31, %v3110_v17 }
 0x21c   : > { %1786 = vmatmul.f32.gmra.mxu3 %v735_v27 }
 0x21d   : > { %1943 = vst [vmem:[%s3278_s20 + $0x8] sm:$0xff] %v1850_v53  ;;  %v1974_v0 = vadd.f32 %v1850_v53, %v1847_v29  ;;  %v2013_v41 = vmul.f32 %v1850_v53, %v1850_v53  ;;  %1563 = vmatmul.f32.gmra.mxu1 %v766_v8  ;;  %1902 = vmatmul.f32.gmra.mxu0 %v768_v62 }
 0x21e   : > { %v1626_v12 = vpop.f32.mrf.mxu2 }
 0x21f   : > { %v2044_v15 = vadd.f32 %v2013_v41, %v2012_v26  ;;  %v1627_v47 = vadd.f32 %v1626_v12, %v1514_v20  ;;  %v1739_v35 = vpop.f32.mrf.mxu3  ;;  %v738_v12 = vld [vmem:[#allocation2 + $0x129] sm:$0xff] }
 0x221   : > { %v1740_v54 = vadd.f32 %v1739_v35, %v1627_v47 }
 0x222   : > { %v1519_v51 = vpop.f32.mrf.mxu1  ;;  %v1858_v1 = vpop.f32.mrf.mxu0 }
 0x223   : > { %v1853_v14 = vadd.f32 %v1852_v33, %v1740_v54  ;;  %1676 = vmatmul.f32.gmra.mxu2 %v704_v4  ;;  %v770_v33 = vld [vmem:[#allocation2 + $0x12a] sm:$0xff]  ;;  %v1520_v17 = vadd.f32 %v1519_v51, %v3125_v56 }
 0x224   : > { %1789 = vmatmul.f32.gmra.mxu3 %v736_v50 }
 0x225   : > { %1944 = vst [vmem:[%s3278_s20 + $0x10] sm:$0xff] %v1853_v14  ;;  %v1975_v10 = vadd.f32 %v1974_v0, %v1853_v14  ;;  %v2014_v8 = vmul.f32 %v1853_v14, %v1853_v14  ;;  %1566 = vmatmul.f32.gmra.mxu1 %v767_v58  ;;  %1905 = vmatmul.f32.gmra.mxu0 %v769_v32  ;;  %v706_v0 = vld [vmem:[#allocation2 + $0x128] sm:$0xff] }
 0x226   : > { %v1629_v44 = vpop.f32.mrf.mxu2 }
 0x227   : > { %v2045_v16 = vadd.f32 %v2044_v15, %v2014_v8  ;;  %v1630_v19 = vadd.f32 %v1629_v44, %v1517_v13  ;;  %v1742_v29 = vpop.f32.mrf.mxu3  ;;  %v707_v13 = vld [vmem:[#allocation2 + $0x138] sm:$0xff] }
 0x228   : > { %v739_v8 = vld [vmem:[#allocation2 + $0x139] sm:$0xff] }
 0x229   : > { %v1743_v30 = vadd.f32 %v1742_v29, %v1630_v19 }
 0x22a   : > { %v1522_v9 = vpop.f32.mrf.mxu1  ;;  %v1861_v6 = vpop.f32.mrf.mxu0 }
 0x22b   : > { %v1856_v55 = vadd.f32 %v1855_v21, %v1743_v30  ;;  %1679 = vmatmul.f32.gmra.mxu2 %v705_v5  ;;  %v771_v21 = vld [vmem:[#allocation2 + $0x13a] sm:$0xff]  ;;  %v1523_v56 = vadd.f32 %v1522_v9, %v3133_v38 }
 0x22c   : > { %1792 = vmatmul.f32.gmra.mxu3 %v737_v48 }
 0x22d   : > { %1945 = vst [vmem:[%s3278_s20 + $0x18] sm:$0xff] %v1856_v55  ;;  %v1976_v27 = vadd.f32 %v1975_v10, %v1856_v55  ;;  %v2015_v58 = vmul.f32 %v1856_v55, %v1856_v55  ;;  %1569 = vmatmul.f32.gmra.mxu1 %v768_v62  ;;  %1908 = vmatmul.f32.gmra.mxu0 %v770_v33  ;;  %v708_v55 = vld [vmem:[#allocation2 + $0x140] sm:$0xff] }
 0x22e   : > { %v1632_v31 = vpop.f32.mrf.mxu2 }
 0x22f   : > { %v2046_v53 = vadd.f32 %v2045_v16, %v2015_v58  ;;  %v1633_v20 = vadd.f32 %v1632_v31, %v1520_v17  ;;  %v1745_v26 = vpop.f32.mrf.mxu3 }
 0x231   : > { %v1746_v41 = vadd.f32 %v1745_v26, %v1633_v20 }
 0x232   : > { %v1525_v15 = vpop.f32.mrf.mxu1  ;;  %v1864_v47 = vpop.f32.mrf.mxu0 }
 0x233   : > { %v1859_v35 = vadd.f32 %v1858_v1, %v1746_v41  ;;  %1682 = vmatmul.f32.gmra.mxu2 %v706_v0  ;;  %v772_v1 = vld [vmem:[#allocation2 + $0x142] sm:$0xff]  ;;  %v1526_v38 = vadd.f32 %v1525_v15, %v3146_v46  ;;  %v709_v15 = vld [vmem:[#allocation2 + $0x150] sm:$0xff] }
 0x234   : > { %1795 = vmatmul.f32.gmra.mxu3 %v738_v12 }
 0x235   : > { %1946 = vst [vmem:[%s3278_s20 + $0x20] sm:$0xff] %v1859_v35  ;;  %v1977_v4 = vadd.f32 %v1976_v27, %v1859_v35  ;;  %v2016_v62 = vmul.f32 %v1859_v35, %v1859_v35  ;;  %1572 = vmatmul.f32.gmra.mxu1 %v769_v32  ;;  %1911 = vmatmul.f32.gmra.mxu0 %v771_v21  ;;  %v740_v27 = vld [vmem:[#allocation2 + $0x141] sm:$0xff] }
 0x236   : > { %v1635_v54 = vpop.f32.mrf.mxu2 }
 0x237   : > { %v2047_v50 = vadd.f32 %v2046_v53, %v2016_v62  ;;  %v1636_v51 = vadd.f32 %v1635_v54, %v1523_v56  ;;  %v1748_v14 = vpop.f32.mrf.mxu3  ;;  %v741_v56 = vld [vmem:[#allocation2 + $0x151] sm:$0xff] }
 0x239   : > { %v1749_v10 = vadd.f32 %v1748_v14, %v1636_v51 }
 0x23a   : > { %v1528_v44 = vpop.f32.mrf.mxu1  ;;  %v1867_v16 = vpop.f32.mrf.mxu0 }
 0x23b   : > { %v1862_v19 = vadd.f32 %v1861_v6, %v1749_v10  ;;  %1685 = vmatmul.f32.gmra.mxu2 %v707_v13  ;;  %v773_v6 = vld [vmem:[#allocation2 + $0x152] sm:$0xff]  ;;  %v1529_v46 = vadd.f32 %v1528_v44, %v3152_v60 }
 0x23c   : > { %1798 = vmatmul.f32.gmra.mxu3 %v739_v8  ;;  %v710_v8 = vld [vmem:[#allocation2 + $0x158] sm:$0xff] }
 0x23d   : > { %1947 = vst [vmem:[%s3278_s20 + $0x28] sm:$0xff] %v1862_v19  ;;  %v1978_v29 = vadd.f32 %v1977_v4, %v1862_v19  ;;  %v2017_v32 = vmul.f32 %v1862_v19, %v1862_v19  ;;  %1575 = vmatmul.f32.gmra.mxu1 %v770_v33  ;;  %1914 = vmatmul.f32.gmra.mxu0 %v772_v1  ;;  %v742_v19 = vld [vmem:[#allocation2 + $0x159] sm:$0xff] }
 0x23e   : > { %v1638_v5 = vpop.f32.mrf.mxu2 }
 0x23f   : > { %v2048_v30 = vadd.f32 %v2047_v50, %v2017_v32  ;;  %v1639_v48 = vadd.f32 %v1638_v5, %v1526_v38  ;;  %v1751_v9 = vpop.f32.mrf.mxu3 }
 0x241   : > { %v1752_v17 = vadd.f32 %v1751_v9, %v1639_v48 }
 0x242   : > { %v1531_v58 = vpop.f32.mrf.mxu1  ;;  %v1870_v31 = vpop.f32.mrf.mxu0 }
 0x243   : > { %v1865_v53 = vadd.f32 %v1864_v47, %v1752_v17  ;;  %1688 = vmatmul.f32.gmra.mxu2 %v708_v55  ;;  %v774_v47 = vld [vmem:[#allocation2 + $0x15a] sm:$0xff]  ;;  %v1532_v60 = vadd.f32 %v1531_v58, %v3173_v7  ;;  %v711_v17 = vld [vmem:[#allocation2 + $0x168] sm:$0xff] }
 0x244   : > { %1801 = vmatmul.f32.gmra.mxu3 %v740_v27  ;;  %v743_v58 = vld [vmem:[#allocation2 + $0x169] sm:$0xff] }
 0x245   : > { %1948 = vst [vmem:[%s3278_s20 + $0x30] sm:$0xff] %v1865_v53  ;;  %v1979_v20 = vadd.f32 %v1978_v29, %v1865_v53  ;;  %v2018_v33 = vmul.f32 %v1865_v53, %v1865_v53  ;;  %1578 = vmatmul.f32.gmra.mxu1 %v771_v21  ;;  %1917 = vmatmul.f32.gmra.mxu0 %v773_v6 }
 0x246   : > { %v1641_v26 = vpop.f32.mrf.mxu2 }
 0x247   : > { %v2049_v0 = vadd.f32 %v2048_v30, %v2018_v33  ;;  %v1642_v41 = vadd.f32 %v1641_v26, %v1529_v46  ;;  %v1754_v12 = vpop.f32.mrf.mxu3 }
 0x249   : > { %v1755_v35 = vadd.f32 %v1754_v12, %v1642_v41 }
 0x24a   : > { %v1534_v4 = vpop.f32.mrf.mxu1  ;;  %v1873_v62 = vpop.f32.mrf.mxu0 }
 0x24b   : > { %v1868_v54 = vadd.f32 %v1867_v16, %v1755_v35  ;;  %1691 = vmatmul.f32.gmra.mxu2 %v709_v15  ;;  %v775_v16 = vld [vmem:[#allocation2 + $0x16a] sm:$0xff]  ;;  %v1535_v7 = vadd.f32 %v1534_v4, %v3185_v22 }
 0x24c   : > { %1804 = vmatmul.f32.gmra.mxu3 %v741_v56  ;;  %v712_v15 = vld [vmem:[#allocation2 + $0x170] sm:$0xff] }
 0x24d   : > { %1949 = vst [vmem:[%s3278_s20 + $0x38] sm:$0xff] %v1868_v54  ;;  %v1980_v50 = vadd.f32 %v1979_v20, %v1868_v54  ;;  %v2019_v21 = vmul.f32 %v1868_v54, %v1868_v54  ;;  %1581 = vmatmul.f32.gmra.mxu1 %v772_v1  ;;  %1920 = vmatmul.f32.gmra.mxu0 %v774_v47  ;;  %v744_v56 = vld [vmem:[#allocation2 + $0x171] sm:$0xff] }
 0x24e   : > { %v1644_v51 = vpop.f32.mrf.mxu2 }
 0x24f   : > { %v2050_v14 = vadd.f32 %v2049_v0, %v2019_v21  ;;  %v1645_v13 = vadd.f32 %v1644_v51, %v1532_v60  ;;  %v1757_v10 = vpop.f32.mrf.mxu3 }
 0x251   : > { %v1758_v44 = vadd.f32 %v1757_v10, %v1645_v13  ;;  %v713_v10 = vld [vmem:[#allocation2 + $0x180] sm:$0xff] }
 0x252   : > { %v1537_v38 = vpop.f32.mrf.mxu1  ;;  %v1876_v29 = vpop.f32.mrf.mxu0 }
 0x253   : > { %v1871_v32 = vadd.f32 %v1870_v31, %v1758_v44  ;;  %1694 = vmatmul.f32.gmra.mxu2 %v710_v8  ;;  %v776_v31 = vld [vmem:[#allocation2 + $0x172] sm:$0xff]  ;;  %v1538_v22 = vadd.f32 %v1537_v38, %v3200_v34  ;;  %v745_v44 = vld [vmem:[#allocation2 + $0x181] sm:$0xff] }
 0x254   : > { %1807 = vmatmul.f32.gmra.mxu3 %v742_v19 }
 0x255   : > { %1950 = vst [vmem:[%s3278_s20 + $0x40] sm:$0xff] %v1871_v32  ;;  %v1981_v5 = vadd.f32 %v1980_v50, %v1871_v32  ;;  %v2020_v1 = vmul.f32 %v1871_v32, %v1871_v32  ;;  %1584 = vmatmul.f32.gmra.mxu1 %v773_v6  ;;  %1923 = vmatmul.f32.gmra.mxu0 %v775_v16 }
 0x256   : > { %v1647_v30 = vpop.f32.mrf.mxu2 }
 0x257   : > { %v2051_v48 = vadd.f32 %v2050_v14, %v2020_v1  ;;  %v1648_v9 = vadd.f32 %v1647_v30, %v1535_v7  ;;  %v1760_v55 = vpop.f32.mrf.mxu3 }
 0x259   : > { %v1761_v27 = vadd.f32 %v1760_v55, %v1648_v9  ;;  %v714_v9 = vld [vmem:[#allocation2 + $0x188] sm:$0xff] }
 0x25a   : > { %v1540_v53 = vpop.f32.mrf.mxu1  ;;  %v1879_v46 = vpop.f32.mrf.mxu0 }
 0x25b   : > { %v1874_v20 = vadd.f32 %v1873_v62, %v1761_v27  ;;  %1697 = vmatmul.f32.gmra.mxu2 %v711_v17  ;;  %v777_v62 = vld [vmem:[#allocation2 + $0x182] sm:$0xff]  ;;  %v1541_v34 = vadd.f32 %v1540_v53, %v3206_v42  ;;  %v779_v53 = vld [vmem:[#allocation2 + $0x19a] sm:$0xff] }
 0x25c   : > { %1810 = vmatmul.f32.gmra.mxu3 %v743_v58  ;;  %v746_v17 = vld [vmem:[#allocation2 + $0x189] sm:$0xff] }
 0x25d   : > { %1951 = vst [vmem:[%s3278_s20 + $0x48] sm:$0xff] %v1874_v20  ;;  %v1982_v33 = vadd.f32 %v1981_v5, %v1874_v20  ;;  %v2021_v6 = vmul.f32 %v1874_v20, %v1874_v20  ;;  %1587 = vmatmul.f32.gmra.mxu1 %v774_v47  ;;  %1926 = vmatmul.f32.gmra.mxu0 %v776_v31 }
 0x25e   : > { %v1650_v26 = vpop.f32.mrf.mxu2 }
 0x25f   : > { %v2052_v0 = vadd.f32 %v2051_v48, %v2021_v6  ;;  %v1651_v41 = vadd.f32 %v1650_v26, %v1538_v22  ;;  %v1763_v12 = vpop.f32.mrf.mxu3 }
 0x261   : > { %v1764_v35 = vadd.f32 %v1763_v12, %v1651_v41  ;;  %v747_v41 = vld [vmem:[#allocation2 + $0x199] sm:$0xff] }
 0x262   : > { %v1543_v4 = vpop.f32.mrf.mxu1  ;;  %v1882_v54 = vpop.f32.mrf.mxu0 }
 0x263   : > { %v1877_v60 = vadd.f32 %v1876_v29, %v1764_v35  ;;  %1700 = vmatmul.f32.gmra.mxu2 %v712_v15  ;;  %v778_v29 = vld [vmem:[#allocation2 + $0x18a] sm:$0xff]  ;;  %v1544_v42 = vadd.f32 %v1543_v4, %v3209_v11  ;;  %v780_v35 = vld [vmem:[#allocation2 + $0x1a2] sm:$0xff] }
 0x264   : > { %1813 = vmatmul.f32.gmra.mxu3 %v744_v56  ;;  %v2262_v4 = vld [vmem:[#allocation2] sm:$0xff] }
 0x265   : > { %1952 = vst [vmem:[%s3278_s20 + $0x50] sm:$0xff] %v1877_v60  ;;  %v1983_v50 = vadd.f32 %v1982_v33, %v1877_v60  ;;  %v2022_v47 = vmul.f32 %v1877_v60, %v1877_v60  ;;  %1590 = vmatmul.f32.gmra.mxu1 %v775_v16  ;;  %1929 = vmatmul.f32.gmra.mxu0 %v777_v62 }
 0x266   : > { %v1653_v21 = vpop.f32.mrf.mxu2 }
 0x267   : > { %v2053_v51 = vadd.f32 %v2052_v0, %v2022_v47  ;;  %v1654_v14 = vadd.f32 %v1653_v21, %v1541_v34  ;;  %v1766_v13 = vpop.f32.mrf.mxu3 }
 0x269   : > { %v1767_v8 = vadd.f32 %v1766_v13, %v1654_v14 }
 0x26a   : > { %v1546_v19 = vpop.f32.mrf.mxu1  ;;  %v1885_v38 = vpop.f32.mrf.mxu0 }
 0x26b   : > { %v1880_v32 = vadd.f32 %v1879_v46, %v1767_v8  ;;  %1703 = vmatmul.f32.gmra.mxu2 %v713_v10  ;;  %v1547_v11 = vadd.f32 %v1546_v19, %v3214_v25 }
 0x26c   : > { %1816 = vmatmul.f32.gmra.mxu3 %v745_v44 }
 0x26d   : > { %1953 = vst [vmem:[%s3278_s20 + $0x58] sm:$0xff] %v1880_v32  ;;  %v1984_v7 = vadd.f32 %v1983_v50, %v1880_v32  ;;  %v2023_v16 = vmul.f32 %v1880_v32, %v1880_v32  ;;  %1593 = vmatmul.f32.gmra.mxu1 %v776_v31  ;;  %1932 = vmatmul.f32.gmra.mxu0 %v778_v29 }
 0x26e   : > { %v1656_v5 = vpop.f32.mrf.mxu2 }
 0x26f   : > { %v2054_v1 = vadd.f32 %v2053_v51, %v2023_v16  ;;  %v1657_v30 = vadd.f32 %v1656_v5, %v1544_v42  ;;  %v1769_v48 = vpop.f32.mrf.mxu3  ;;  %v748_v51 = vld [vmem:[#allocation2 + $0x1a1] sm:$0xff] }
 0x271   : > { %v1770_v55 = vadd.f32 %v1769_v48, %v1657_v30 }
 0x272   : > { %v1549_v27 = vpop.f32.mrf.mxu1  ;;  %v1888_v58 = vpop.f32.mrf.mxu0 }
 0x273   : > { %v1883_v46 = vadd.f32 %v1882_v54, %v1770_v55  ;;  %1706 = vmatmul.f32.gmra.mxu2 %v714_v9  ;;  %v1550_v25 = vadd.f32 %v1549_v27, %v3219_v37 }
 0x274   : > { %1819 = vmatmul.f32.gmra.mxu3 %v746_v17 }
 0x275   : > { %1954 = vst [vmem:[%s3278_s20 + $0x60] sm:$0xff] %v1883_v46  ;;  %v1985_v20 = vadd.f32 %v1984_v7, %v1883_v46  ;;  %v2024_v31 = vmul.f32 %v1883_v46, %v1883_v46  ;;  %1596 = vmatmul.f32.gmra.mxu1 %v777_v62  ;;  %1935 = vmatmul.f32.gmra.mxu0 %v779_v53 }
 0x276   : > { %v1659_v22 = vpop.f32.mrf.mxu2 }
 0x277   : > { %v2055_v33 = vadd.f32 %v2054_v1, %v2024_v31  ;;  %v1660_v6 = vadd.f32 %v1659_v22, %v1547_v11  ;;  %v1772_v26 = vpop.f32.mrf.mxu3 }
 0x279   : > { %v1773_v0 = vadd.f32 %v1772_v26, %v1660_v6 }
 0x27a   : > { %v1552_v12 = vpop.f32.mrf.mxu1  ;;  %v1891_v15 = vpop.f32.mrf.mxu0 }
 0x27b   : > { %v1886_v56 = vadd.f32 %v1885_v38, %v1773_v0  ;;  %1709 = vmatmul.f32.gmra.mxu2 %v2262_v4  ;;  %v1553_v37 = vadd.f32 %v1552_v12, %v3222_v24 }
 0x27c   : > { %1822 = vmatmul.f32.gmra.mxu3 %v747_v41 }
 0x27d   : > { %1955 = vst [vmem:[%s3278_s20 + $0x68] sm:$0xff] %v1886_v56  ;;  %v1986_v54 = vadd.f32 %v1985_v20, %v1886_v56  ;;  %v2025_v62 = vmul.f32 %v1886_v56, %v1886_v56  ;;  %1599 = vmatmul.f32.gmra.mxu1 %v778_v29  ;;  %1938 = vmatmul.f32.gmra.mxu0 %v780_v35 }
 0x27e   : > { %v1662_v60 = vpop.f32.mrf.mxu2 }
 0x27f   : > { %v2056_v34 = vadd.f32 %v2055_v33, %v2025_v62  ;;  %v1663_v50 = vadd.f32 %v1662_v60, %v1550_v25  ;;  %v1775_v47 = vpop.f32.mrf.mxu3 }
 0x281   : > { %v1776_v21 = vadd.f32 %v1775_v47, %v1663_v50 }
 0x282   : > { %v1555_v14 = vpop.f32.mrf.mxu1  ;;  %v1894_v13 = vpop.f32.mrf.mxu0 }
 0x283   : > { %v1889_v10 = vadd.f32 %v1888_v58, %v1776_v21  ;;  %1712 = vmatmul.f32.gmra.mxu2 %v2262_v4  ;;  %v1556_v1 = vadd.f32 %v1555_v14, %v3225_v59 }
 0x284   : > { %1825 = vmatmul.f32.gmra.mxu3 %v748_v51 }
 0x285   : > { %1956 = vst [vmem:[%s3278_s20 + $0x70] sm:$0xff] %v1889_v10  ;;  %v1987_v8 = vadd.f32 %v1986_v54, %v1889_v10  ;;  %v2026_v44 = vmul.f32 %v1889_v10, %v1889_v10 }
 0x286   : > { %v1665_v19 = vpop.f32.mrf.mxu2 }
 0x287   : > { %v2057_v38 = vadd.f32 %v2056_v34, %v2026_v44  ;;  %v1666_v29 = vadd.f32 %v1665_v19, %v1553_v37  ;;  %v1778_v32 = vpop.f32.mrf.mxu3 }
 0x289   : > { %v1779_v42 = vadd.f32 %v1778_v32, %v1666_v29 }
 0x28a   : > { %v1558_v7 = vpop.f32.mrf.mxu1  ;;  %v1897_v16 = vpop.f32.mrf.mxu0 }
 0x28b   : > { %v1892_v5 = vadd.f32 %v1891_v15, %v1779_v42  ;;  %v1559_v11 = vadd.f32 %v1558_v7, %v3228_v49 }
 0x28d   : > { %1957 = vst [vmem:[%s3278_s20 + $0x78] sm:$0xff] %v1892_v5  ;;  %v1988_v30 = vadd.f32 %v1987_v8, %v1892_v5  ;;  %v2027_v48 = vmul.f32 %v1892_v5, %v1892_v5 }
 0x28e   : > { %v1668_v9 = vpop.f32.mrf.mxu2 }
 0x28f   : > { %v2058_v55 = vadd.f32 %v2057_v38, %v2027_v48  ;;  %v1669_v24 = vadd.f32 %v1668_v9, %v1556_v1  ;;  %v1781_v17 = vpop.f32.mrf.mxu3 }
 0x291   : > { %v1782_v27 = vadd.f32 %v1781_v17, %v1669_v24 }
 0x292   : > { %v1561_v58 = vpop.f32.mrf.mxu1  ;;  %v1900_v53 = vpop.f32.mrf.mxu0 }
 0x293   : > { %v1895_v46 = vadd.f32 %v1894_v13, %v1782_v27  ;;  %v1562_v15 = vadd.f32 %v1561_v58, %v3231_v2 }
 0x295   : > { %1958 = vst [vmem:[%s3278_s20 + $0x80] sm:$0xff] %v1895_v46  ;;  %v1989_v20 = vadd.f32 %v1988_v30, %v1895_v46  ;;  %v2028_v31 = vmul.f32 %v1895_v46, %v1895_v46 }
 0x296   : > { %v1671_v22 = vpop.f32.mrf.mxu2 }
 0x297   : > { %v2059_v33 = vadd.f32 %v2058_v55, %v2028_v31  ;;  %v1672_v59 = vadd.f32 %v1671_v22, %v1559_v11  ;;  %v1784_v6 = vpop.f32.mrf.mxu3 }
 0x299   : > { %v1785_v26 = vadd.f32 %v1784_v6, %v1672_v59 }
 0x29a   : > { %v1564_v0 = vpop.f32.mrf.mxu1  ;;  %v1903_v41 = vpop.f32.mrf.mxu0 }
 0x29b   : > { %v1898_v12 = vadd.f32 %v1897_v16, %v1785_v26  ;;  %v1565_v47 = vadd.f32 %v1564_v0, %v3234_v63 }
 0x29d   : > { %1959 = vst [vmem:[%s3278_s20 + $0x88] sm:$0xff] %v1898_v12  ;;  %v1990_v35 = vadd.f32 %v1989_v20, %v1898_v12  ;;  %v2029_v56 = vmul.f32 %v1898_v12, %v1898_v12 }
 0x29e   : > { %v1674_v4 = vpop.f32.mrf.mxu2 }
 0x29f   : > { %v2060_v25 = vadd.f32 %v2059_v33, %v2029_v56  ;;  %v1675_v49 = vadd.f32 %v1674_v4, %v1562_v15  ;;  %v1787_v54 = vpop.f32.mrf.mxu3 }
 0x2a1   : > { %v1788_v62 = vadd.f32 %v1787_v54, %v1675_v49 }
 0x2a2   : > { %v1567_v60 = vpop.f32.mrf.mxu1  ;;  %v1906_v34 = vpop.f32.mrf.mxu0 }
 0x2a3   : > { %v1901_v50 = vadd.f32 %v1900_v53, %v1788_v62  ;;  %v1568_v38 = vadd.f32 %v1567_v60, %v3237_v57 }
 0x2a5   : > { %1960 = vst [vmem:[%s3278_s20 + $0x90] sm:$0xff] %v1901_v50  ;;  %v1991_v21 = vadd.f32 %v1990_v35, %v1901_v50  ;;  %v2030_v51 = vmul.f32 %v1901_v50, %v1901_v50 }
 0x2a6   : > { %v1677_v14 = vpop.f32.mrf.mxu2 }
 0x2a7   : > { %v2061_v13 = vadd.f32 %v2060_v25, %v2030_v51  ;;  %v1678_v2 = vadd.f32 %v1677_v14, %v1565_v47  ;;  %v1790_v10 = vpop.f32.mrf.mxu3 }
 0x2a9   : > { %v1791_v37 = vadd.f32 %v1790_v10, %v1678_v2 }
 0x2aa   : > { %v1570_v8 = vpop.f32.mrf.mxu1  ;;  %v1909_v44 = vpop.f32.mrf.mxu0 }
 0x2ab   : > { %v1904_v19 = vadd.f32 %v1903_v41, %v1791_v37  ;;  %v1571_v9 = vadd.f32 %v1570_v8, %v3240_v43 }
 0x2ad   : > { %1961 = vst [vmem:[%s3278_s20 + $0x98] sm:$0xff] %v1904_v19  ;;  %v1992_v29 = vadd.f32 %v1991_v21, %v1904_v19  ;;  %v2031_v32 = vmul.f32 %v1904_v19, %v1904_v19 }
 0x2ae   : > { %v1680_v42 = vpop.f32.mrf.mxu2 }
 0x2af   : > { %v2062_v7 = vadd.f32 %v2061_v13, %v2031_v32  ;;  %v1681_v63 = vadd.f32 %v1680_v42, %v1568_v38  ;;  %v1793_v16 = vpop.f32.mrf.mxu3 }
 0x2b1   : > { %v1794_v5 = vadd.f32 %v1793_v16, %v1681_v63 }
 0x2b2   : > { %v1573_v1 = vpop.f32.mrf.mxu1  ;;  %v1912_v30 = vpop.f32.mrf.mxu0 }
 0x2b3   : > { %v1907_v48 = vadd.f32 %v1906_v34, %v1794_v5  ;;  %v1574_v31 = vadd.f32 %v1573_v1, %v3243_v3 }
 0x2b5   : > { %1962 = vst [vmem:[%s3278_s20 + $0xa0] sm:$0xff] %v1907_v48  ;;  %v1993_v55 = vadd.f32 %v1992_v29, %v1907_v48  ;;  %v2032_v24 = vmul.f32 %v1907_v48, %v1907_v48 }
 0x2b6   : > { %v1683_v17 = vpop.f32.mrf.mxu2 }
 0x2b7   : > { %v2063_v27 = vadd.f32 %v2062_v7, %v2032_v24  ;;  %v1684_v57 = vadd.f32 %v1683_v17, %v1571_v9  ;;  %v1796_v58 = vpop.f32.mrf.mxu3 }
 0x2b9   : > { %v1797_v53 = vadd.f32 %v1796_v58, %v1684_v57 }
 0x2ba   : > { %v1576_v46 = vpop.f32.mrf.mxu1  ;;  %v1915_v11 = vpop.f32.mrf.mxu0 }
 0x2bb   : > { %v1910_v20 = vadd.f32 %v1909_v44, %v1797_v53  ;;  %v1577_v35 = vadd.f32 %v1576_v46, %v3246_v28 }
 0x2bd   : > { %1963 = vst [vmem:[%s3278_s20 + $0xa8] sm:$0xff] %v1910_v20  ;;  %v1994_v22 = vadd.f32 %v1993_v55, %v1910_v20  ;;  %v2033_v33 = vmul.f32 %v1910_v20, %v1910_v20 }
 0x2be   : > { %v1686_v59 = vpop.f32.mrf.mxu2 }
 0x2bf   : > { %v2064_v6 = vadd.f32 %v2063_v27, %v2033_v33  ;;  %v1687_v43 = vadd.f32 %v1686_v59, %v1574_v31  ;;  %v1799_v26 = vpop.f32.mrf.mxu3 }
 0x2c1   : > { %v1800_v0 = vadd.f32 %v1799_v26, %v1687_v43 }
 0x2c2   : > { %v1579_v41 = vpop.f32.mrf.mxu1  ;;  %v1918_v12 = vpop.f32.mrf.mxu0 }
 0x2c3   : > { %v1913_v15 = vadd.f32 %v1912_v30, %v1800_v0  ;;  %v1580_v47 = vadd.f32 %v1579_v41, %v3249_v40 }
 0x2c5   : > { %1964 = vst [vmem:[%s3278_s20 + $0xb0] sm:$0xff] %v1913_v15  ;;  %v1995_v56 = vadd.f32 %v1994_v22, %v1913_v15  ;;  %v2034_v4 = vmul.f32 %v1913_v15, %v1913_v15 }
 0x2c6   : > { %v1689_v25 = vpop.f32.mrf.mxu2 }
 0x2c7   : > { %v2065_v49 = vadd.f32 %v2064_v6, %v2034_v4  ;;  %v1690_v3 = vadd.f32 %v1689_v25, %v1577_v35  ;;  %v1802_v54 = vpop.f32.mrf.mxu3 }
 0x2c9   : > { %v1803_v62 = vadd.f32 %v1802_v54, %v1690_v3 }
 0x2ca   : > { %v1582_v60 = vpop.f32.mrf.mxu1  ;;  %v1921_v50 = vpop.f32.mrf.mxu0 }
 0x2cb   : > { %v1916_v34 = vadd.f32 %v1915_v11, %v1803_v62  ;;  %v1583_v44 = vadd.f32 %v1582_v60, %v3252_v61 }
 0x2cd   : > { %1965 = vst [vmem:[%s3278_s20 + $0xb8] sm:$0xff] %v1916_v34  ;;  %v1996_v21 = vadd.f32 %v1995_v56, %v1916_v34  ;;  %v2035_v51 = vmul.f32 %v1916_v34, %v1916_v34 }
 0x2ce   : > { %v1692_v14 = vpop.f32.mrf.mxu2 }
 0x2cf   : > { %v2066_v13 = vadd.f32 %v2065_v49, %v2035_v51  ;;  %v1693_v28 = vadd.f32 %v1692_v14, %v1580_v47  ;;  %v1805_v2 = vpop.f32.mrf.mxu3 }
 0x2d1   : > { %v1806_v10 = vadd.f32 %v1805_v2, %v1693_v28 }
 0x2d2   : > { %v1585_v37 = vpop.f32.mrf.mxu1  ;;  %v1924_v32 = vpop.f32.mrf.mxu0 }
 0x2d3   : > { %v1919_v8 = vadd.f32 %v1918_v12, %v1806_v10  ;;  %v1586_v1 = vadd.f32 %v1585_v37, %v3255_v39 }
 0x2d5   : > { %1966 = vst [vmem:[%s3278_s20 + $0xc0] sm:$0xff] %v1919_v8  ;;  %v1997_v19 = vadd.f32 %v1996_v21, %v1919_v8  ;;  %v2036_v38 = vmul.f32 %v1919_v8, %v1919_v8 }
 0x2d6   : > { %v1695_v29 = vpop.f32.mrf.mxu2 }
 0x2d7   : > { %v2067_v42 = vadd.f32 %v2066_v13, %v2036_v38  ;;  %v1696_v40 = vadd.f32 %v1695_v29, %v1583_v44  ;;  %v1808_v7 = vpop.f32.mrf.mxu3 }
 0x2d9   : > { %v1809_v63 = vadd.f32 %v1808_v7, %v1696_v40 }
 0x2da   : > { %v1588_v16 = vpop.f32.mrf.mxu1  ;;  %v1927_v17 = vpop.f32.mrf.mxu0 }
 0x2db   : > { %v1922_v5 = vadd.f32 %v1921_v50, %v1809_v63  ;;  %v1589_v53 = vadd.f32 %v1588_v16, %v3258_v18 }
 0x2dd   : > { %1967 = vst [vmem:[%s3278_s20 + $0xc8] sm:$0xff] %v1922_v5  ;;  %v1998_v30 = vadd.f32 %v1997_v19, %v1922_v5  ;;  %v2037_v48 = vmul.f32 %v1922_v5, %v1922_v5 }
 0x2de   : > { %v1698_v9 = vpop.f32.mrf.mxu2 }
 0x2df   : > { %v2068_v55 = vadd.f32 %v2067_v42, %v2037_v48  ;;  %v1699_v61 = vadd.f32 %v1698_v9, %v1586_v1  ;;  %v1811_v24 = vpop.f32.mrf.mxu3 }
 0x2e1   : > { %v1812_v27 = vadd.f32 %v1811_v24, %v1699_v61 }
 0x2e2   : > { %v1591_v58 = vpop.f32.mrf.mxu1  ;;  %v1930_v59 = vpop.f32.mrf.mxu0 }
 0x2e3   : > { %v1925_v57 = vadd.f32 %v1924_v32, %v1812_v27  ;;  %v1592_v43 = vadd.f32 %v1591_v58, %v3261_v52 }
 0x2e5   : > { %1968 = vst [vmem:[%s3278_s20 + $0xd0] sm:$0xff] %v1925_v57  ;;  %v1999_v46 = vadd.f32 %v1998_v30, %v1925_v57  ;;  %v2038_v11 = vmul.f32 %v1925_v57, %v1925_v57 }
 0x2e6   : > { %v1701_v20 = vpop.f32.mrf.mxu2 }
 0x2e7   : > { %v2069_v31 = vadd.f32 %v2068_v55, %v2038_v11  ;;  %v1702_v39 = vadd.f32 %v1701_v20, %v1589_v53  ;;  %v1814_v22 = vpop.f32.mrf.mxu3 }
 0x2e9   : > { %v1815_v33 = vadd.f32 %v1814_v22, %v1702_v39 }
 0x2ea   : > { %v1594_v12 = vpop.f32.mrf.mxu1  ;;  %v1933_v25 = vpop.f32.mrf.mxu0 }
 0x2eb   : > { %v1928_v6 = vadd.f32 %v1927_v17, %v1815_v33  ;;  %v1595_v49 = vadd.f32 %v1594_v12, %v3264_v36 }
 0x2ed   : > { %1969 = vst [vmem:[%s3278_s20 + $0xd8] sm:$0xff] %v1928_v6  ;;  %v2000_v26 = vadd.f32 %v1999_v46, %v1928_v6  ;;  %v2039_v0 = vmul.f32 %v1928_v6, %v1928_v6 }
 0x2ee   : > { %v1704_v41 = vpop.f32.mrf.mxu2 }
 0x2ef   : > { %v2070_v15 = vadd.f32 %v2069_v31, %v2039_v0  ;;  %v1705_v18 = vadd.f32 %v1704_v41, %v1592_v43  ;;  %v1817_v35 = vpop.f32.mrf.mxu3 }
 0x2f1   : > { %v1818_v56 = vadd.f32 %v1817_v35, %v1705_v18 }
 0x2f2   : > { %v1597_v50 = vpop.f32.mrf.mxu1  ;;  %v1936_v2 = vpop.f32.mrf.mxu0 }
 0x2f3   : > { %v1931_v4 = vadd.f32 %v1930_v59, %v1818_v56  ;;  %v1598_v51 = vadd.f32 %v1597_v50, %v3267_v23 }
 0x2f5   : > { %1970 = vst [vmem:[%s3278_s20 + $0xe0] sm:$0xff] %v1931_v4  ;;  %v2001_v3 = vadd.f32 %v2000_v26, %v1931_v4  ;;  %v2040_v54 = vmul.f32 %v1931_v4, %v1931_v4 }
 0x2f6   : > { %v1707_v62 = vpop.f32.mrf.mxu2 }
 0x2f7   : > { %v2071_v60 = vadd.f32 %v2070_v15, %v2040_v54  ;;  %v1708_v52 = vadd.f32 %v1707_v62, %v1595_v49  ;;  %v1820_v34 = vpop.f32.mrf.mxu3 }
 0x2f9   : > { %v1821_v47 = vadd.f32 %v1820_v34, %v1708_v52 }
 0x2fa   : > { %v1600_v44 = vpop.f32.mrf.mxu1  ;;  %v1939_v63 = vpop.f32.mrf.mxu0 }
 0x2fb   : > { %v1934_v21 = vadd.f32 %v1933_v25, %v1821_v47  ;;  %v1601_v38 = vadd.f32 %v1600_v44, %v3270_v45 }
 0x2fd   : > { %1971 = vst [vmem:[%s3278_s20 + $0xe8] sm:$0xff] %v1934_v21  ;;  %v2002_v14 = vadd.f32 %v2001_v3, %v1934_v21  ;;  %v2041_v13 = vmul.f32 %v1934_v21, %v1934_v21 }
 0x2fe   : > { %v1710_v28 = vpop.f32.mrf.mxu2 }
 0x2ff   : > { %v2072_v10 = vadd.f32 %v2071_v60, %v2041_v13  ;;  %v1711_v36 = vadd.f32 %v1710_v28, %v1598_v51  ;;  %v1823_v37 = vpop.f32.mrf.mxu3 }
 0x301   : > { %v1824_v8 = vadd.f32 %v1823_v37, %v1711_v36 }
 0x303   : > { %v1937_v19 = vadd.f32 %v1936_v2, %v1824_v8 }
 0x305   : > { %1972 = vst [vmem:[%s3278_s20 + $0xf0] sm:$0xff] %v1937_v19  ;;  %v2003_v29 = vadd.f32 %v2002_v14, %v1937_v19  ;;  %v2042_v32 = vmul.f32 %v1937_v19, %v1937_v19 }
 0x306   : > { %v1713_v42 = vpop.f32.mrf.mxu2 }
 0x307   : > { %v2073_v40 = vadd.f32 %v2072_v10, %v2042_v32  ;;  %v1714_v23 = vadd.f32 %v1713_v42, %v1601_v38  ;;  %v1826_v7 = vpop.f32.mrf.mxu3 }
 0x309   : > { %v1827_v16 = vadd.f32 %v1826_v7, %v1714_v23 }
 0x30b   : > { %v1940_v5 = vadd.f32 %v1939_v63, %v1827_v16 }
 0x30d   : > { %1973 = vst [vmem:[%s3278_s20 + $0xf8] sm:$0xff] %v1940_v5  ;;  %v2004_v1 = vadd.f32 %v2003_v29, %v1940_v5  ;;  %v2043_v30 = vmul.f32 %v1940_v5, %v1940_v5 }
 0x30f   : > { %v2005_v48 = vrot.slane %v2004_v1, 4  ;;  %v2074_v9 = vadd.f32 %v2073_v40, %v2043_v30 }
 0x311   : > { %v2006_v55 = vadd.f32 %v2005_v48, %v2004_v1  ;;  %v2075_v61 = vrot.slane %v2074_v9, 4 }
 0x313   : > { %v2007_v45 = vrot.slane %v2006_v55, 2  ;;  %v2076_v24 = vadd.f32 %v2075_v61, %v2074_v9 }
 0x315   : > { %v2008_v17 = vadd.f32 %v2007_v45, %v2006_v55  ;;  %v2077_v27 = vrot.slane %v2076_v24, 2 }
 0x317   : > { %v2009_v57 = vrot.slane %v2008_v17, 1  ;;  %v2078_v58 = vadd.f32 %v2077_v27, %v2076_v24 }
 0x319   : > { %v2010_v53 = vadd.f32 %v2009_v57, %v2008_v17  ;;  %v2079_v46 = vrot.slane %v2078_v58, 1 }
 0x31b   : > { %2011 = vst [vmem:[%s265_s24] sm:$0x1] %v2010_v53  ;;  %v2080_v11 = vadd.f32 %v2079_v46, %v2078_v58 }
 0x31d   : > { %2081 = vst [vmem:[%s268_s27] sm:$0x1] %v2080_v11 }
 0x31e PF: > { %s17_s21 = sadd.s32 1, %s2269_s21  }
 0x31f   : > { %p14_p4 = scmp.ge.s32.totalorder %s17_s21, 4  }
 0x321   :  { %16 = sbr.rel (!%p14_p4) target bundleno = 1 (0x1), region = 92 }

// kernel: double_conv.3
= control target key start
LH: loop header
LB: loop body
LE: loop exit
PB: predicated region body
PF: predicated region fallthrough
CT: control target
= control target key end

     0   :  { %s3368_s15 = smov 0   ;;  %s4509_s0 = inlined_call_operand.vmem [shape: f32[2,16,16,4], index: 0, kind: input, shape index: {}]   ;;  %s4510_s1 = inlined_call_operand.vmem [shape: f32[36,128], index: 1, kind: input, shape index: {}]   ;;  %s4511_s2 = inlined_call_operand.vmem [shape: f32[2,16,16,128], index: 2, kind: output, shape index: {0}]   ;;  %s4512_s3 = inlined_call_operand.vmem [shape: f32[2,1,128], index: 3, kind: output, shape index: {1}]   ;;  %s4513_s4 = inlined_call_operand.vmem [shape: f32[2,1,128], index: 4, kind: output, shape index: {2}]  }
   0x1 LB: > { %s3012_s16 = sadd.s32 4294967295, %s3340_s15   ;;  %p3016_p0 = scmp.ge.s32.totalorder %s3340_s15, 1  ;;  %s3340_s15 = sphi %s3368_s15, %s15_s15  }
   0x2   : > { %p167_p1 = scmp.lt.s32.totalorder %s3340_s15, 3 }
   0x4   : > { %p168_p2 = pnand %p3016_p0, %p167_p1 }
   0x6   : > { %171 = sbr.rel (%p168_p2) target bundleno = 793 (0x319), region = 28 }
   0xb   : > { %v401_v0 = vld [vmem:[%s4510_s1 + $0x4] sm:$0xf]  ;;  %vm498_vm0 = vcmask 1043456   ;;  %p199_p3 = scmp.lt.s32.totalorder %s3012_s16, 1  ;;  %vm247_vm1 = vcmask 31744   ;;  %v3342_v1 = vmov 0.0  }
   0xc   : > { %3322 = vmatpush.msk.msra.mxu1 %vm498_vm0, %v401_v0  ;;  %3323 = vmatpush.msk.msra.mxu2 %vm498_vm0, %v401_v0  ;;  %261 = vst.msk [vmem:[#allocation2 + $0x60] sm:$0xff] %vm247_vm1, %v3342_v1  ;;  %v859_v4 = vld [vmem:[%s4510_s1 + $0x8] sm:$0xf]  ;;  %v1136_v5 = vld [vmem:[%s4510_s1 + $0xc] sm:$0xf]  ;;  %vm250_vm2 = vcmask 25600  }
   0xd   : > { %s4627_s16 = smov (!%p199_p3, %s3012_s16), 1  ;;  %262 = vst.msk [vmem:[#allocation2 + $0x68] sm:$0xff] %vm247_vm1, %v3342_v1  ;;  %3324 = vmatpush.msk.msra.mxu3 %vm498_vm0, %v401_v0  ;;  %3021 = vmatpush.msk.msra.mxu0 %vm498_vm0, %v401_v0  ;;  %v368_v6 = vld [vmem:[%s4510_s1] sm:$0xf]  ;;  %v1413_v10 = vld [vmem:[%s4510_s1 + $0x10] sm:$0xf] }
   0xe   : > { %248 = vst.msk [vmem:[#allocation2] sm:$0xff] %vm247_vm1, %v3342_v1  ;;  %s3320_s19 = sshll.u32 %s4627_s16, 8  ;;  %3087 = vmatpush.msk.msrb.mxu2 %vm498_vm0, %v859_v4  ;;  %3054 = vmatpush.msk.msrb.mxu1 %vm498_vm0, %v368_v6  ;;  %v1968_v57 = vld [vmem:[%s4510_s1 + $0x18] sm:$0xf]  ;;  %v2245_v58 = vld [vmem:[%s4510_s1 + $0x1c] sm:$0xf]  ;;  %s211_s20 = scalar_lea.vmem %s4512_s3, %s4627_s16 }
   0xf   : > { %249 = vst.msk [vmem:[#allocation2 + $0x8] sm:$0xff] %vm247_vm1, %v3342_v1  ;;  %s3399_s22 = scalar_lea.vmem %s4509_s0, %s3320_s19  ;;  %3120 = vmatpush.msk.msrb.mxu3 %vm498_vm0, %v1136_v5  ;;  %3153 = vmatpush.msk.msrb.mxu0 %vm498_vm0, %v1413_v10  ;;  %v1690_v59 = vld [vmem:[%s4510_s1 + $0x14] sm:$0xf]  ;;  %v2522_v0 = vld [vmem:[%s4510_s1 + $0x20] sm:$0xf]  ;;  %s4351_s17 = scalar_lea.vmem %s4511_s2, %s3320_s19 }
  0x10   : > { %252 = vst.msk [vmem:[#allocation2 + $0x18] sm:$0xff] %vm247_vm1, %v3342_v1  ;;  %v221_v2 = vld [vmem:[%s3399_s22 + $0x30] sm:$0xff]  ;;  %v222_v11 = vld [vmem:[%s3399_s22 + $0x38] sm:$0xff]  ;;  %v223_v18 = vld [vmem:[%s3399_s22 + $0x40] sm:$0xff]  ;;  %s214_s23 = scalar_lea.vmem %s4513_s4, %s4627_s16 }
  0x11   : > { %253 = vst.msk [vmem:[#allocation2 + $0x20] sm:$0xff] %vm247_vm1, %v3342_v1  ;;  %v229_v7 = vld [vmem:[%s3399_s22 + $0x70] sm:$0xff]  ;;  %v230_v16 = vld [vmem:[%s3399_s22 + $0x78] sm:$0xff]  ;;  %v231_v19 = vld [vmem:[%s3399_s22 + $0x80] sm:$0xff] }
  0x12   : > { %310 = vst.msk [vmem:[#allocation2 + $0x61] sm:$0xff] %vm247_vm1, %v221_v2  ;;  %v237_v9 = vld [vmem:[%s3399_s22 + $0xb0] sm:$0xff]  ;;  %v238_v17 = vld [vmem:[%s3399_s22 + $0xb8] sm:$0xff]  ;;  %v239_v20 = vld [vmem:[%s3399_s22 + $0xc0] sm:$0xff] }
  0x13   : > { %255 = vst.msk [vmem:[#allocation2 + $0x30] sm:$0xff] %vm247_vm1, %v3342_v1  ;;  %v224_v21 = vld [vmem:[%s3399_s22 + $0x48] sm:$0xff]  ;;  %v215_v23 = vld [vmem:[%s3399_s22] sm:$0xff]  ;;  %v225_v25 = vld [vmem:[%s3399_s22 + $0x50] sm:$0xff] }
  0x14   : > { %256 = vst.msk [vmem:[#allocation2 + $0x38] sm:$0xff] %vm247_vm1, %v3342_v1  ;;  %v232_v22 = vld [vmem:[%s3399_s22 + $0x88] sm:$0xff]  ;;  %v233_v27 = vld [vmem:[%s3399_s22 + $0x90] sm:$0xff]  ;;  %v226_v32 = vld [vmem:[%s3399_s22 + $0x58] sm:$0xff] }
  0x15   : > { %258 = vst.msk [vmem:[#allocation2 + $0x48] sm:$0xff] %vm247_vm1, %v3342_v1  ;;  %v240_v24 = vld [vmem:[%s3399_s22 + $0xc8] sm:$0xff]  ;;  %v241_v31 = vld [vmem:[%s3399_s22 + $0xd0] sm:$0xff]  ;;  %v234_v33 = vld [vmem:[%s3399_s22 + $0x98] sm:$0xff] }
  0x16   : > { %259 = vst.msk [vmem:[#allocation2 + $0x50] sm:$0xff] %vm247_vm1, %v3342_v1  ;;  %v369_v8 = vld [vmem:[#allocation2 + $0x1] sm:$0xff]  ;;  %v217_v34 = vld [vmem:[%s3399_s22 + $0x10] sm:$0xff]  ;;  %v242_v36 = vld [vmem:[%s3399_s22 + $0xd8] sm:$0xff] }
  0x17   : > { %264 = vst.msk [vmem:[#allocation2 + $0x78] sm:$0xff] %vm247_vm1, %v3342_v1  ;;  %3022 = vmatmul.msk.f32.vlgmr.msra.gmra.mxu0 %vm247_vm1, %v369_v8  ;;  %v216_v29 = vld [vmem:[%s3399_s22 + $0x8] sm:$0xff]  ;;  %v227_v39 = vld [vmem:[%s3399_s22 + $0x60] sm:$0xff]  ;;  %v218_v42 = vld [vmem:[%s3399_s22 + $0x18] sm:$0xff] }
  0x18   : > { %265 = vst.msk [vmem:[#allocation2 + $0x80] sm:$0xff] %vm247_vm1, %v3342_v1  ;;  %v235_v41 = vld [vmem:[%s3399_s22 + $0xa0] sm:$0xff]  ;;  %v228_v44 = vld [vmem:[%s3399_s22 + $0x68] sm:$0xff]  ;;  %3285 = vmatpush.msk.msra.mxu0 %vm498_vm0, %v2522_v0 }
  0x19   : > { %v3419_v3 = vld [vmem:[#allocation2 + $0x61] sm:$0xff]  ;;  %267 = vst.msk [vmem:[#allocation2 + $0x90] sm:$0xff] %vm247_vm1, %v3342_v1 }
  0x1a   : > { %3030 = vmatmul.msk.f32.vlgmr.msra.gmra.mxu1 %vm247_vm1, %v3419_v3  ;;  %268 = vst.msk [vmem:[#allocation2 + $0x98] sm:$0xff] %vm247_vm1, %v3342_v1  ;;  %v243_v43 = vld [vmem:[%s3399_s22 + $0xe0] sm:$0xff]  ;;  %v236_v45 = vld [vmem:[%s3399_s22 + $0xa8] sm:$0xff] }
  0x1b   : > { %270 = vst.msk [vmem:[#allocation2 + $0xa8] sm:$0xff] %vm247_vm1, %v3342_v1  ;;  %v219_v47 = vld [vmem:[%s3399_s22 + $0x20] sm:$0xff]  ;;  %v244_v49 = vld [vmem:[%s3399_s22 + $0xe8] sm:$0xff]  ;;  %3186 = vmatpush.msk.msra.mxu1 %vm498_vm0, %v1690_v59 }
  0x1c   : > { %271 = vst.msk [vmem:[#allocation2 + $0xb0] sm:$0xff] %vm247_vm1, %v3342_v1  ;;  %v220_v52 = vld [vmem:[%s3399_s22 + $0x28] sm:$0xff] }
  0x1d   : > { %273 = vst.msk [vmem:[#allocation2 + $0xc0] sm:$0xff] %vm247_vm1, %v3342_v1  ;;  %v827_v10 = vld [vmem:[#allocation2 + $0x2] sm:$0xff] }
  0x1e   : > { %274 = vst.msk [vmem:[#allocation2 + $0xc8] sm:$0xff] %vm247_vm1, %v3342_v1 }
  0x1f   : > { %276 = vst.msk [vmem:[#allocation2 + $0xd8] sm:$0xff] %vm247_vm1, %v3342_v1 }
  0x20   : > { %277 = vst.msk [vmem:[#allocation2 + $0xe0] sm:$0xff] %vm247_vm1, %v3342_v1 }
  0x21   : > { %279 = vst.msk [vmem:[#allocation2 + $0xf0] sm:$0xff] %vm247_vm1, %v3342_v1 }
  0x22   : > { %280 = vst.msk [vmem:[#allocation2 + $0xf8] sm:$0xff] %vm247_vm1, %v3342_v1 }
  0x23   : > { %282 = vst.msk [vmem:[#allocation2 + $0x108] sm:$0xff] %vm247_vm1, %v3342_v1 }
  0x24   : > { %283 = vst.msk [vmem:[#allocation2 + $0x110] sm:$0xff] %vm247_vm1, %v3342_v1 }
  0x25   : > { %285 = vst.msk [vmem:[#allocation2 + $0x120] sm:$0xff] %vm247_vm1, %v3342_v1 }
  0x26   : > { %286 = vst.msk [vmem:[#allocation2 + $0x128] sm:$0xff] %vm247_vm1, %v3342_v1 }
  0x27   : > { %288 = vst.msk [vmem:[#allocation2 + $0x138] sm:$0xff] %vm247_vm1, %v3342_v1 }
  0x28   : > { %289 = vst.msk [vmem:[#allocation2 + $0x140] sm:$0xff] %vm247_vm1, %v3342_v1 }
  0x29   : > { %291 = vst.msk [vmem:[#allocation2 + $0x150] sm:$0xff] %vm247_vm1, %v3342_v1 }
  0x2a   : > { %292 = vst.msk [vmem:[#allocation2 + $0x158] sm:$0xff] %vm247_vm1, %v3342_v1 }
  0x2b   : > { %294 = vst.msk [vmem:[#allocation2 + $0x168] sm:$0xff] %vm247_vm1, %v3342_v1 }
  0x2c   : > { %295 = vst.msk [vmem:[#allocation2 + $0x170] sm:$0xff] %vm247_vm1, %v3342_v1 }
  0x2d   : > { %297 = vst.msk [vmem:[#allocation2 + $0x180] sm:$0xff] %vm247_vm1, %v3342_v1 }
  0x2e   : > { %298 = vst.msk [vmem:[#allocation2 + $0x188] sm:$0xff] %vm247_vm1, %v3342_v1 }
  0x2f   : > { %300 = vst.msk [vmem:[#allocation2 + $0x198] sm:$0xff] %vm247_vm1, %v3342_v1 }
  0x30   : > { %301 = vst.msk [vmem:[#allocation2 + $0x1a0] sm:$0xff] %vm247_vm1, %v3342_v1 }
  0x31   : > { %318 = vst.msk [vmem:[#allocation2 + $0xc1] sm:$0xff] %vm247_vm1, %v229_v7 }
  0x32   : > { %326 = vst.msk [vmem:[#allocation2 + $0x121] sm:$0xff] %vm247_vm1, %v237_v9  ;;  %v336_v9 = vld [vmem:[#allocation2] sm:$0xff] }
  0x33   : > { %263 = vst.msk [vmem:[#allocation2 + $0x70] sm:$0x3] %vm250_vm2, %v3342_v1 }
  0x34   : > { %311 = vst.msk [vmem:[#allocation2 + $0x69] sm:$0xff] %vm247_vm1, %v222_v11 }
  0x35   : > { %251 = vst.msk [vmem:[#allocation2 + $0x10] sm:$0x3] %vm250_vm2, %v3342_v1 }
  0x36   : > { %254 = vst.msk [vmem:[#allocation2 + $0x28] sm:$0x3] %vm250_vm2, %v3342_v1 }
  0x37   : > { %257 = vst.msk [vmem:[#allocation2 + $0x40] sm:$0x3] %vm250_vm2, %v3342_v1 }
  0x38   : > { %v3502_v12 = vld [vmem:[#allocation2 + $0xc1] sm:$0xff]  ;;  %260 = vst.msk [vmem:[#allocation2 + $0x58] sm:$0x3] %vm250_vm2, %v3342_v1 }
  0x39   : > { %3038 = vmatmul.msk.f32.vlgmr.msra.gmra.mxu2 %vm247_vm1, %v3502_v12  ;;  %v3508_v13 = vld [vmem:[#allocation2 + $0x121] sm:$0xff]  ;;  %266 = vst.msk [vmem:[#allocation2 + $0x88] sm:$0x3] %vm250_vm2, %v3342_v1 }
  0x3a   : > { %3046 = vmatmul.msk.f32.vlgmr.msra.gmra.mxu3 %vm247_vm1, %v3508_v13  ;;  %269 = vst.msk [vmem:[#allocation2 + $0xa0] sm:$0x3] %vm250_vm2, %v3342_v1  ;;  %3219 = vmatpush.msk.msra.mxu2 %vm498_vm0, %v1968_v57 }
  0x3b   : > { %v3516_v14 = vld [vmem:[#allocation2 + $0x69] sm:$0xff]  ;;  %272 = vst.msk [vmem:[#allocation2 + $0xb8] sm:$0x3] %vm250_vm2, %v3342_v1  ;;  %3252 = vmatpush.msk.msra.mxu3 %vm498_vm0, %v2245_v58 }
  0x3c   : > { %3031 = vmatmul.msk.f32.gmra.mxu1 %vm247_vm1, %v3516_v14  ;;  %275 = vst.msk [vmem:[#allocation2 + $0xd0] sm:$0x3] %vm250_vm2, %v3342_v1  ;;  %v370_v15 = vld [vmem:[#allocation2 + $0x9] sm:$0xff] }
  0x3d   : > { %278 = vst.msk [vmem:[#allocation2 + $0xe8] sm:$0x3] %vm250_vm2, %v3342_v1  ;;  %3023 = vmatmul.msk.f32.gmra.mxu0 %vm247_vm1, %v370_v15  ;;  %v337_v15 = vld [vmem:[#allocation2 + $0x8] sm:$0xff] }
  0x3e   : > { %281 = vst.msk [vmem:[#allocation2 + $0x100] sm:$0x3] %vm250_vm2, %v3342_v1 }
  0x3f   : > { %284 = vst.msk [vmem:[#allocation2 + $0x118] sm:$0x3] %vm250_vm2, %v3342_v1 }
  0x40   : > { %287 = vst.msk [vmem:[#allocation2 + $0x130] sm:$0x3] %vm250_vm2, %v3342_v1 }
  0x41   : > { %290 = vst.msk [vmem:[#allocation2 + $0x148] sm:$0x3] %vm250_vm2, %v3342_v1 }
  0x42   : > { %293 = vst.msk [vmem:[#allocation2 + $0x160] sm:$0x3] %vm250_vm2, %v3342_v1 }
  0x43   : > { %296 = vst.msk [vmem:[#allocation2 + $0x178] sm:$0x3] %vm250_vm2, %v3342_v1 }
  0x44   : > { %299 = vst.msk [vmem:[#allocation2 + $0x190] sm:$0x3] %vm250_vm2, %v3342_v1 }
  0x45   : > { %302 = vst.msk [vmem:[#allocation2 + $0x1a8] sm:$0x3] %vm250_vm2, %v3342_v1 }
  0x46   : > { %319 = vst.msk [vmem:[#allocation2 + $0xc9] sm:$0xff] %vm247_vm1, %v230_v16  ;;  %v828_v16 = vld [vmem:[#allocation2 + $0xa] sm:$0xff] }
  0x47   : > { %327 = vst.msk [vmem:[#allocation2 + $0x129] sm:$0xff] %vm247_vm1, %v238_v17 }
  0x48   : > { %312 = vst.msk [vmem:[#allocation2 + $0x79] sm:$0xff] %vm247_vm1, %v223_v18 }
  0x49   : > { %320 = vst.msk [vmem:[#allocation2 + $0xd9] sm:$0xff] %vm247_vm1, %v231_v19 }
  0x4a   : > { %328 = vst.msk [vmem:[#allocation2 + $0x139] sm:$0xff] %vm247_vm1, %v239_v20 }
  0x4b   : > { %313 = vst.msk [vmem:[#allocation2 + $0x81] sm:$0xff] %vm247_vm1, %v224_v21 }
  0x4c   : > { %321 = vst.msk [vmem:[#allocation2 + $0xe1] sm:$0xff] %vm247_vm1, %v232_v22 }
  0x4d   : > { %v3560_v26 = vld [vmem:[#allocation2 + $0xc9] sm:$0xff]  ;;  %304 = vst.msk [vmem:[#allocation2 + $0x19] sm:$0xff] %vm247_vm1, %v215_v23 }
  0x4e   : > { %3039 = vmatmul.msk.f32.gmra.mxu2 %vm247_vm1, %v3560_v26  ;;  %v3566_v28 = vld [vmem:[#allocation2 + $0x129] sm:$0xff]  ;;  %329 = vst.msk [vmem:[#allocation2 + $0x141] sm:$0xff] %vm247_vm1, %v240_v24 }
  0x4f   : > { %3047 = vmatmul.msk.f32.gmra.mxu3 %vm247_vm1, %v3566_v28  ;;  %v3572_v30 = vld [vmem:[#allocation2 + $0x79] sm:$0xff]  ;;  %314 = vst.msk [vmem:[#allocation2 + $0x91] sm:$0xff] %vm247_vm1, %v225_v25 }
  0x50   : > { %3032 = vmatmul.msk.f32.gmra.mxu1 %vm247_vm1, %v3572_v30  ;;  %322 = vst.msk [vmem:[#allocation2 + $0xf1] sm:$0xff] %vm247_vm1, %v233_v27  ;;  %v3584_v35 = vld [vmem:[#allocation2 + $0xd9] sm:$0xff] }
  0x51   : > { %305 = vst.msk [vmem:[#allocation2 + $0x21] sm:$0xff] %vm247_vm1, %v216_v29  ;;  %v3588_v37 = vld [vmem:[#allocation2 + $0x139] sm:$0xff] }
  0x52   : > { %330 = vst.msk [vmem:[#allocation2 + $0x151] sm:$0xff] %vm247_vm1, %v241_v31  ;;  %v3594_v40 = vld [vmem:[#allocation2 + $0x81] sm:$0xff] }
  0x53   : > { %315 = vst.msk [vmem:[#allocation2 + $0x99] sm:$0xff] %vm247_vm1, %v226_v32  ;;  %v3618_v48 = vld [vmem:[#allocation2 + $0xe1] sm:$0xff] }
  0x54   : > { %v3590_v38 = vld [vmem:[#allocation2 + $0x19] sm:$0xff]  ;;  %323 = vst.msk [vmem:[#allocation2 + $0xf9] sm:$0xff] %vm247_vm1, %v234_v33  ;;  %v3789_v33 = vld [vmem:[#allocation2 + $0x68] sm:$0xff] }
  0x55   : > { %3024 = vmatmul.msk.f32.gmra.mxu0 %vm247_vm1, %v3590_v38  ;;  %306 = vst.msk [vmem:[#allocation2 + $0x31] sm:$0xff] %vm247_vm1, %v217_v34  ;;  %v3622_v50 = vld [vmem:[#allocation2 + $0x141] sm:$0xff]  ;;  %v1104_v11 = vld [vmem:[#allocation2 + $0x18] sm:$0xff] }
  0x56   : > { %3040 = vmatmul.msk.f32.gmra.mxu2 %vm247_vm1, %v3584_v35  ;;  %331 = vst.msk [vmem:[#allocation2 + $0x159] sm:$0xff] %vm247_vm1, %v242_v36  ;;  %v3625_v51 = vld [vmem:[#allocation2 + $0x91] sm:$0xff]  ;;  %v3775_v29 = vld [vmem:[#allocation2 + $0x60] sm:$0xff] }
  0x57   : > { %3048 = vmatmul.msk.f32.gmra.mxu3 %vm247_vm1, %v3588_v37  ;;  %316 = vst.msk [vmem:[#allocation2 + $0xa9] sm:$0xff] %vm247_vm1, %v227_v39  ;;  %v3641_v54 = vld [vmem:[#allocation2 + $0xf1] sm:$0xff]  ;;  %v3801_v34 = vld [vmem:[#allocation2 + $0x62] sm:$0xff] }
  0x58   : > { %3033 = vmatmul.msk.f32.gmra.mxu1 %vm247_vm1, %v3594_v40  ;;  %324 = vst.msk [vmem:[#allocation2 + $0x109] sm:$0xff] %vm247_vm1, %v235_v41  ;;  %v3614_v46 = vld [vmem:[#allocation2 + $0x21] sm:$0xff] }
  0x59   : > { %307 = vst.msk [vmem:[#allocation2 + $0x39] sm:$0xff] %vm247_vm1, %v218_v42  ;;  %v3643_v55 = vld [vmem:[#allocation2 + $0x151] sm:$0xff]  ;;  %v1105_v17 = vld [vmem:[#allocation2 + $0x20] sm:$0xff] }
  0x5a   : > { %332 = vst.msk [vmem:[#allocation2 + $0x169] sm:$0xff] %vm247_vm1, %v243_v43  ;;  %v3645_v56 = vld [vmem:[#allocation2 + $0x99] sm:$0xff]  ;;  %v3737_v20 = vld [vmem:[#allocation2 + $0x22] sm:$0xff]  ;;  %v3821_v42 = vld [vmem:[#allocation2 + $0x6a] sm:$0xff] }
  0x5b   : > { %317 = vst.msk [vmem:[#allocation2 + $0xb1] sm:$0xff] %vm247_vm1, %v228_v44  ;;  %v3669_v61 = vld [vmem:[#allocation2 + $0xf9] sm:$0xff]  ;;  %v3861_v59 = vld [vmem:[#allocation2 + $0x82] sm:$0xff] }
  0x5c   : > { %325 = vst.msk [vmem:[#allocation2 + $0x111] sm:$0xff] %vm247_vm1, %v236_v45  ;;  %v3639_v53 = vld [vmem:[#allocation2 + $0x31] sm:$0xff]  ;;  %v3726_v18 = vld [vmem:[#allocation2 + $0x1a] sm:$0xff] }
  0x5d   : > { %3025 = vmatmul.msk.f32.gmra.mxu0 %vm247_vm1, %v3614_v46  ;;  %308 = vst.msk [vmem:[#allocation2 + $0x49] sm:$0xff] %vm247_vm1, %v219_v47  ;;  %v3671_v62 = vld [vmem:[#allocation2 + $0x159] sm:$0xff]  ;;  %v3728_v19 = vld [vmem:[#allocation2 + $0x30] sm:$0xff] }
  0x5e   : > { %3041 = vmatmul.msk.f32.gmra.mxu2 %vm247_vm1, %v3618_v48  ;;  %333 = vst.msk [vmem:[#allocation2 + $0x171] sm:$0xff] %vm247_vm1, %v244_v49  ;;  %v3673_v63 = vld [vmem:[#allocation2 + $0xa9] sm:$0xff]  ;;  %v3823_v43 = vld [vmem:[#allocation2 + $0x80] sm:$0xff]  ;;  %v3863_v0 = vld [vmem:[#allocation2 + $0x98] sm:$0xff] }
  0x5f   : > { %3049 = vmatmul.msk.f32.gmra.mxu3 %vm247_vm1, %v3622_v50  ;;  %309 = vst.msk [vmem:[#allocation2 + $0x51] sm:$0xff] %vm247_vm1, %v220_v52  ;;  %v3689_v2 = vld [vmem:[#allocation2 + $0x109] sm:$0xff]  ;;  %v3841_v47 = vld [vmem:[#allocation2 + $0x7a] sm:$0xff] }
  0x60   : > { %3034 = vmatmul.msk.f32.gmra.mxu1 %vm247_vm1, %v3625_v51  ;;  %v3667_v60 = vld [vmem:[#allocation2 + $0x39] sm:$0xff]  ;;  %4540 = vst [vmem:[#allocation3_spill] sm:$0xff] %v3789_v33  ;;  %v3843_v49 = vld [vmem:[#allocation2 + $0x90] sm:$0xff] }
  0x61   : > { %v3691_v4 = vld [vmem:[#allocation2 + $0x169] sm:$0xff]  ;;  %v3739_v21 = vld [vmem:[#allocation2 + $0x38] sm:$0xff]  ;;  %4543 = vst [vmem:[#allocation6_spill] sm:$0xff] %v3821_v42 }
  0x62   : > { %v3693_v5 = vld [vmem:[#allocation2 + $0xb1] sm:$0xff]  ;;  %v3761_v24 = vld [vmem:[#allocation2 + $0x3a] sm:$0xff]  ;;  %4544 = vst [vmem:[#allocation7_spill] sm:$0xff] %v3823_v43 }
  0x63   : > { %v3705_v7 = vld [vmem:[#allocation2 + $0x111] sm:$0xff]  ;;  %4546 = vst [vmem:[#allocation9_spill] sm:$0xff] %v3841_v47 }
  0x64   : > { %v3687_v1 = vld [vmem:[#allocation2 + $0x49] sm:$0xff]  ;;  %v3749_v22 = vld [vmem:[#allocation2 + $0x32] sm:$0xff]  ;;  %4547 = vst [vmem:[#allocation10_spill] sm:$0xff] %v3843_v49 }
  0x65   : > { %3026 = vmatmul.msk.f32.gmra.mxu0 %vm247_vm1, %v3639_v53  ;;  %v3707_v8 = vld [vmem:[#allocation2 + $0x171] sm:$0xff]  ;;  %v3751_v23 = vld [vmem:[#allocation2 + $0x48] sm:$0xff]  ;;  %4549 = vst [vmem:[#allocation12_spill] sm:$0xff] %v3861_v59 }
  0x66   : > { %3042 = vmatmul.msk.f32.gmra.mxu2 %vm247_vm1, %v3641_v54  ;;  %v3703_v6 = vld [vmem:[#allocation2 + $0x51] sm:$0xff]  ;;  %4550 = vst [vmem:[#allocation13_spill] sm:$0xff] %v3863_v0 }
  0x67   : > { %3050 = vmatmul.msk.f32.gmra.mxu3 %vm247_vm1, %v3643_v55  ;;  %v3763_v25 = vld [vmem:[#allocation2 + $0x50] sm:$0xff] }
  0x68   : > { %3035 = vmatmul.msk.f32.gmra.mxu1 %vm247_vm1, %v3645_v56  ;;  %v3773_v27 = vld [vmem:[#allocation2 + $0x4a] sm:$0xff]  ;;  %v3787_v32 = vld [vmem:[#allocation2 + $0x52] sm:$0xff] }
  0x6d   : > { %3027 = vmatmul.msk.f32.gmra.mxu0 %vm247_vm1, %v3667_v60 }
  0x6e   : > { %3043 = vmatmul.msk.f32.gmra.mxu2 %vm247_vm1, %v3669_v61 }
  0x6f   : > { %3051 = vmatmul.msk.f32.gmra.mxu3 %vm247_vm1, %v3671_v62 }
  0x70   : > { %3036 = vmatmul.msk.f32.gmra.mxu1 %vm247_vm1, %v3673_v63 }
  0x75   : > { %3028 = vmatmul.msk.f32.gmra.mxu0 %vm247_vm1, %v3687_v1 }
  0x76   : > { %3044 = vmatmul.msk.f32.gmra.mxu2 %vm247_vm1, %v3689_v2 }
  0x77   : > { %3052 = vmatmul.msk.f32.gmra.mxu3 %vm247_vm1, %v3691_v4 }
  0x78   : > { %3037 = vmatmul.msk.f32.gmra.mxu1 %vm247_vm1, %v3693_v5 }
  0x7d   : > { %3029 = vmatmul.msk.f32.gmra.mxu0 %vm247_vm1, %v3703_v6 }
  0x7e   : > { %3045 = vmatmul.msk.f32.gmra.mxu2 %vm247_vm1, %v3705_v7 }
  0x7f   : > { %3053 = vmatmul.msk.f32.gmra.mxu3 %vm247_vm1, %v3707_v8 }
  0x80   : > { %3055 = vmatmul.msk.f32.vlgmr.msrb.gmra.mxu1 %vm247_vm1, %v336_v9 }
  0x85   : > { %3154 = vmatmul.msk.f32.vlgmr.msrb.gmra.mxu0 %vm247_vm1, %v3590_v38  ;;  %v3805_v38 = vld [vmem:[#allocation2 + $0x78] sm:$0xff] }
  0x86   : > { %3088 = vmatmul.msk.f32.vlgmr.msrb.gmra.mxu2 %vm247_vm1, %v827_v10  ;;  %4541 = vst [vmem:[#allocation4_spill] sm:$0xff] %v3805_v38 }
  0x87   : > { %3121 = vmatmul.msk.f32.vlgmr.msrb.gmra.mxu3 %vm247_vm1, %v1104_v11 }
  0x88   : > { %3056 = vmatmul.msk.f32.gmra.mxu1 %vm247_vm1, %v337_v15  ;;  %v3881_v15 = vld [vmem:[#allocation2 + $0x92] sm:$0xff] }
  0x89   : > { %4552 = vst [vmem:[#allocation15_spill] sm:$0xff] %v3881_v15 }
  0x8d   : > { %3155 = vmatmul.msk.f32.gmra.mxu0 %vm247_vm1, %v3614_v46 }
  0x8e   : > { %3089 = vmatmul.msk.f32.gmra.mxu2 %vm247_vm1, %v828_v16  ;;  %v3883_v16 = vld [vmem:[#allocation2 + $0xa8] sm:$0xff] }
  0x8f   : > { %3122 = vmatmul.msk.f32.gmra.mxu3 %vm247_vm1, %v1105_v17  ;;  %4553 = vst [vmem:[#allocation16_spill] sm:$0xff] %v3883_v16 }
  0x90   : > { %3057 = vmatmul.msk.f32.gmra.mxu1 %vm247_vm1, %v1104_v11 }
  0x95   : > { %3156 = vmatmul.msk.f32.gmra.mxu0 %vm247_vm1, %v3639_v53 }
  0x96   : > { %3090 = vmatmul.msk.f32.gmra.mxu2 %vm247_vm1, %v3726_v18 }
  0x97   : > { %3123 = vmatmul.msk.f32.gmra.mxu3 %vm247_vm1, %v3728_v19  ;;  %v3785_v31 = vpop.f32.mrf.mxu1 }
  0x98   : > { %3058 = vmatmul.msk.f32.gmra.mxu1 %vm247_vm1, %v1105_v17 }
  0x9d   : > { %3157 = vmatmul.msk.f32.gmra.mxu0 %vm247_vm1, %v3667_v60 }
  0x9e   : > { %3091 = vmatmul.msk.f32.gmra.mxu2 %vm247_vm1, %v3737_v20 }
  0x9f   : > { %3124 = vmatmul.msk.f32.gmra.mxu3 %vm247_vm1, %v3739_v21 }
  0xa0   : > { %3059 = vmatmul.msk.f32.gmra.mxu1 %vm247_vm1, %v3728_v19 }
  0xa5   : > { %3158 = vmatmul.msk.f32.gmra.mxu0 %vm247_vm1, %v3687_v1 }
  0xa6   : > { %3092 = vmatmul.msk.f32.gmra.mxu2 %vm247_vm1, %v3749_v22 }
  0xa7   : > { %3125 = vmatmul.msk.f32.gmra.mxu3 %vm247_vm1, %v3751_v23 }
  0xa8   : > { %3060 = vmatmul.msk.f32.gmra.mxu1 %vm247_vm1, %v3739_v21 }
  0xad   : > { %3159 = vmatmul.msk.f32.gmra.mxu0 %vm247_vm1, %v3703_v6 }
  0xae   : > { %3093 = vmatmul.msk.f32.gmra.mxu2 %vm247_vm1, %v3761_v24 }
  0xaf   : > { %3126 = vmatmul.msk.f32.gmra.mxu3 %vm247_vm1, %v3763_v25 }
  0xb0   : > { %3061 = vmatmul.msk.f32.gmra.mxu1 %vm247_vm1, %v3751_v23 }
  0xb5   : > { %3160 = vmatmul.msk.f32.gmra.mxu0 %vm247_vm1, %v3419_v3  ;;  %v3795_v3 = vpop.f32.mrf.mxu0 }
  0xb6   : > { %3094 = vmatmul.msk.f32.gmra.mxu2 %vm247_vm1, %v3773_v27 }
  0xb7   : > { %3127 = vmatmul.msk.f32.gmra.mxu3 %vm247_vm1, %v3775_v29 }
  0xb8   : > { %3062 = vmatmul.msk.f32.gmra.mxu1 %vm247_vm1, %v3763_v25 }
  0xb9   : > { %v3803_v36 = vpop.f32.mrf.mxu1 }
  0xbd   : > { %3161 = vmatmul.msk.f32.gmra.mxu0 %vm247_vm1, %v3516_v14  ;;  %v3813_v14 = vpop.f32.mrf.mxu2  ;;  %v3815_v39 = vpop.f32.mrf.mxu3 }
  0xbe   : > { %3095 = vmatmul.msk.f32.gmra.mxu2 %vm247_vm1, %v3787_v32  ;;  %4542 = vst [vmem:[#allocation5_spill] sm:$0xff] %v3815_v39  ;;  %v3819_v41 = vpop.f32.mrf.mxu0  ;;  %v3903_v39 = vld [vmem:[#allocation2 + $0xb0] sm:$0xff] }
  0xbf   : > { %3128 = vmatmul.msk.f32.gmra.mxu3 %vm247_vm1, %v3789_v33  ;;  %4557 = vst [vmem:[#allocation20_spill] sm:$0xff] %v3903_v39 }
  0xc0   : > { %3063 = vmatmul.msk.f32.gmra.mxu1 %vm247_vm1, %v3775_v29 }
  0xc5   : > { %3162 = vmatmul.msk.f32.gmra.mxu0 %vm247_vm1, %v3572_v30 }
  0xc6   : > { %3096 = vmatmul.msk.f32.gmra.mxu2 %vm247_vm1, %v3801_v34 }
  0xc7   : > { %3129 = vmatmul.msk.f32.gmra.mxu3 %vm247_vm1, %v3805_v38 }
  0xc8   : > { %3064 = vmatmul.msk.f32.gmra.mxu1 %vm247_vm1, %v3789_v33  ;;  %v3970_v33 = vld [vmem:[#allocation2 + $0xca] sm:$0xff] }
  0xcd   : > { %v3825_v30 = vpop.f32.mrf.mxu1  ;;  %3163 = vmatmul.msk.f32.gmra.mxu0 %vm247_vm1, %v3594_v40 }
  0xce   : > { %3097 = vmatmul.msk.f32.gmra.mxu2 %vm247_vm1, %v3821_v42 }
  0xcf   : > { %3130 = vmatmul.msk.f32.gmra.mxu3 %vm247_vm1, %v3823_v43 }
  0xd0   : > { %3065 = vmatmul.msk.f32.gmra.mxu1 %vm247_vm1, %v3805_v38  ;;  %v3943_v38 = vld [vmem:[#allocation2 + $0xc8] sm:$0xff] }
  0xd1   : > { %v3835_v44 = vpop.f32.mrf.mxu2 }
  0xd2   : > { %v3837_v45 = vpop.f32.mrf.mxu3  ;;  %v3839_v46 = vpop.f32.mrf.mxu0 }
  0xd3   : > { %4545 = vst [vmem:[#allocation8_spill] sm:$0xff] %v3837_v45  ;;  %v3901_v45 = vld [vmem:[#allocation2 + $0x9a] sm:$0xff] }
  0xd4   : > { %4556 = vst [vmem:[#allocation19_spill] sm:$0xff] %v3901_v45 }
  0xd5   : > { %v3845_v40 = vpop.f32.mrf.mxu1  ;;  %3164 = vmatmul.msk.f32.gmra.mxu0 %vm247_vm1, %v3625_v51 }
  0xd6   : > { %3098 = vmatmul.msk.f32.gmra.mxu2 %vm247_vm1, %v3841_v47  ;;  %v3959_v47 = vld [vmem:[#allocation2 + $0xd8] sm:$0xff] }
  0xd7   : > { %3131 = vmatmul.msk.f32.gmra.mxu3 %vm247_vm1, %v3843_v49 }
  0xd8   : > { %3066 = vmatmul.msk.f32.gmra.mxu1 %vm247_vm1, %v3823_v43  ;;  %v3923_v43 = vld [vmem:[#allocation2 + $0xc0] sm:$0xff] }
  0xd9   : > { %v3855_v52 = vpop.f32.mrf.mxu2  ;;  %4561 = vst [vmem:[#allocation24_spill] sm:$0xff] %v3923_v43 }
  0xda   : > { %v3857_v57 = vpop.f32.mrf.mxu3  ;;  %v3859_v58 = vpop.f32.mrf.mxu0 }
  0xdb   : > { %4548 = vst [vmem:[#allocation11_spill] sm:$0xff] %v3857_v57 }
  0xdd   : > { %v3865_v51 = vpop.f32.mrf.mxu1  ;;  %3165 = vmatmul.msk.f32.gmra.mxu0 %vm247_vm1, %v3645_v56 }
  0xde   : > { %3099 = vmatmul.msk.f32.gmra.mxu2 %vm247_vm1, %v3861_v59  ;;  %v3941_v59 = vld [vmem:[#allocation2 + $0xb2] sm:$0xff] }
  0xdf   : > { %3132 = vmatmul.msk.f32.gmra.mxu3 %vm247_vm1, %v3863_v0  ;;  %4564 = vst [vmem:[#allocation27_spill] sm:$0xff] %v3941_v59 }
  0xe0   : > { %3067 = vmatmul.msk.f32.gmra.mxu1 %vm247_vm1, %v3843_v49 }
  0xe1   : > { %v3875_v9 = vpop.f32.mrf.mxu2 }
  0xe2   : > { %v3877_v10 = vpop.f32.mrf.mxu3  ;;  %v3879_v11 = vpop.f32.mrf.mxu0 }
  0xe3   : > { %4551 = vst [vmem:[#allocation14_spill] sm:$0xff] %v3877_v10 }
  0xe5   : > { %v3885_v56 = vpop.f32.mrf.mxu1  ;;  %3166 = vmatmul.msk.f32.gmra.mxu0 %vm247_vm1, %v3673_v63 }
  0xe6   : > { %3100 = vmatmul.msk.f32.gmra.mxu2 %vm247_vm1, %v3881_v15  ;;  %v3921_v15 = vld [vmem:[#allocation2 + $0xaa] sm:$0xff] }
  0xe7   : > { %3133 = vmatmul.msk.f32.gmra.mxu3 %vm247_vm1, %v3883_v16  ;;  %4560 = vst [vmem:[#allocation23_spill] sm:$0xff] %v3921_v15 }
  0xe8   : > { %3068 = vmatmul.msk.f32.gmra.mxu1 %vm247_vm1, %v3863_v0 }
  0xe9   : > { %v3895_v17 = vpop.f32.mrf.mxu2 }
  0xea   : > { %4554 = vst [vmem:[#allocation17_spill] sm:$0xff] %v3895_v17  ;;  %v3897_v10 = vpop.f32.mrf.mxu3  ;;  %v3899_v57 = vpop.f32.mrf.mxu0  ;;  %v3972_v17 = vld [vmem:[#allocation2 + $0xe0] sm:$0xff] }
  0xeb   : > { %4555 = vst [vmem:[#allocation18_spill] sm:$0xff] %v3897_v10 }
  0xed   : > { %v3905_v63 = vpop.f32.mrf.mxu1  ;;  %3167 = vmatmul.msk.f32.gmra.mxu0 %vm247_vm1, %v3693_v5 }
  0xee   : > { %3101 = vmatmul.msk.f32.gmra.mxu2 %vm247_vm1, %v3901_v45 }
  0xef   : > { %3134 = vmatmul.msk.f32.gmra.mxu3 %vm247_vm1, %v3903_v39 }
  0xf0   : > { %3069 = vmatmul.msk.f32.gmra.mxu1 %vm247_vm1, %v3883_v16 }
  0xf1   : > { %v3915_v10 = vpop.f32.mrf.mxu2 }
  0xf2   : > { %4558 = vst [vmem:[#allocation21_spill] sm:$0xff] %v3915_v10  ;;  %v3917_v0 = vpop.f32.mrf.mxu3  ;;  %v3919_v49 = vpop.f32.mrf.mxu0 }
  0xf3   : > { %4559 = vst [vmem:[#allocation22_spill] sm:$0xff] %v3917_v0 }
  0xf5   : > { %v3925_v5 = vpop.f32.mrf.mxu1  ;;  %3168 = vmatmul.msk.f32.gmra.mxu0 %vm247_vm1, %v3502_v12 }
  0xf6   : > { %3102 = vmatmul.msk.f32.gmra.mxu2 %vm247_vm1, %v3921_v15 }
  0xf7   : > { %3135 = vmatmul.msk.f32.gmra.mxu3 %vm247_vm1, %v3923_v43 }
  0xf8   : > { %3070 = vmatmul.msk.f32.gmra.mxu1 %vm247_vm1, %v3903_v39 }
  0xf9   : > { %v3935_v0 = vpop.f32.mrf.mxu2 }
  0xfa   : > { %4562 = vst [vmem:[#allocation25_spill] sm:$0xff] %v3935_v0  ;;  %v3937_v16 = vpop.f32.mrf.mxu3  ;;  %v3939_v45 = vpop.f32.mrf.mxu0  ;;  %v3957_v0 = vld [vmem:[#allocation2 + $0xc2] sm:$0xff] }
  0xfb   : > { %4563 = vst [vmem:[#allocation26_spill] sm:$0xff] %v3937_v16 }
  0xfc   : > { %4567 = vst [vmem:[#allocation30_spill] sm:$0xff] %v3957_v0 }
  0xfd   : > { %v731_v12 = vpop.f32.mrf.mxu1  ;;  %3169 = vmatmul.msk.f32.gmra.mxu0 %vm247_vm1, %v3560_v26 }
  0xfe   : > { %3103 = vmatmul.msk.f32.gmra.mxu2 %vm247_vm1, %v3941_v59  ;;  %v732_v26 = vadd.f32 %v731_v12, %v3795_v3 }
  0xff   : > { %3136 = vmatmul.msk.f32.gmra.mxu3 %vm247_vm1, %v3943_v38 }
 0x100   : > { %3071 = vmatmul.msk.f32.gmra.mxu1 %vm247_vm1, %v3923_v43 }
 0x101   : > { %v3953_v16 = vpop.f32.mrf.mxu2 }
 0x102   : > { %4565 = vst [vmem:[#allocation28_spill] sm:$0xff] %v3953_v16  ;;  %v3955_v39 = vpop.f32.mrf.mxu3  ;;  %v1530_v15 = vpop.f32.mrf.mxu0 }
 0x103   : > { %4566 = vst [vmem:[#allocation29_spill] sm:$0xff] %v3955_v39 }
 0x105   : > { %v734_v10 = vpop.f32.mrf.mxu1  ;;  %3170 = vmatmul.msk.f32.gmra.mxu0 %vm247_vm1, %v3584_v35 }
 0x106   : > { %3104 = vmatmul.msk.f32.gmra.mxu2 %vm247_vm1, %v3957_v0  ;;  %v735_v3 = vadd.f32 %v734_v10, %v3819_v41 }
 0x107   : > { %3137 = vmatmul.msk.f32.gmra.mxu3 %vm247_vm1, %v3959_v47 }
 0x108   : > { %3072 = vmatmul.msk.f32.gmra.mxu1 %vm247_vm1, %v3943_v38 }
 0x109   : > { %v976_v39 = vpop.f32.mrf.mxu2 }
 0x10a   : > { %v1072_v43 = vadd.f32 %v976_v39, %v732_v26  ;;  %v1253_v59 = vpop.f32.mrf.mxu3  ;;  %v1533_v16 = vpop.f32.mrf.mxu0  ;;  %v3985_v26 = vld [vmem:[#allocation2 + $0xda] sm:$0xff] }
 0x10c   : > { %v1349_v42 = vadd.f32 %v1253_v59, %v1072_v43 }
 0x10d   : > { %v737_v35 = vpop.f32.mrf.mxu1  ;;  %3171 = vmatmul.msk.f32.gmra.mxu0 %vm247_vm1, %v3618_v48 }
 0x10e   : > { %v3976_v0 = vadd.f32 %v1530_v15, %v1349_v42  ;;  %3105 = vmatmul.msk.f32.gmra.mxu2 %vm247_vm1, %v3970_v33  ;;  %v3987_v42 = vld [vmem:[#allocation2 + $0xf0] sm:$0xff]  ;;  %v738_v41 = vadd.f32 %v737_v35, %v3839_v46 }
 0x10f   : > { %3138 = vmatmul.msk.f32.gmra.mxu3 %vm247_vm1, %v3972_v17 }
 0x110   : > { %4568 = vst [vmem:[#allocation31_spill] sm:$0xff] %v3976_v0  ;;  %3073 = vmatmul.msk.f32.gmra.mxu1 %vm247_vm1, %v3959_v47 }
 0x111   : > { %v979_v39 = vpop.f32.mrf.mxu2 }
 0x112   : > { %v1073_v43 = vadd.f32 %v979_v39, %v735_v3  ;;  %v1256_v59 = vpop.f32.mrf.mxu3  ;;  %v1536_v12 = vpop.f32.mrf.mxu0 }
 0x114   : > { %v1350_v48 = vadd.f32 %v1256_v59, %v1073_v43  ;;  %v4000_v59 = vld [vmem:[#allocation2 + $0xe2] sm:$0xff] }
 0x115   : > { %v740_v15 = vpop.f32.mrf.mxu1  ;;  %3172 = vmatmul.msk.f32.gmra.mxu0 %vm247_vm1, %v3641_v54 }
 0x116   : > { %v3991_v0 = vadd.f32 %v1533_v16, %v1350_v48  ;;  %3106 = vmatmul.msk.f32.gmra.mxu2 %vm247_vm1, %v3985_v26  ;;  %v4002_v16 = vld [vmem:[#allocation2 + $0xf8] sm:$0xff]  ;;  %v741_v46 = vadd.f32 %v740_v15, %v3859_v58 }
 0x117   : > { %3139 = vmatmul.msk.f32.gmra.mxu3 %vm247_vm1, %v3987_v42 }
 0x118   : > { %4569 = vst [vmem:[#allocation32_spill] sm:$0xff] %v3991_v0  ;;  %3074 = vmatmul.msk.f32.gmra.mxu1 %vm247_vm1, %v3972_v17 }
 0x119   : > { %v982_v10 = vpop.f32.mrf.mxu2 }
 0x11a   : > { %v1074_v3 = vadd.f32 %v982_v10, %v738_v41  ;;  %v1259_v39 = vpop.f32.mrf.mxu3  ;;  %v1539_v43 = vpop.f32.mrf.mxu0 }
 0x11c   : > { %v1351_v54 = vadd.f32 %v1259_v39, %v1074_v3  ;;  %v4015_v39 = vld [vmem:[#allocation2 + $0xf2] sm:$0xff] }
 0x11d   : > { %v743_v48 = vpop.f32.mrf.mxu1  ;;  %3173 = vmatmul.msk.f32.gmra.mxu0 %vm247_vm1, %v3669_v61 }
 0x11e   : > { %v4006_v0 = vadd.f32 %v1536_v12, %v1351_v54  ;;  %3107 = vmatmul.msk.f32.gmra.mxu2 %vm247_vm1, %v4000_v59  ;;  %v4017_v12 = vld [vmem:[#allocation2 + $0x108] sm:$0xff]  ;;  %v744_v58 = vadd.f32 %v743_v48, %v3879_v11 }
 0x11f   : > { %3140 = vmatmul.msk.f32.gmra.mxu3 %vm247_vm1, %v4002_v16 }
 0x120   : > { %4570 = vst [vmem:[#allocation33_spill] sm:$0xff] %v4006_v0  ;;  %3075 = vmatmul.msk.f32.gmra.mxu1 %vm247_vm1, %v3987_v42 }
 0x121   : > { %v985_v35 = vpop.f32.mrf.mxu2 }
 0x122   : > { %v1075_v41 = vadd.f32 %v985_v35, %v741_v46  ;;  %v1262_v10 = vpop.f32.mrf.mxu3  ;;  %v1542_v3 = vpop.f32.mrf.mxu0 }
 0x124   : > { %v1352_v61 = vadd.f32 %v1262_v10, %v1075_v41  ;;  %v4030_v10 = vld [vmem:[#allocation2 + $0xfa] sm:$0xff] }
 0x125   : > { %v746_v54 = vpop.f32.mrf.mxu1  ;;  %3174 = vmatmul.msk.f32.gmra.mxu0 %vm247_vm1, %v3689_v2 }
 0x126   : > { %v4021_v0 = vadd.f32 %v1539_v43, %v1352_v61  ;;  %3108 = vmatmul.msk.f32.gmra.mxu2 %vm247_vm1, %v4015_v39  ;;  %v4032_v43 = vld [vmem:[#allocation2 + $0x110] sm:$0xff]  ;;  %v747_v11 = vadd.f32 %v746_v54, %v3899_v57 }
 0x127   : > { %3141 = vmatmul.msk.f32.gmra.mxu3 %vm247_vm1, %v4017_v12 }
 0x128   : > { %4571 = vst [vmem:[#allocation34_spill] sm:$0xff] %v4021_v0  ;;  %3076 = vmatmul.msk.f32.gmra.mxu1 %vm247_vm1, %v4002_v16 }
 0x129   : > { %v988_v15 = vpop.f32.mrf.mxu2 }
 0x12a   : > { %v1076_v46 = vadd.f32 %v988_v15, %v744_v58  ;;  %v1265_v35 = vpop.f32.mrf.mxu3  ;;  %v1545_v41 = vpop.f32.mrf.mxu0 }
 0x12c   : > { %v1353_v2 = vadd.f32 %v1265_v35, %v1076_v46  ;;  %v4045_v35 = vld [vmem:[#allocation2 + $0x10a] sm:$0xff] }
 0x12d   : > { %v749_v61 = vpop.f32.mrf.mxu1  ;;  %3175 = vmatmul.msk.f32.gmra.mxu0 %vm247_vm1, %v3705_v7 }
 0x12e   : > { %v4036_v0 = vadd.f32 %v1542_v3, %v1353_v2  ;;  %3109 = vmatmul.msk.f32.gmra.mxu2 %vm247_vm1, %v4030_v10  ;;  %v4047_v3 = vld [vmem:[#allocation2 + $0x120] sm:$0xff]  ;;  %v750_v57 = vadd.f32 %v749_v61, %v3919_v49 }
 0x12f   : > { %3142 = vmatmul.msk.f32.gmra.mxu3 %vm247_vm1, %v4032_v43 }
 0x130   : > { %4572 = vst [vmem:[#allocation35_spill] sm:$0xff] %v4036_v0  ;;  %3077 = vmatmul.msk.f32.gmra.mxu1 %vm247_vm1, %v4017_v12 }
 0x131   : > { %v991_v48 = vpop.f32.mrf.mxu2 }
 0x132   : > { %v1077_v58 = vadd.f32 %v991_v48, %v747_v11  ;;  %v1268_v15 = vpop.f32.mrf.mxu3  ;;  %v1548_v46 = vpop.f32.mrf.mxu0 }
 0x134   : > { %v1354_v7 = vadd.f32 %v1268_v15, %v1077_v58  ;;  %v4060_v15 = vld [vmem:[#allocation2 + $0x112] sm:$0xff] }
 0x135   : > { %v752_v2 = vpop.f32.mrf.mxu1  ;;  %3176 = vmatmul.msk.f32.gmra.mxu0 %vm247_vm1, %v3508_v13 }
 0x136   : > { %v4051_v0 = vadd.f32 %v1545_v41, %v1354_v7  ;;  %3110 = vmatmul.msk.f32.gmra.mxu2 %vm247_vm1, %v4045_v35  ;;  %v4062_v41 = vld [vmem:[#allocation2 + $0x128] sm:$0xff]  ;;  %v753_v49 = vadd.f32 %v752_v2, %v3939_v45 }
 0x137   : > { %3143 = vmatmul.msk.f32.gmra.mxu3 %vm247_vm1, %v4047_v3  ;;  %4574 = vst [vmem:[#allocation37_spill] sm:$0xff] %v4062_v41 }
 0x138   : > { %4573 = vst [vmem:[#allocation36_spill] sm:$0xff] %v4051_v0  ;;  %3078 = vmatmul.msk.f32.gmra.mxu1 %vm247_vm1, %v4032_v43 }
 0x139   : > { %v994_v54 = vpop.f32.mrf.mxu2 }
 0x13a   : > { %v1078_v11 = vadd.f32 %v994_v54, %v750_v57  ;;  %v1271_v48 = vpop.f32.mrf.mxu3  ;;  %v1551_v58 = vpop.f32.mrf.mxu0 }
 0x13c   : > { %v1355_v13 = vadd.f32 %v1271_v48, %v1078_v11  ;;  %v4075_v48 = vld [vmem:[#allocation2 + $0x122] sm:$0xff] }
 0x13d   : > { %v755_v7 = vpop.f32.mrf.mxu1  ;;  %3177 = vmatmul.msk.f32.gmra.mxu0 %vm247_vm1, %v3566_v28 }
 0x13e   : > { %v4066_v0 = vadd.f32 %v1548_v46, %v1355_v13  ;;  %3111 = vmatmul.msk.f32.gmra.mxu2 %vm247_vm1, %v4060_v15  ;;  %v4077_v46 = vld [vmem:[#allocation2 + $0x138] sm:$0xff]  ;;  %v756_v45 = vadd.f32 %v755_v7, %v3785_v31  ;;  %v245_v31 = vld [vmem:[%s3399_s22 + $0xf0] sm:$0xff] }
 0x13f   : > { %3144 = vmatmul.msk.f32.gmra.mxu3 %vm247_vm1, %v4062_v41  ;;  %334 = vst.msk [vmem:[#allocation2 + $0x181] sm:$0xff] %vm247_vm1, %v245_v31 }
 0x140   : > { %4575 = vst [vmem:[#allocation38_spill] sm:$0xff] %v4066_v0  ;;  %3079 = vmatmul.msk.f32.gmra.mxu1 %vm247_vm1, %v4047_v3 }
 0x141   : > { %v997_v61 = vpop.f32.mrf.mxu2 }
 0x142   : > { %v1079_v57 = vadd.f32 %v997_v61, %v753_v49  ;;  %v1274_v54 = vpop.f32.mrf.mxu3  ;;  %v1554_v11 = vpop.f32.mrf.mxu0 }
 0x144   : > { %v1356_v28 = vadd.f32 %v1274_v54, %v1079_v57  ;;  %v4090_v54 = vld [vmem:[#allocation2 + $0x12a] sm:$0xff] }
 0x145   : > { %v758_v13 = vpop.f32.mrf.mxu1  ;;  %3178 = vmatmul.msk.f32.gmra.mxu0 %vm247_vm1, %v3588_v37 }
 0x146   : > { %v4081_v0 = vadd.f32 %v1551_v58, %v1356_v28  ;;  %3112 = vmatmul.msk.f32.gmra.mxu2 %vm247_vm1, %v4075_v48  ;;  %v4092_v58 = vld [vmem:[#allocation2 + $0x140] sm:$0xff]  ;;  %v759_v7 = vadd.f32 %v758_v13, %v3803_v36  ;;  %v246_v36 = vld [vmem:[%s3399_s22 + $0xf8] sm:$0xff] }
 0x147   : > { %3145 = vmatmul.msk.f32.gmra.mxu3 %vm247_vm1, %v4077_v46  ;;  %4577 = vst [vmem:[#allocation40_spill] sm:$0xff] %v4092_v58 }
 0x148   : > { %4576 = vst [vmem:[#allocation39_spill] sm:$0xff] %v4081_v0  ;;  %3080 = vmatmul.msk.f32.gmra.mxu1 %vm247_vm1, %v4062_v41 }
 0x149   : > { %v1000_v2 = vpop.f32.mrf.mxu2  ;;  %335 = vst.msk [vmem:[#allocation2 + $0x189] sm:$0xff] %vm247_vm1, %v246_v36 }
 0x14a   : > { %v1080_v49 = vadd.f32 %v1000_v2, %v756_v45  ;;  %v1277_v61 = vpop.f32.mrf.mxu3  ;;  %v1557_v57 = vpop.f32.mrf.mxu0 }
 0x14c   : > { %v1357_v37 = vadd.f32 %v1277_v61, %v1080_v49  ;;  %v4107_v49 = vld [vmem:[#allocation2 + $0x13a] sm:$0xff] }
 0x14d   : > { %v761_v28 = vpop.f32.mrf.mxu1  ;;  %3179 = vmatmul.msk.f32.gmra.mxu0 %vm247_vm1, %v3622_v50 }
 0x14e   : > { %v4096_v0 = vadd.f32 %v1554_v11, %v1357_v37  ;;  %3113 = vmatmul.msk.f32.gmra.mxu2 %vm247_vm1, %v4090_v54  ;;  %v1130_v37 = vld [vmem:[#allocation2 + $0x150] sm:$0xff]  ;;  %v762_v13 = vadd.f32 %v761_v28, %v3825_v30 }
 0x14f   : > { %3146 = vmatmul.msk.f32.gmra.mxu3 %vm247_vm1, %v4092_v58 }
 0x150   : > { %4578 = vst [vmem:[#allocation41_spill] sm:$0xff] %v4096_v0  ;;  %3081 = vmatmul.msk.f32.gmra.mxu1 %vm247_vm1, %v4077_v46 }
 0x151   : > { %v1003_v45 = vpop.f32.mrf.mxu2 }
 0x152   : > { %v1081_v2 = vadd.f32 %v1003_v45, %v759_v7  ;;  %v1280_v50 = vpop.f32.mrf.mxu3  ;;  %v1560_v11 = vpop.f32.mrf.mxu0 }
 0x154   : > { %v1358_v61 = vadd.f32 %v1280_v50, %v1081_v2  ;;  %v1131_v50 = vld [vmem:[#allocation2 + $0x158] sm:$0xff] }
 0x155   : > { %v764_v0 = vpop.f32.mrf.mxu1  ;;  %3180 = vmatmul.msk.f32.gmra.mxu0 %vm247_vm1, %v3643_v55  ;;  %v4121_v55 = vld [vmem:[#allocation2 + $0x142] sm:$0xff] }
 0x156   : > { %v4111_v41 = vadd.f32 %v1557_v57, %v1358_v61  ;;  %3114 = vmatmul.msk.f32.gmra.mxu2 %vm247_vm1, %v4107_v49  ;;  %v765_v30 = vadd.f32 %v764_v0, %v3845_v40 }
 0x157   : > { %3147 = vmatmul.msk.f32.gmra.mxu3 %vm247_vm1, %v1130_v37 }
 0x158   : > { %4579 = vst [vmem:[#allocation42_spill] sm:$0xff] %v4111_v41  ;;  %3082 = vmatmul.msk.f32.gmra.mxu1 %vm247_vm1, %v4092_v58  ;;  %v1132_v58 = vld [vmem:[#allocation2 + $0x168] sm:$0xff] }
 0x159   : > { %v1006_v31 = vpop.f32.mrf.mxu2 }
 0x15a   : > { %v1082_v7 = vadd.f32 %v1006_v31, %v762_v13  ;;  %v1283_v45 = vpop.f32.mrf.mxu3  ;;  %v1563_v2 = vpop.f32.mrf.mxu0 }
 0x15c   : > { %v1359_v57 = vadd.f32 %v1283_v45, %v1082_v7  ;;  %v4132_v7 = vld [vmem:[#allocation2 + $0x152] sm:$0xff] }
 0x15d   : > { %v767_v61 = vpop.f32.mrf.mxu1  ;;  %3181 = vmatmul.msk.f32.gmra.mxu0 %vm247_vm1, %v3671_v62 }
 0x15e   : > { %v4125_v41 = vadd.f32 %v1560_v11, %v1359_v57  ;;  %3115 = vmatmul.msk.f32.gmra.mxu2 %vm247_vm1, %v4121_v55  ;;  %v768_v40 = vadd.f32 %v767_v61, %v3865_v51 }
 0x15f   : > { %3148 = vmatmul.msk.f32.gmra.mxu3 %vm247_vm1, %v1131_v50 }
 0x160   : > { %4580 = vst [vmem:[#allocation43_spill] sm:$0xff] %v4125_v41  ;;  %3083 = vmatmul.msk.f32.gmra.mxu1 %vm247_vm1, %v1130_v37 }
 0x161   : > { %v1009_v28 = vpop.f32.mrf.mxu2 }
 0x162   : > { %v1083_v36 = vadd.f32 %v1009_v28, %v765_v30  ;;  %v1286_v13 = vpop.f32.mrf.mxu3  ;;  %v1566_v31 = vpop.f32.mrf.mxu0  ;;  %v4143_v28 = vld [vmem:[#allocation2 + $0x15a] sm:$0xff] }
 0x164   : > { %v1360_v45 = vadd.f32 %v1286_v13, %v1083_v36  ;;  %v1133_v13 = vld [vmem:[#allocation2 + $0x170] sm:$0xff] }
 0x165   : > { %v770_v62 = vpop.f32.mrf.mxu1  ;;  %3182 = vmatmul.msk.f32.gmra.mxu0 %vm247_vm1, %v3691_v4 }
 0x166   : > { %v4136_v11 = vadd.f32 %v1563_v2, %v1360_v45  ;;  %3116 = vmatmul.msk.f32.gmra.mxu2 %vm247_vm1, %v4132_v7  ;;  %v771_v51 = vadd.f32 %v770_v62, %v3885_v56 }
 0x167   : > { %3149 = vmatmul.msk.f32.gmra.mxu3 %vm247_vm1, %v1132_v58 }
 0x168   : > { %4581 = vst [vmem:[#allocation44_spill] sm:$0xff] %v4136_v11  ;;  %3084 = vmatmul.msk.f32.gmra.mxu1 %vm247_vm1, %v1131_v50  ;;  %v1135_v11 = vld [vmem:[#allocation2 + $0x188] sm:$0xff] }
 0x169   : > { %v1012_v0 = vpop.f32.mrf.mxu2 }
 0x16a   : > { %v1084_v37 = vadd.f32 %v1012_v0, %v768_v40  ;;  %v1289_v57 = vpop.f32.mrf.mxu3  ;;  %v1569_v30 = vpop.f32.mrf.mxu0  ;;  %v4154_v0 = vld [vmem:[#allocation2 + $0x181] sm:$0xff] }
 0x16c   : > { %v1361_v36 = vadd.f32 %v1289_v57, %v1084_v37  ;;  %v857_v37 = vld [vmem:[#allocation2 + $0x16a] sm:$0xff] }
 0x16d   : > { %v773_v4 = vpop.f32.mrf.mxu1  ;;  %3183 = vmatmul.msk.f32.gmra.mxu0 %vm247_vm1, %v3707_v8  ;;  %v1134_v8 = vld [vmem:[#allocation2 + $0x180] sm:$0xff] }
 0x16e   : > { %v4147_v2 = vadd.f32 %v1566_v31, %v1361_v36  ;;  %3117 = vmatmul.msk.f32.gmra.mxu2 %vm247_vm1, %v4143_v28  ;;  %v774_v56 = vadd.f32 %v773_v4, %v3905_v63 }
 0x16f   : > { %3150 = vmatmul.msk.f32.gmra.mxu3 %vm247_vm1, %v1133_v13 }
 0x170   : > { %4582 = vst [vmem:[#allocation45_spill] sm:$0xff] %v4147_v2  ;;  %3085 = vmatmul.msk.f32.gmra.mxu1 %vm247_vm1, %v1132_v58 }
 0x171   : > { %v1015_v50 = vpop.f32.mrf.mxu2 }
 0x172   : > { %v1085_v61 = vadd.f32 %v1015_v50, %v771_v51  ;;  %v1292_v45 = vpop.f32.mrf.mxu3  ;;  %v1572_v40 = vpop.f32.mrf.mxu0 }
 0x174   : > { %v1362_v57 = vadd.f32 %v1292_v45, %v1085_v61  ;;  %v1412_v61 = vld [vmem:[#allocation2 + $0x189] sm:$0xff]  ;;  %v858_v45 = vld [vmem:[#allocation2 + $0x172] sm:$0xff] }
 0x175   : > { %v776_v31 = vpop.f32.mrf.mxu1  ;;  %3184 = vmatmul.msk.f32.gmra.mxu0 %vm247_vm1, %v4154_v0 }
 0x176   : > { %v4158_v36 = vadd.f32 %v1569_v30, %v1362_v57  ;;  %3118 = vmatmul.msk.f32.gmra.mxu2 %vm247_vm1, %v857_v37  ;;  %v777_v63 = vadd.f32 %v776_v31, %v3925_v5 }
 0x177   : > { %3151 = vmatmul.msk.f32.gmra.mxu3 %vm247_vm1, %v1134_v8 }
 0x178   : > { %3086 = vmatmul.msk.f32.gmra.mxu1 %vm247_vm1, %v1133_v13 }
 0x179   : > { %v1018_v58 = vpop.f32.mrf.mxu2 }
 0x17a   : > { %v1086_v62 = vadd.f32 %v1018_v58, %v774_v56  ;;  %v1295_v51 = vpop.f32.mrf.mxu3  ;;  %v1575_v50 = vpop.f32.mrf.mxu0 }
 0x17c   : > { %v1363_v2 = vadd.f32 %v1295_v51, %v1086_v62 }
 0x17d   : > { %v779_v41 = vpop.f32.mrf.mxu1  ;;  %3185 = vmatmul.msk.f32.gmra.mxu0 %vm247_vm1, %v1412_v61 }
 0x17e   : > { %v4165_v30 = vadd.f32 %v1572_v40, %v1363_v2  ;;  %3119 = vmatmul.msk.f32.gmra.mxu2 %vm247_vm1, %v858_v45  ;;  %v780_v5 = vadd.f32 %v779_v41, %v3813_v14 }
 0x17f   : > { %3152 = vmatmul.msk.f32.gmra.mxu3 %vm247_vm1, %v1135_v11 }
 0x180   : > { %3187 = vmatmul.msk.f32.vlgmr.msra.gmra.mxu1 %vm247_vm1, %v3726_v18 }
 0x181   : > { %v1021_v13 = vpop.f32.mrf.mxu2 }
 0x182   : > { %v1087_v4 = vadd.f32 %v1021_v13, %v777_v63  ;;  %v1298_v37 = vpop.f32.mrf.mxu3  ;;  %v1578_v57 = vpop.f32.mrf.mxu0 }
 0x184   : > { %v1364_v8 = vadd.f32 %v1298_v37, %v1087_v4 }
 0x185   : > { %v782_v56 = vpop.f32.mrf.mxu1  ;;  %3286 = vmatmul.msk.f32.vlgmr.msra.gmra.mxu0 %vm247_vm1, %v3749_v22 }
 0x186   : > { %v4174_v2 = vadd.f32 %v1575_v50, %v1364_v8  ;;  %3220 = vmatmul.msk.f32.vlgmr.msra.gmra.mxu2 %vm247_vm1, %v3728_v19 }
 0x187   : > { %3253 = vmatmul.msk.f32.vlgmr.msra.gmra.mxu3 %vm247_vm1, %v3639_v53  ;;  %v783_v53 = vadd.f32 %v782_v56, %v3835_v44  ;;  %v2217_v56 = vld [vmem:[#allocation2 + $0x61] sm:$0xff] }
 0x188   : > { %3188 = vmatmul.msk.f32.gmra.mxu1 %vm247_vm1, %v3737_v20 }
 0x189   : > { %v1024_v18 = vpop.f32.mrf.mxu2 }
 0x18a   : > { %v1088_v11 = vadd.f32 %v1024_v18, %v780_v5  ;;  %v1301_v40 = vpop.f32.mrf.mxu3  ;;  %v1581_v31 = vpop.f32.mrf.mxu0 }
 0x18c   : > { %v1365_v58 = vadd.f32 %v1301_v40, %v1088_v11 }
 0x18d   : > { %v785_v62 = vpop.f32.mrf.mxu1  ;;  %3287 = vmatmul.msk.f32.gmra.mxu0 %vm247_vm1, %v3761_v24 }
 0x18e   : > { %v4185_v51 = vadd.f32 %v1578_v57, %v1365_v58  ;;  %3221 = vmatmul.msk.f32.gmra.mxu2 %vm247_vm1, %v3739_v21  ;;  %v2218_v58 = vld [vmem:[#allocation2 + $0x69] sm:$0xff] }
 0x18f   : > { %3254 = vmatmul.msk.f32.gmra.mxu3 %vm247_vm1, %v3667_v60  ;;  %v786_v60 = vadd.f32 %v785_v62, %v3855_v52 }
 0x190   : > { %3189 = vmatmul.msk.f32.gmra.mxu1 %vm247_vm1, %v3749_v22 }
 0x191   : > { %v1027_v19 = vpop.f32.mrf.mxu2 }
 0x192   : > { %v1089_v20 = vadd.f32 %v1027_v19, %v783_v53  ;;  %v1304_v14 = vpop.f32.mrf.mxu3  ;;  %v1584_v41 = vpop.f32.mrf.mxu0  ;;  %v4584_v53 = vld [vmem:[#allocation6_spill] sm:$0xff] }
 0x194   : > { %v1366_v50 = vadd.f32 %v1304_v14, %v1089_v20  ;;  %v4586_v20 = vld [vmem:[#allocation21_spill] sm:$0xff] }
 0x195   : > { %v788_v61 = vpop.f32.mrf.mxu1  ;;  %3288 = vmatmul.msk.f32.gmra.mxu0 %vm247_vm1, %v3773_v27 }
 0x196   : > { %v4196_v45 = vadd.f32 %v1581_v31, %v1366_v50  ;;  %3222 = vmatmul.msk.f32.gmra.mxu2 %vm247_vm1, %v3751_v23 }
 0x197   : > { %3255 = vmatmul.msk.f32.gmra.mxu3 %vm247_vm1, %v3687_v1  ;;  %v789_v1 = vadd.f32 %v788_v61, %v3875_v9 }
 0x198   : > { %3190 = vmatmul.msk.f32.gmra.mxu1 %vm247_vm1, %v3761_v24 }
 0x199   : > { %v1030_v21 = vpop.f32.mrf.mxu2 }
 0x19a   : > { %v1090_v22 = vadd.f32 %v1030_v21, %v786_v60  ;;  %v1307_v44 = vpop.f32.mrf.mxu3  ;;  %v1587_v63 = vpop.f32.mrf.mxu0  ;;  %v2219_v21 = vld [vmem:[#allocation2 + $0x79] sm:$0xff] }
 0x19c   : > { %v1367_v13 = vadd.f32 %v1307_v44, %v1090_v22  ;;  %v4587_v44 = vld [vmem:[#allocation9_spill] sm:$0xff] }
 0x19d   : > { %v791_v4 = vpop.f32.mrf.mxu1  ;;  %3289 = vmatmul.msk.f32.gmra.mxu0 %vm247_vm1, %v3787_v32 }
 0x19e   : > { %v4207_v37 = vadd.f32 %v1584_v41, %v1367_v13  ;;  %3223 = vmatmul.msk.f32.gmra.mxu2 %vm247_vm1, %v3763_v25  ;;  %v4588_v13 = vld [vmem:[#allocation4_spill] sm:$0xff] }
 0x19f   : > { %3256 = vmatmul.msk.f32.gmra.mxu3 %vm247_vm1, %v3703_v6  ;;  %v4583_v6 = vld [vmem:[#allocation17_spill] sm:$0xff] }
 0x1a0   : > { %3191 = vmatmul.msk.f32.gmra.mxu1 %vm247_vm1, %v3773_v27  ;;  %v792_v25 = vadd.f32 %v791_v4, %v4583_v6  ;;  %v4589_v4 = vld [vmem:[#allocation25_spill] sm:$0xff] }
 0x1a1   : > { %v1033_v23 = vpop.f32.mrf.mxu2 }
 0x1a2   : > { %v1091_v24 = vadd.f32 %v1033_v23, %v789_v1  ;;  %v1310_v52 = vpop.f32.mrf.mxu3  ;;  %v1590_v57 = vpop.f32.mrf.mxu0 }
 0x1a4   : > { %v1368_v8 = vadd.f32 %v1310_v52, %v1091_v24 }
 0x1a5   : > { %v794_v5 = vpop.f32.mrf.mxu1  ;;  %3290 = vmatmul.msk.f32.gmra.mxu0 %vm247_vm1, %v3801_v34 }
 0x1a6   : > { %v4218_v18 = vadd.f32 %v1587_v63, %v1368_v8  ;;  %3224 = vmatmul.msk.f32.gmra.mxu2 %vm247_vm1, %v3775_v29  ;;  %v4585_v29 = vld [vmem:[#allocation3_spill] sm:$0xff]  ;;  %v795_v14 = vadd.f32 %v794_v5, %v4586_v20  ;;  %v2220_v8 = vld [vmem:[#allocation2 + $0x81] sm:$0xff]  ;;  %v4590_v5 = vld [vmem:[#allocation12_spill] sm:$0xff] }
 0x1a7   : > { %3257 = vmatmul.msk.f32.gmra.mxu3 %vm247_vm1, %v2217_v56  ;;  %v4593_v20 = vld [vmem:[#allocation15_spill] sm:$0xff] }
 0x1a8   : > { %3192 = vmatmul.msk.f32.gmra.mxu1 %vm247_vm1, %v3787_v32 }
 0x1a9   : > { %v1036_v27 = vpop.f32.mrf.mxu2 }
 0x1aa   : > { %v1092_v9 = vadd.f32 %v1036_v27, %v792_v25  ;;  %v1313_v11 = vpop.f32.mrf.mxu3  ;;  %v1593_v40 = vpop.f32.mrf.mxu0  ;;  %v4591_v25 = vld [vmem:[#allocation7_spill] sm:$0xff]  ;;  %v4592_v27 = vld [vmem:[#allocation28_spill] sm:$0xff] }
 0x1ac   : > { %v1369_v31 = vadd.f32 %v1313_v11, %v1092_v9 }
 0x1ad   : > { %v797_v62 = vpop.f32.mrf.mxu1  ;;  %3291 = vmatmul.msk.f32.gmra.mxu0 %vm247_vm1, %v4584_v53 }
 0x1ae   : > { %v4228_v19 = vadd.f32 %v1590_v57, %v1369_v31  ;;  %3225 = vmatmul.msk.f32.gmra.mxu2 %vm247_vm1, %v4585_v29  ;;  %v798_v1 = vadd.f32 %v797_v62, %v4589_v4 }
 0x1af   : > { %3258 = vmatmul.msk.f32.gmra.mxu3 %vm247_vm1, %v2218_v58 }
 0x1b0   : > { %3193 = vmatmul.msk.f32.gmra.mxu1 %vm247_vm1, %v3801_v34 }
 0x1b1   : > { %v1039_v32 = vpop.f32.mrf.mxu2 }
 0x1b2   : > { %v1093_v41 = vadd.f32 %v1039_v32, %v795_v14  ;;  %v1316_v50 = vpop.f32.mrf.mxu3  ;;  %v1596_v61 = vpop.f32.mrf.mxu0  ;;  %v4594_v32 = vld [vmem:[#allocation10_spill] sm:$0xff] }
 0x1b4   : > { %v1370_v60 = vadd.f32 %v1316_v50, %v1093_v41  ;;  %v4595_v41 = vld [vmem:[#allocation5_spill] sm:$0xff] }
 0x1b5   : > { %v800_v22 = vpop.f32.mrf.mxu1  ;;  %3292 = vmatmul.msk.f32.gmra.mxu0 %vm247_vm1, %v4587_v44 }
 0x1b6   : > { %v4238_v63 = vadd.f32 %v1593_v40, %v1370_v60  ;;  %3226 = vmatmul.msk.f32.gmra.mxu2 %vm247_vm1, %v4588_v13  ;;  %v801_v9 = vadd.f32 %v800_v22, %v4592_v27  ;;  %v2222_v13 = vld [vmem:[#allocation2 + $0x99] sm:$0xff]  ;;  %v2223_v27 = vld [vmem:[#allocation2 + $0xa9] sm:$0xff] }
 0x1b7   : > { %3259 = vmatmul.msk.f32.gmra.mxu3 %vm247_vm1, %v2219_v21 }
 0x1b8   : > { %3194 = vmatmul.msk.f32.gmra.mxu1 %vm247_vm1, %v4584_v53  ;;  %v2221_v53 = vld [vmem:[#allocation2 + $0x91] sm:$0xff] }
 0x1b9   : > { %v1042_v34 = vpop.f32.mrf.mxu2 }
 0x1ba   : > { %v1094_v23 = vadd.f32 %v1042_v34, %v798_v1  ;;  %v1319_v24 = vpop.f32.mrf.mxu3  ;;  %v1599_v52 = vpop.f32.mrf.mxu0  ;;  %v4596_v1 = vld [vmem:[#allocation19_spill] sm:$0xff] }
 0x1bc   : > { %v1371_v57 = vadd.f32 %v1319_v24, %v1094_v23  ;;  %v4597_v23 = vld [vmem:[#allocation13_spill] sm:$0xff]  ;;  %v4598_v24 = vld [vmem:[#allocation8_spill] sm:$0xff] }
 0x1bd   : > { %v803_v56 = vpop.f32.mrf.mxu1  ;;  %3293 = vmatmul.msk.f32.gmra.mxu0 %vm247_vm1, %v4590_v5 }
 0x1be   : > { %v4248_v6 = vadd.f32 %v1596_v61, %v1371_v57  ;;  %3227 = vmatmul.msk.f32.gmra.mxu2 %vm247_vm1, %v4591_v25  ;;  %v804_v50 = vadd.f32 %v803_v56, %v4595_v41 }
 0x1bf   : > { %3260 = vmatmul.msk.f32.gmra.mxu3 %vm247_vm1, %v2220_v8 }
 0x1c0   : > { %3195 = vmatmul.msk.f32.gmra.mxu1 %vm247_vm1, %v4587_v44 }
 0x1c1   : > { %v1045_v11 = vpop.f32.mrf.mxu2 }
 0x1c2   : > { %v1095_v40 = vadd.f32 %v1045_v11, %v801_v9  ;;  %v1322_v31 = vpop.f32.mrf.mxu3  ;;  %v1602_v58 = vpop.f32.mrf.mxu0  ;;  %v4599_v11 = vld [vmem:[#allocation23_spill] sm:$0xff] }
 0x1c4   : > { %v1372_v62 = vadd.f32 %v1322_v31, %v1095_v40  ;;  %v4600_v31 = vld [vmem:[#allocation16_spill] sm:$0xff] }
 0x1c5   : > { %v806_v29 = vpop.f32.mrf.mxu1  ;;  %3294 = vmatmul.msk.f32.gmra.mxu0 %vm247_vm1, %v4593_v20 }
 0x1c6   : > { %v4258_v14 = vadd.f32 %v1599_v52, %v1372_v62  ;;  %3228 = vmatmul.msk.f32.gmra.mxu2 %vm247_vm1, %v4594_v32  ;;  %v807_v52 = vadd.f32 %v806_v29, %v4598_v24 }
 0x1c7   : > { %3261 = vmatmul.msk.f32.gmra.mxu3 %vm247_vm1, %v2221_v53 }
 0x1c8   : > { %3196 = vmatmul.msk.f32.gmra.mxu1 %vm247_vm1, %v4590_v5 }
 0x1c9   : > { %v1048_v61 = vpop.f32.mrf.mxu2 }
 0x1ca   : > { %v1096_v60 = vadd.f32 %v1048_v61, %v804_v50  ;;  %v1325_v21 = vpop.f32.mrf.mxu3  ;;  %v1605_v22 = vpop.f32.mrf.mxu0  ;;  %v2224_v50 = vld [vmem:[#allocation2 + $0xb1] sm:$0xff] }
 0x1cc   : > { %v1373_v44 = vadd.f32 %v1325_v21, %v1096_v60  ;;  %v4602_v60 = vld [vmem:[#allocation27_spill] sm:$0xff] }
 0x1cd   : > { %v809_v4 = vpop.f32.mrf.mxu1  ;;  %3295 = vmatmul.msk.f32.gmra.mxu0 %vm247_vm1, %v4596_v1 }
 0x1ce   : > { %v4268_v34 = vadd.f32 %v1602_v58, %v1373_v44  ;;  %3229 = vmatmul.msk.f32.gmra.mxu2 %vm247_vm1, %v4597_v23  ;;  %v4601_v58 = vld [vmem:[#allocation11_spill] sm:$0xff]  ;;  %v4604_v44 = vld [vmem:[#allocation14_spill] sm:$0xff] }
 0x1cf   : > { %3262 = vmatmul.msk.f32.gmra.mxu3 %vm247_vm1, %v2222_v13  ;;  %v810_v62 = vadd.f32 %v809_v4, %v4601_v58 }
 0x1d0   : > { %3197 = vmatmul.msk.f32.gmra.mxu1 %vm247_vm1, %v4593_v20 }
 0x1d1   : > { %v1051_v57 = vpop.f32.mrf.mxu2 }
 0x1d2   : > { %v1097_v8 = vadd.f32 %v1051_v57, %v807_v52  ;;  %v1328_v56 = vpop.f32.mrf.mxu3  ;;  %v1608_v5 = vpop.f32.mrf.mxu0  ;;  %v2225_v57 = vld [vmem:[#allocation2 + $0xc1] sm:$0xff] }
 0x1d4   : > { %v1374_v25 = vadd.f32 %v1328_v56, %v1097_v8  ;;  %v4605_v56 = vld [vmem:[#allocation30_spill] sm:$0xff] }
 0x1d5   : > { %v812_v9 = vpop.f32.mrf.mxu1  ;;  %3296 = vmatmul.msk.f32.gmra.mxu0 %vm247_vm1, %v4599_v11 }
 0x1d6   : > { %v4278_v40 = vadd.f32 %v1605_v22, %v1374_v25  ;;  %3230 = vmatmul.msk.f32.gmra.mxu2 %vm247_vm1, %v4600_v31  ;;  %v4603_v22 = vld [vmem:[#allocation20_spill] sm:$0xff]  ;;  %v813_v13 = vadd.f32 %v812_v9, %v4604_v44 }
 0x1d7   : > { %3263 = vmatmul.msk.f32.gmra.mxu3 %vm247_vm1, %v2223_v27  ;;  %v4606_v25 = vld [vmem:[#allocation24_spill] sm:$0xff]  ;;  %v4607_v27 = vld [vmem:[#allocation18_spill] sm:$0xff] }
 0x1d8   : > { %3198 = vmatmul.msk.f32.gmra.mxu1 %vm247_vm1, %v4596_v1 }
 0x1d9   : > { %v1054_v53 = vpop.f32.mrf.mxu2 }
 0x1da   : > { %v1098_v29 = vadd.f32 %v1054_v53, %v810_v62  ;;  %v1331_v20 = vpop.f32.mrf.mxu3  ;;  %v1611_v32 = vpop.f32.mrf.mxu0 }
 0x1dc   : > { %v1375_v41 = vadd.f32 %v1331_v20, %v1098_v29  ;;  %v2226_v29 = vld [vmem:[#allocation2 + $0xc9] sm:$0xff] }
 0x1dd   : > { %v815_v61 = vpop.f32.mrf.mxu1  ;;  %3297 = vmatmul.msk.f32.gmra.mxu0 %vm247_vm1, %v4602_v60 }
 0x1de   : > { %v4288_v21 = vadd.f32 %v1608_v5, %v1375_v41  ;;  %3231 = vmatmul.msk.f32.gmra.mxu2 %vm247_vm1, %v4603_v22  ;;  %v816_v9 = vadd.f32 %v815_v61, %v4607_v27  ;;  %v4608_v41 = vld [vmem:[#allocation22_spill] sm:$0xff] }
 0x1df   : > { %3264 = vmatmul.msk.f32.gmra.mxu3 %vm247_vm1, %v2224_v50  ;;  %v2228_v27 = vld [vmem:[#allocation2 + $0xe1] sm:$0xff] }
 0x1e0   : > { %3199 = vmatmul.msk.f32.gmra.mxu1 %vm247_vm1, %v4599_v11 }
 0x1e1   : > { %v1057_v4 = vpop.f32.mrf.mxu2 }
 0x1e2   : > { %v1099_v1 = vadd.f32 %v1057_v4, %v813_v13  ;;  %v1334_v23 = vpop.f32.mrf.mxu3  ;;  %v1614_v24 = vpop.f32.mrf.mxu0  ;;  %v2227_v4 = vld [vmem:[#allocation2 + $0xd9] sm:$0xff] }
 0x1e4   : > { %v1376_v52 = vadd.f32 %v1334_v23, %v1099_v1 }
 0x1e5   : > { %v818_v8 = vpop.f32.mrf.mxu1  ;;  %3298 = vmatmul.msk.f32.gmra.mxu0 %vm247_vm1, %v4605_v56 }
 0x1e6   : > { %v4298_v5 = vadd.f32 %v1611_v32, %v1376_v52  ;;  %3232 = vmatmul.msk.f32.gmra.mxu2 %vm247_vm1, %v4606_v25  ;;  %v819_v50 = vadd.f32 %v818_v8, %v4608_v41 }
 0x1e7   : > { %3265 = vmatmul.msk.f32.gmra.mxu3 %vm247_vm1, %v2225_v57 }
 0x1e8   : > { %3200 = vmatmul.msk.f32.gmra.mxu1 %vm247_vm1, %v4602_v60 }
 0x1e9   : > { %v1060_v11 = vpop.f32.mrf.mxu2 }
 0x1ea   : > { %v1100_v31 = vadd.f32 %v1060_v11, %v816_v9  ;;  %v1337_v58 = vpop.f32.mrf.mxu3  ;;  %v1617_v62 = vpop.f32.mrf.mxu0 }
 0x1ec   : > { %v1377_v53 = vadd.f32 %v1337_v58, %v1100_v31 }
 0x1ed   : > { %v821_v20 = vpop.f32.mrf.mxu1  ;;  %3299 = vmatmul.msk.f32.gmra.mxu0 %vm247_vm1, %v3970_v33 }
 0x1ee   : > { %v4308_v32 = vadd.f32 %v1614_v24, %v1377_v53  ;;  %3233 = vmatmul.msk.f32.gmra.mxu2 %vm247_vm1, %v3943_v38  ;;  %v4609_v38 = vld [vmem:[#allocation26_spill] sm:$0xff] }
 0x1ef   : > { %3266 = vmatmul.msk.f32.gmra.mxu3 %vm247_vm1, %v2226_v29  ;;  %v822_v24 = vadd.f32 %v821_v20, %v4609_v38  ;;  %v2229_v20 = vld [vmem:[#allocation2 + $0xf1] sm:$0xff] }
 0x1f0   : > { %3201 = vmatmul.msk.f32.gmra.mxu1 %vm247_vm1, %v4605_v56 }
 0x1f1   : > { %v1063_v61 = vpop.f32.mrf.mxu2 }
 0x1f2   : > { %v1101_v60 = vadd.f32 %v1063_v61, %v819_v50  ;;  %v1340_v22 = vpop.f32.mrf.mxu3  ;;  %v1620_v44 = vpop.f32.mrf.mxu0 }
 0x1f4   : > { %v1378_v13 = vadd.f32 %v1340_v22, %v1101_v60 }
 0x1f5   : > { %v824_v1 = vpop.f32.mrf.mxu1  ;;  %3300 = vmatmul.msk.f32.gmra.mxu0 %vm247_vm1, %v3985_v26 }
 0x1f6   : > { %v4318_v23 = vadd.f32 %v1617_v62, %v1378_v13  ;;  %3234 = vmatmul.msk.f32.gmra.mxu2 %vm247_vm1, %v3959_v47  ;;  %v4610_v47 = vld [vmem:[#allocation29_spill] sm:$0xff] }
 0x1f7   : > { %3267 = vmatmul.msk.f32.gmra.mxu3 %vm247_vm1, %v2227_v4  ;;  %v825_v31 = vadd.f32 %v824_v1, %v4610_v47  ;;  %v2230_v4 = vld [vmem:[#allocation2 + $0xf9] sm:$0xff] }
 0x1f8   : > { %3202 = vmatmul.msk.f32.gmra.mxu1 %vm247_vm1, %v3970_v33 }
 0x1f9   : > { %v1066_v52 = vpop.f32.mrf.mxu2 }
 0x1fa   : > { %v1102_v57 = vadd.f32 %v1066_v52, %v822_v24  ;;  %v1343_v8 = vpop.f32.mrf.mxu3  ;;  %v1623_v56 = vpop.f32.mrf.mxu0 }
 0x1fc   : > { %v1379_v25 = vadd.f32 %v1343_v8, %v1102_v57 }
 0x1fd   : > { %v1807_v9 = vpop.f32.mrf.mxu1  ;;  %3301 = vmatmul.msk.f32.gmra.mxu0 %vm247_vm1, %v4000_v59 }
 0x1fe   : > { %v4328_v11 = vadd.f32 %v1620_v44, %v1379_v25  ;;  %3235 = vmatmul.msk.f32.gmra.mxu2 %vm247_vm1, %v3972_v17  ;;  %v4611_v17 = vld [vmem:[#allocation31_spill] sm:$0xff] }
 0x1ff   : > { %3268 = vmatmul.msk.f32.gmra.mxu3 %vm247_vm1, %v2228_v27  ;;  %v2231_v25 = vld [vmem:[#allocation2 + $0x109] sm:$0xff] }
 0x200   : > { %3203 = vmatmul.msk.f32.gmra.mxu1 %vm247_vm1, %v3985_v26  ;;  %v1903_v26 = vadd.f32 %v1807_v9, %v4611_v17  ;;  %v4613_v9 = vld [vmem:[#allocation33_spill] sm:$0xff]  ;;  %v2232_v17 = vld [vmem:[#allocation2 + $0x111] sm:$0xff] }
 0x201   : > { %v1069_v33 = vpop.f32.mrf.mxu2 }
 0x202   : > { %v1103_v58 = vadd.f32 %v1069_v33, %v825_v31  ;;  %v1346_v62 = vpop.f32.mrf.mxu3  ;;  %v2639_v53 = vpop.f32.mrf.mxu0 }
 0x204   : > { %v1380_v29 = vadd.f32 %v1346_v62, %v1103_v58 }
 0x205   : > { %v1810_v41 = vpop.f32.mrf.mxu1  ;;  %3302 = vmatmul.msk.f32.gmra.mxu0 %vm247_vm1, %v4015_v39 }
 0x206   : > { %v4338_v50 = vadd.f32 %v1623_v56, %v1380_v29  ;;  %3236 = vmatmul.msk.f32.gmra.mxu2 %vm247_vm1, %v3987_v42 }
 0x207   : > { %3269 = vmatmul.msk.f32.gmra.mxu3 %vm247_vm1, %v2229_v20 }
 0x208   : > { %3204 = vmatmul.msk.f32.gmra.mxu1 %vm247_vm1, %v4000_v59  ;;  %v4612_v59 = vld [vmem:[#allocation32_spill] sm:$0xff] }
 0x209   : > { %v2085_v61 = vpop.f32.mrf.mxu2  ;;  %v1904_v38 = vadd.f32 %v1810_v41, %v4612_v59 }
 0x20a   : > { %v2181_v60 = vadd.f32 %v2085_v61, %v1903_v26  ;;  %v2362_v22 = vpop.f32.mrf.mxu3  ;;  %v2642_v44 = vpop.f32.mrf.mxu0  ;;  %v4614_v61 = vld [vmem:[#allocation34_spill] sm:$0xff] }
 0x20c   : > { %v2458_v13 = vadd.f32 %v2362_v22, %v2181_v60 }
 0x20d   : > { %v1813_v42 = vpop.f32.mrf.mxu1  ;;  %3303 = vmatmul.msk.f32.gmra.mxu0 %vm247_vm1, %v4030_v10 }
 0x20e   : > { %v2735_v1 = vadd.f32 %v2639_v53, %v2458_v13  ;;  %3237 = vmatmul.msk.f32.gmra.mxu2 %vm247_vm1, %v4002_v16  ;;  %v1905_v47 = vadd.f32 %v1813_v42, %v4613_v9 }
 0x20f   : > { %3270 = vmatmul.msk.f32.gmra.mxu3 %vm247_vm1, %v2230_v4 }
 0x210   : > { %2767 = vst [vmem:[%s4351_s17] sm:$0xff] %v2735_v1  ;;  %3205 = vmatmul.msk.f32.gmra.mxu1 %vm247_vm1, %v4015_v39  ;;  %v2837_v31 = vmul.f32 %v2735_v1, %v2735_v1 }
 0x211   : > { %v2088_v24 = vpop.f32.mrf.mxu2 }
 0x212   : > { %v2182_v52 = vadd.f32 %v2088_v24, %v1904_v38  ;;  %v2365_v57 = vpop.f32.mrf.mxu3  ;;  %v2645_v8 = vpop.f32.mrf.mxu0  ;;  %v2233_v38 = vld [vmem:[#allocation2 + $0x121] sm:$0xff] }
 0x214   : > { %v2459_v56 = vadd.f32 %v2365_v57, %v2182_v52  ;;  %v4615_v52 = vld [vmem:[#allocation35_spill] sm:$0xff] }
 0x215   : > { %v1816_v27 = vpop.f32.mrf.mxu1  ;;  %3304 = vmatmul.msk.f32.gmra.mxu0 %vm247_vm1, %v4045_v35 }
 0x216   : > { %v2736_v16 = vadd.f32 %v2642_v44, %v2459_v56  ;;  %3238 = vmatmul.msk.f32.gmra.mxu2 %vm247_vm1, %v4017_v12  ;;  %v1906_v60 = vadd.f32 %v1816_v27, %v4614_v61  ;;  %v2235_v61 = vld [vmem:[#allocation2 + $0x139] sm:$0xff] }
 0x217   : > { %3271 = vmatmul.msk.f32.gmra.mxu3 %vm247_vm1, %v2231_v25 }
 0x218   : > { %2768 = vst [vmem:[%s4351_s17 + $0x8] sm:$0xff] %v2736_v16  ;;  %v2799_v39 = vadd.f32 %v2736_v16, %v2735_v1  ;;  %v2838_v33 = vmul.f32 %v2736_v16, %v2736_v16  ;;  %3206 = vmatmul.msk.f32.gmra.mxu1 %vm247_vm1, %v4030_v10 }
 0x219   : > { %v2091_v58 = vpop.f32.mrf.mxu2 }
 0x21a   : > { %v2869_v62 = vadd.f32 %v2838_v33, %v2837_v31  ;;  %v2183_v53 = vadd.f32 %v2091_v58, %v1905_v47  ;;  %v2368_v29 = vpop.f32.mrf.mxu3  ;;  %v2648_v20 = vpop.f32.mrf.mxu0  ;;  %v2234_v31 = vld [vmem:[#allocation2 + $0x129] sm:$0xff]  ;;  %v4616_v33 = vld [vmem:[#allocation37_spill] sm:$0xff]  ;;  %v4617_v58 = vld [vmem:[#allocation36_spill] sm:$0xff] }
 0x21c   : > { %v2460_v41 = vadd.f32 %v2368_v29, %v2183_v53 }
 0x21d   : > { %v1819_v12 = vpop.f32.mrf.mxu1  ;;  %3305 = vmatmul.msk.f32.gmra.mxu0 %vm247_vm1, %v4060_v15 }
 0x21e   : > { %v2737_v26 = vadd.f32 %v2645_v8, %v2460_v41  ;;  %3239 = vmatmul.msk.f32.gmra.mxu2 %vm247_vm1, %v4032_v43  ;;  %v1907_v57 = vadd.f32 %v1819_v12, %v4615_v52 }
 0x21f   : > { %3272 = vmatmul.msk.f32.gmra.mxu3 %vm247_vm1, %v2232_v17 }
 0x220   : > { %2769 = vst [vmem:[%s4351_s17 + $0x10] sm:$0xff] %v2737_v26  ;;  %v2800_v10 = vadd.f32 %v2799_v39, %v2737_v26  ;;  %v2839_v22 = vmul.f32 %v2737_v26, %v2737_v26  ;;  %3207 = vmatmul.msk.f32.gmra.mxu1 %vm247_vm1, %v4045_v35 }
 0x221   : > { %v2094_v44 = vpop.f32.mrf.mxu2 }
 0x222   : > { %v2870_v13 = vadd.f32 %v2869_v62, %v2839_v22  ;;  %v2184_v4 = vadd.f32 %v2094_v44, %v1906_v60  ;;  %v2371_v42 = vpop.f32.mrf.mxu3  ;;  %v2651_v1 = vpop.f32.mrf.mxu0  ;;  %v4618_v22 = vld [vmem:[#allocation38_spill] sm:$0xff] }
 0x224   : > { %v2461_v59 = vadd.f32 %v2371_v42, %v2184_v4 }
 0x225   : > { %v1822_v24 = vpop.f32.mrf.mxu1  ;;  %3306 = vmatmul.msk.f32.gmra.mxu0 %vm247_vm1, %v4075_v48 }
 0x226   : > { %v2738_v43 = vadd.f32 %v2648_v20, %v2461_v59  ;;  %3240 = vmatmul.msk.f32.gmra.mxu2 %vm247_vm1, %v4047_v3  ;;  %v1908_v62 = vadd.f32 %v1822_v24, %v4617_v58  ;;  %v2236_v24 = vld [vmem:[#allocation2 + $0x141] sm:$0xff] }
 0x227   : > { %3273 = vmatmul.msk.f32.gmra.mxu3 %vm247_vm1, %v2233_v38 }
 0x228   : > { %2770 = vst [vmem:[%s4351_s17 + $0x18] sm:$0xff] %v2738_v43  ;;  %v2801_v35 = vadd.f32 %v2800_v10, %v2738_v43  ;;  %v2840_v8 = vmul.f32 %v2738_v43, %v2738_v43  ;;  %3208 = vmatmul.msk.f32.gmra.mxu1 %vm247_vm1, %v4060_v15 }
 0x229   : > { %v2097_v56 = vpop.f32.mrf.mxu2 }
 0x22a   : > { %v2871_v25 = vadd.f32 %v2870_v13, %v2840_v8  ;;  %v2185_v27 = vadd.f32 %v2097_v56, %v1907_v57  ;;  %v2374_v16 = vpop.f32.mrf.mxu3  ;;  %v2654_v9 = vpop.f32.mrf.mxu0  ;;  %v4619_v57 = vld [vmem:[#allocation40_spill] sm:$0xff] }
 0x22c   : > { %v2462_v47 = vadd.f32 %v2374_v16, %v2185_v27 }
 0x22d   : > { %v1825_v39 = vpop.f32.mrf.mxu1  ;;  %3307 = vmatmul.msk.f32.gmra.mxu0 %vm247_vm1, %v4090_v54 }
 0x22e   : > { %v2739_v3 = vadd.f32 %v2651_v1, %v2462_v47  ;;  %3241 = vmatmul.msk.f32.gmra.mxu2 %vm247_vm1, %v4616_v33  ;;  %v1909_v44 = vadd.f32 %v1825_v39, %v4618_v22  ;;  %v2237_v39 = vld [vmem:[#allocation2 + $0x151] sm:$0xff]  ;;  %v1683_v33 = vld [vmem:[#allocation2 + $0x142] sm:$0xff] }
 0x22f   : > { %3274 = vmatmul.msk.f32.gmra.mxu3 %vm247_vm1, %v2234_v31  ;;  %v1684_v22 = vld [vmem:[#allocation2 + $0x152] sm:$0xff] }
 0x230   : > { %2771 = vst [vmem:[%s4351_s17 + $0x20] sm:$0xff] %v2739_v3  ;;  %v2802_v15 = vadd.f32 %v2801_v35, %v2739_v3  ;;  %v2841_v53 = vmul.f32 %v2739_v3, %v2739_v3  ;;  %3209 = vmatmul.msk.f32.gmra.mxu1 %vm247_vm1, %v4075_v48  ;;  %v4620_v35 = vld [vmem:[#allocation39_spill] sm:$0xff] }
 0x231   : > { %v2100_v29 = vpop.f32.mrf.mxu2 }
 0x232   : > { %v2872_v20 = vadd.f32 %v2871_v25, %v2841_v53  ;;  %v2186_v41 = vadd.f32 %v2100_v29, %v1908_v62  ;;  %v2377_v17 = vpop.f32.mrf.mxu3  ;;  %v2657_v12 = vpop.f32.mrf.mxu0  ;;  %v4621_v62 = vld [vmem:[#allocation41_spill] sm:$0xff] }
 0x234   : > { %v2463_v26 = vadd.f32 %v2377_v17, %v2186_v41 }
 0x235   : > { %v1828_v60 = vpop.f32.mrf.mxu1  ;;  %3308 = vmatmul.msk.f32.gmra.mxu0 %vm247_vm1, %v4107_v49 }
 0x236   : > { %v2740_v10 = vadd.f32 %v2654_v9, %v2463_v26  ;;  %3242 = vmatmul.msk.f32.gmra.mxu2 %vm247_vm1, %v4077_v46  ;;  %v1682_v46 = vld [vmem:[#allocation2 + $0x13a] sm:$0xff] }
 0x237   : > { %3275 = vmatmul.msk.f32.gmra.mxu3 %vm247_vm1, %v2235_v61  ;;  %v1961_v61 = vld [vmem:[#allocation2 + $0x158] sm:$0xff] }
 0x238   : > { %2772 = vst [vmem:[%s4351_s17 + $0x28] sm:$0xff] %v2740_v10  ;;  %v2803_v48 = vadd.f32 %v2802_v15, %v2740_v10  ;;  %v2842_v13 = vmul.f32 %v2740_v10, %v2740_v10  ;;  %3210 = vmatmul.msk.f32.gmra.mxu1 %vm247_vm1, %v4090_v54  ;;  %v1910_v54 = vadd.f32 %v1828_v60, %v4620_v35  ;;  %v2238_v60 = vld [vmem:[#allocation2 + $0x159] sm:$0xff] }
 0x239   : > { %v2103_v4 = vpop.f32.mrf.mxu2  ;;  %v1685_v35 = vld [vmem:[#allocation2 + $0x15a] sm:$0xff] }
 0x23a   : > { %v2873_v42 = vadd.f32 %v2872_v20, %v2842_v13  ;;  %v2187_v1 = vadd.f32 %v2103_v4, %v1909_v44  ;;  %v2380_v59 = vpop.f32.mrf.mxu3  ;;  %v2660_v49 = vpop.f32.mrf.mxu0 }
 0x23c   : > { %v2464_v38 = vadd.f32 %v2380_v59, %v2187_v1 }
 0x23d   : > { %v1831_v43 = vpop.f32.mrf.mxu1  ;;  %3309 = vmatmul.msk.f32.gmra.mxu0 %vm247_vm1, %v4121_v55  ;;  %v1960_v55 = vld [vmem:[#allocation2 + $0x150] sm:$0xff] }
 0x23e   : > { %v2741_v52 = vadd.f32 %v2657_v12, %v2464_v38  ;;  %3243 = vmatmul.msk.f32.gmra.mxu2 %vm247_vm1, %v4619_v57  ;;  %v1911_v15 = vadd.f32 %v1831_v43, %v4621_v62  ;;  %v2516_v43 = vld [vmem:[#allocation2 + $0x16a] sm:$0xff] }
 0x23f   : > { %3276 = vmatmul.msk.f32.gmra.mxu3 %vm247_vm1, %v2236_v24 }
 0x240   : > { %2773 = vst [vmem:[%s4351_s17 + $0x30] sm:$0xff] %v2741_v52  ;;  %v2804_v8 = vadd.f32 %v2803_v48, %v2741_v52  ;;  %v2843_v56 = vmul.f32 %v2741_v52, %v2741_v52  ;;  %3211 = vmatmul.msk.f32.gmra.mxu1 %vm247_vm1, %v1682_v46  ;;  %v4622_v48 = vld [vmem:[#allocation42_spill] sm:$0xff] }
 0x241   : > { %v2106_v25 = vpop.f32.mrf.mxu2  ;;  %v2239_v52 = vld [vmem:[#allocation2 + $0x169] sm:$0xff] }
 0x242   : > { %v2874_v27 = vadd.f32 %v2873_v42, %v2843_v56  ;;  %v2188_v16 = vadd.f32 %v2106_v25, %v1910_v54  ;;  %v2383_v9 = vpop.f32.mrf.mxu3  ;;  %v2663_v47 = vpop.f32.mrf.mxu0 }
 0x244   : > { %v2465_v31 = vadd.f32 %v2383_v9, %v2188_v16 }
 0x245   : > { %v1834_v3 = vpop.f32.mrf.mxu1  ;;  %3310 = vmatmul.msk.f32.gmra.mxu0 %vm247_vm1, %v4132_v7 }
 0x246   : > { %v2742_v58 = vadd.f32 %v2660_v49, %v2465_v31  ;;  %3244 = vmatmul.msk.f32.gmra.mxu2 %vm247_vm1, %v1960_v55  ;;  %v1912_v13 = vadd.f32 %v1834_v3, %v4622_v48  ;;  %v1963_v3 = vld [vmem:[#allocation2 + $0x170] sm:$0xff] }
 0x247   : > { %3277 = vmatmul.msk.f32.gmra.mxu3 %vm247_vm1, %v2237_v39  ;;  %v2517_v39 = vld [vmem:[#allocation2 + $0x172] sm:$0xff] }
 0x248   : > { %2774 = vst [vmem:[%s4351_s17 + $0x38] sm:$0xff] %v2742_v58  ;;  %v2805_v53 = vadd.f32 %v2804_v8, %v2742_v58  ;;  %v2844_v29 = vmul.f32 %v2742_v58, %v2742_v58  ;;  %3212 = vmatmul.msk.f32.gmra.mxu1 %vm247_vm1, %v1683_v33  ;;  %v4623_v8 = vld [vmem:[#allocation43_spill] sm:$0xff] }
 0x249   : > { %v2109_v20 = vpop.f32.mrf.mxu2  ;;  %v2240_v58 = vld [vmem:[#allocation2 + $0x171] sm:$0xff] }
 0x24a   : > { %v2875_v41 = vadd.f32 %v2874_v27, %v2844_v29  ;;  %v2189_v17 = vadd.f32 %v2109_v20, %v1911_v15  ;;  %v2386_v12 = vpop.f32.mrf.mxu3  ;;  %v2666_v26 = vpop.f32.mrf.mxu0 }
 0x24c   : > { %v2466_v7 = vadd.f32 %v2386_v12, %v2189_v17 }
 0x24d   : > { %v1837_v10 = vpop.f32.mrf.mxu1  ;;  %3311 = vmatmul.msk.f32.gmra.mxu0 %vm247_vm1, %v4143_v28  ;;  %v1962_v28 = vld [vmem:[#allocation2 + $0x168] sm:$0xff] }
 0x24e   : > { %v2743_v44 = vadd.f32 %v2663_v47, %v2466_v7  ;;  %3245 = vmatmul.msk.f32.gmra.mxu2 %vm247_vm1, %v1961_v61  ;;  %v1913_v56 = vadd.f32 %v1837_v10, %v4623_v8  ;;  %v1964_v10 = vld [vmem:[#allocation2 + $0x180] sm:$0xff] }
 0x24f   : > { %3278 = vmatmul.msk.f32.gmra.mxu3 %vm247_vm1, %v2238_v60  ;;  %v2518_v60 = vld [vmem:[#allocation2 + $0x182] sm:$0xff] }
 0x250   : > { %2775 = vst [vmem:[%s4351_s17 + $0x40] sm:$0xff] %v2743_v44  ;;  %v2806_v4 = vadd.f32 %v2805_v53, %v2743_v44  ;;  %v2845_v42 = vmul.f32 %v2743_v44, %v2743_v44  ;;  %3213 = vmatmul.msk.f32.gmra.mxu1 %vm247_vm1, %v1684_v22  ;;  %v4624_v53 = vld [vmem:[#allocation44_spill] sm:$0xff] }
 0x251   : > { %v2112_v1 = vpop.f32.mrf.mxu2 }
 0x252   : > { %v2876_v59 = vadd.f32 %v2875_v41, %v2845_v42  ;;  %v2190_v49 = vadd.f32 %v2112_v1, %v1912_v13  ;;  %v2389_v38 = vpop.f32.mrf.mxu3  ;;  %v2669_v24 = vpop.f32.mrf.mxu0  ;;  %v4625_v13 = vld [vmem:[#allocation45_spill] sm:$0xff] }
 0x254   : > { %v2467_v46 = vadd.f32 %v2389_v38, %v2190_v49 }
 0x255   : > { %v1840_v57 = vpop.f32.mrf.mxu1  ;;  %3312 = vmatmul.msk.f32.gmra.mxu0 %vm247_vm1, %v2516_v43 }
 0x256   : > { %v2744_v54 = vadd.f32 %v2666_v26, %v2467_v46  ;;  %3246 = vmatmul.msk.f32.gmra.mxu2 %vm247_vm1, %v1962_v28  ;;  %v1914_v29 = vadd.f32 %v1840_v57, %v4624_v53  ;;  %v2519_v28 = vld [vmem:[#allocation2 + $0x18a] sm:$0xff] }
 0x257   : > { %3279 = vmatmul.msk.f32.gmra.mxu3 %vm247_vm1, %v2239_v52  ;;  %v1965_v46 = vld [vmem:[#allocation2 + $0x188] sm:$0xff] }
 0x258   : > { %2776 = vst [vmem:[%s4351_s17 + $0x48] sm:$0xff] %v2744_v54  ;;  %v2807_v25 = vadd.f32 %v2806_v4, %v2744_v54  ;;  %v2846_v27 = vmul.f32 %v2744_v54, %v2744_v54  ;;  %3214 = vmatmul.msk.f32.gmra.mxu1 %vm247_vm1, %v1685_v35  ;;  %v2242_v57 = vld [vmem:[#allocation2 + $0x189] sm:$0xff] }
 0x259   : > { %v2115_v16 = vpop.f32.mrf.mxu2 }
 0x25a   : > { %v2877_v9 = vadd.f32 %v2876_v59, %v2846_v27  ;;  %v2191_v47 = vadd.f32 %v2115_v16, %v1913_v56  ;;  %v2392_v55 = vpop.f32.mrf.mxu3  ;;  %v2672_v31 = vpop.f32.mrf.mxu0 }
 0x25c   : > { %v2468_v33 = vadd.f32 %v2392_v55, %v2191_v47  ;;  %v2520_v55 = vld [vmem:[#allocation2 + $0x19a] sm:$0xff] }
 0x25d   : > { %v1843_v62 = vpop.f32.mrf.mxu1  ;;  %3313 = vmatmul.msk.f32.gmra.mxu0 %vm247_vm1, %v2517_v39 }
 0x25e   : > { %v2745_v15 = vadd.f32 %v2669_v24, %v2468_v33  ;;  %3247 = vmatmul.msk.f32.gmra.mxu2 %vm247_vm1, %v1963_v3  ;;  %v1915_v4 = vadd.f32 %v1843_v62, %v4625_v13  ;;  %v2243_v3 = vld [vmem:[#allocation2 + $0x199] sm:$0xff] }
 0x25f   : > { %3280 = vmatmul.msk.f32.gmra.mxu3 %vm247_vm1, %v2240_v58 }
 0x260   : > { %2777 = vst [vmem:[%s4351_s17 + $0x50] sm:$0xff] %v2745_v15  ;;  %v2808_v20 = vadd.f32 %v2807_v25, %v2745_v15  ;;  %v2847_v41 = vmul.f32 %v2745_v15, %v2745_v15  ;;  %3215 = vmatmul.msk.f32.gmra.mxu1 %vm247_vm1, %v2516_v43 }
 0x261   : > { %v2118_v17 = vpop.f32.mrf.mxu2 }
 0x262   : > { %v2878_v12 = vadd.f32 %v2877_v9, %v2847_v41  ;;  %v2192_v26 = vadd.f32 %v2118_v17, %v1914_v29  ;;  %v2395_v61 = vpop.f32.mrf.mxu3  ;;  %v2675_v7 = vpop.f32.mrf.mxu0 }
 0x264   : > { %v2469_v22 = vadd.f32 %v2395_v61, %v2192_v26  ;;  %v1967_v26 = vld [vmem:[#allocation2 + $0x1a0] sm:$0xff] }
 0x265   : > { %v1846_v44 = vpop.f32.mrf.mxu1  ;;  %3314 = vmatmul.msk.f32.gmra.mxu0 %vm247_vm1, %v2518_v60 }
 0x266   : > { %v2746_v48 = vadd.f32 %v2672_v31, %v2469_v22  ;;  %3248 = vmatmul.msk.f32.gmra.mxu2 %vm247_vm1, %v1964_v10  ;;  %v1916_v54 = vadd.f32 %v1846_v44, %v4158_v36  ;;  %v1966_v31 = vld [vmem:[#allocation2 + $0x198] sm:$0xff] }
 0x267   : > { %3281 = vmatmul.msk.f32.gmra.mxu3 %vm247_vm1, %v4154_v0 }
 0x268   : > { %2778 = vst [vmem:[%s4351_s17 + $0x58] sm:$0xff] %v2746_v48  ;;  %v2809_v42 = vadd.f32 %v2808_v20, %v2746_v48  ;;  %v2848_v1 = vmul.f32 %v2746_v48, %v2746_v48  ;;  %3216 = vmatmul.msk.f32.gmra.mxu1 %vm247_vm1, %v2517_v39 }
 0x269   : > { %v2121_v59 = vpop.f32.mrf.mxu2 }
 0x26a   : > { %v2879_v49 = vadd.f32 %v2878_v12, %v2848_v1  ;;  %v2193_v38 = vadd.f32 %v2121_v59, %v1915_v4  ;;  %v2398_v24 = vpop.f32.mrf.mxu3  ;;  %v2678_v43 = vpop.f32.mrf.mxu0  ;;  %v2521_v12 = vld [vmem:[#allocation2 + $0x1a2] sm:$0xff] }
 0x26c   : > { %v2470_v52 = vadd.f32 %v2398_v24, %v2193_v38 }
 0x26d   : > { %v1849_v35 = vpop.f32.mrf.mxu1  ;;  %3315 = vmatmul.msk.f32.gmra.mxu0 %vm247_vm1, %v2519_v28 }
 0x26e   : > { %v2747_v0 = vadd.f32 %v2675_v7, %v2470_v52  ;;  %3249 = vmatmul.msk.f32.gmra.mxu2 %vm247_vm1, %v1965_v46  ;;  %v1917_v36 = vadd.f32 %v1849_v35, %v4165_v30  ;;  %v2244_v7 = vld [vmem:[#allocation2 + $0x1a1] sm:$0xff] }
 0x26f   : > { %3282 = vmatmul.msk.f32.gmra.mxu3 %vm247_vm1, %v2242_v57 }
 0x270   : > { %2779 = vst [vmem:[%s4351_s17 + $0x60] sm:$0xff] %v2747_v0  ;;  %v2810_v8 = vadd.f32 %v2809_v42, %v2747_v0  ;;  %v2849_v56 = vmul.f32 %v2747_v0, %v2747_v0  ;;  %3217 = vmatmul.msk.f32.gmra.mxu1 %vm247_vm1, %v2518_v60 }
 0x271   : > { %v2124_v25 = vpop.f32.mrf.mxu2 }
 0x272   : > { %v2880_v27 = vadd.f32 %v2879_v49, %v2849_v56  ;;  %v2194_v16 = vadd.f32 %v2124_v25, %v1916_v54  ;;  %v2401_v9 = vpop.f32.mrf.mxu3  ;;  %v2681_v47 = vpop.f32.mrf.mxu0 }
 0x274   : > { %v2471_v39 = vadd.f32 %v2401_v9, %v2194_v16 }
 0x275   : > { %v1852_v33 = vpop.f32.mrf.mxu1  ;;  %3316 = vmatmul.msk.f32.gmra.mxu0 %vm247_vm1, %v2520_v55 }
 0x276   : > { %v2748_v58 = vadd.f32 %v2678_v43, %v2471_v39  ;;  %3250 = vmatmul.msk.f32.gmra.mxu2 %vm247_vm1, %v1966_v31  ;;  %v1918_v30 = vadd.f32 %v1852_v33, %v4174_v2 }
 0x277   : > { %3283 = vmatmul.msk.f32.gmra.mxu3 %vm247_vm1, %v2243_v3 }
 0x278   : > { %2780 = vst [vmem:[%s4351_s17 + $0x68] sm:$0xff] %v2748_v58  ;;  %v2811_v62 = vadd.f32 %v2810_v8, %v2748_v58  ;;  %v2850_v15 = vmul.f32 %v2748_v58, %v2748_v58  ;;  %3218 = vmatmul.msk.f32.gmra.mxu1 %vm247_vm1, %v2519_v28 }
 0x279   : > { %v2127_v53 = vpop.f32.mrf.mxu2 }
 0x27a   : > { %v2881_v29 = vadd.f32 %v2880_v27, %v2850_v15  ;;  %v2195_v20 = vadd.f32 %v2127_v53, %v1917_v36  ;;  %v2404_v41 = vpop.f32.mrf.mxu3  ;;  %v2684_v17 = vpop.f32.mrf.mxu0 }
 0x27c   : > { %v2472_v61 = vadd.f32 %v2404_v41, %v2195_v20 }
 0x27d   : > { %v1855_v60 = vpop.f32.mrf.mxu1  ;;  %3317 = vmatmul.msk.f32.gmra.mxu0 %vm247_vm1, %v2521_v12 }
 0x27e   : > { %v2749_v10 = vadd.f32 %v2681_v47, %v2472_v61  ;;  %3251 = vmatmul.msk.f32.gmra.mxu2 %vm247_vm1, %v1967_v26  ;;  %v1919_v24 = vadd.f32 %v1855_v60, %v4185_v51 }
 0x27f   : > { %3284 = vmatmul.msk.f32.gmra.mxu3 %vm247_vm1, %v2244_v7 }
 0x280   : > { %2781 = vst [vmem:[%s4351_s17 + $0x70] sm:$0xff] %v2749_v10  ;;  %v2812_v22 = vadd.f32 %v2811_v62, %v2749_v10  ;;  %v2851_v44 = vmul.f32 %v2749_v10, %v2749_v10 }
 0x281   : > { %v2130_v48 = vpop.f32.mrf.mxu2 }
 0x282   : > { %v2882_v13 = vadd.f32 %v2881_v29, %v2851_v44  ;;  %v2196_v4 = vadd.f32 %v2130_v48, %v1918_v30  ;;  %v2407_v42 = vpop.f32.mrf.mxu3  ;;  %v2687_v1 = vpop.f32.mrf.mxu0 }
 0x284   : > { %v2473_v59 = vadd.f32 %v2407_v42, %v2196_v4 }
 0x285   : > { %v1858_v49 = vpop.f32.mrf.mxu1 }
 0x286   : > { %v2750_v38 = vadd.f32 %v2684_v17, %v2473_v59  ;;  %v1920_v56 = vadd.f32 %v1858_v49, %v4196_v45 }
 0x288   : > { %2782 = vst [vmem:[%s4351_s17 + $0x78] sm:$0xff] %v2750_v38  ;;  %v2813_v43 = vadd.f32 %v2812_v22, %v2750_v38  ;;  %v2852_v28 = vmul.f32 %v2750_v38, %v2750_v38 }
 0x289   : > { %v2133_v46 = vpop.f32.mrf.mxu2 }
 0x28a   : > { %v2883_v52 = vadd.f32 %v2882_v13, %v2852_v28  ;;  %v2197_v2 = vadd.f32 %v2133_v46, %v1919_v24  ;;  %v2410_v57 = vpop.f32.mrf.mxu3  ;;  %v2690_v35 = vpop.f32.mrf.mxu0 }
 0x28c   : > { %v2474_v0 = vadd.f32 %v2410_v57, %v2197_v2 }
 0x28d   : > { %v1861_v54 = vpop.f32.mrf.mxu1 }
 0x28e   : > { %v2751_v8 = vadd.f32 %v2687_v1, %v2474_v0  ;;  %v1921_v33 = vadd.f32 %v1861_v54, %v4207_v37 }
 0x290   : > { %2783 = vst [vmem:[%s4351_s17 + $0x80] sm:$0xff] %v2751_v8  ;;  %v2814_v25 = vadd.f32 %v2813_v43, %v2751_v8  ;;  %v2853_v27 = vmul.f32 %v2751_v8, %v2751_v8 }
 0x291   : > { %v2136_v16 = vpop.f32.mrf.mxu2 }
 0x292   : > { %v2884_v9 = vadd.f32 %v2883_v52, %v2853_v27  ;;  %v2198_v51 = vadd.f32 %v2136_v16, %v1920_v56  ;;  %v2413_v47 = vpop.f32.mrf.mxu3  ;;  %v2693_v55 = vpop.f32.mrf.mxu0 }
 0x294   : > { %v2475_v31 = vadd.f32 %v2413_v47, %v2198_v51 }
 0x295   : > { %v1864_v39 = vpop.f32.mrf.mxu1 }
 0x296   : > { %v2752_v3 = vadd.f32 %v2690_v35, %v2475_v31  ;;  %v1922_v12 = vadd.f32 %v1864_v39, %v4218_v18 }
 0x298   : > { %2784 = vst [vmem:[%s4351_s17 + $0x88] sm:$0xff] %v2752_v3  ;;  %v2815_v58 = vadd.f32 %v2814_v25, %v2752_v3  ;;  %v2854_v36 = vmul.f32 %v2752_v3, %v2752_v3 }
 0x299   : > { %v2139_v62 = vpop.f32.mrf.mxu2 }
 0x29a   : > { %v2885_v15 = vadd.f32 %v2884_v9, %v2854_v36  ;;  %v2199_v45 = vadd.f32 %v2139_v62, %v1921_v33  ;;  %v2416_v53 = vpop.f32.mrf.mxu3  ;;  %v2696_v29 = vpop.f32.mrf.mxu0 }
 0x29c   : > { %v2476_v20 = vadd.f32 %v2416_v53, %v2199_v45 }
 0x29d   : > { %v1867_v41 = vpop.f32.mrf.mxu1 }
 0x29e   : > { %v2753_v17 = vadd.f32 %v2693_v55, %v2476_v20  ;;  %v1923_v13 = vadd.f32 %v1867_v41, %v4228_v19 }
 0x2a0   : > { %2785 = vst [vmem:[%s4351_s17 + $0x90] sm:$0xff] %v2753_v17  ;;  %v2816_v26 = vadd.f32 %v2815_v58, %v2753_v17  ;;  %v2855_v61 = vmul.f32 %v2753_v17, %v2753_v17 }
 0x2a1   : > { %v2142_v7 = vpop.f32.mrf.mxu2 }
 0x2a2   : > { %v2886_v60 = vadd.f32 %v2885_v15, %v2855_v61  ;;  %v2200_v37 = vadd.f32 %v2142_v7, %v1922_v12  ;;  %v2419_v10 = vpop.f32.mrf.mxu3  ;;  %v2699_v30 = vpop.f32.mrf.mxu0 }
 0x2a4   : > { %v2477_v22 = vadd.f32 %v2419_v10, %v2200_v37 }
 0x2a5   : > { %v1870_v44 = vpop.f32.mrf.mxu1 }
 0x2a6   : > { %v2754_v48 = vadd.f32 %v2696_v29, %v2477_v22  ;;  %v1924_v46 = vadd.f32 %v1870_v44, %v4238_v63 }
 0x2a8   : > { %2786 = vst [vmem:[%s4351_s17 + $0x98] sm:$0xff] %v2754_v48  ;;  %v2817_v4 = vadd.f32 %v2816_v26, %v2754_v48  ;;  %v2856_v42 = vmul.f32 %v2754_v48, %v2754_v48 }
 0x2a9   : > { %v2145_v1 = vpop.f32.mrf.mxu2 }
 0x2aa   : > { %v2887_v59 = vadd.f32 %v2886_v60, %v2856_v42  ;;  %v2201_v18 = vadd.f32 %v2145_v1, %v1923_v13  ;;  %v2422_v49 = vpop.f32.mrf.mxu3  ;;  %v2702_v38 = vpop.f32.mrf.mxu0 }
 0x2ac   : > { %v2478_v24 = vadd.f32 %v2422_v49, %v2201_v18 }
 0x2ad   : > { %v1873_v43 = vpop.f32.mrf.mxu1 }
 0x2ae   : > { %v2755_v28 = vadd.f32 %v2699_v30, %v2478_v24  ;;  %v1925_v27 = vadd.f32 %v1873_v43, %v4248_v6 }
 0x2b0   : > { %2787 = vst [vmem:[%s4351_s17 + $0xa0] sm:$0xff] %v2755_v28  ;;  %v2818_v52 = vadd.f32 %v2817_v4, %v2755_v28  ;;  %v2857_v2 = vmul.f32 %v2755_v28, %v2755_v28 }
 0x2b1   : > { %v2148_v57 = vpop.f32.mrf.mxu2 }
 0x2b2   : > { %v2888_v35 = vadd.f32 %v2887_v59, %v2857_v2  ;;  %v2202_v19 = vadd.f32 %v2148_v57, %v1924_v46  ;;  %v2425_v0 = vpop.f32.mrf.mxu3  ;;  %v2705_v54 = vpop.f32.mrf.mxu0 }
 0x2b4   : > { %v2479_v8 = vadd.f32 %v2425_v0, %v2202_v19 }
 0x2b5   : > { %v1876_v56 = vpop.f32.mrf.mxu1 }
 0x2b6   : > { %v2756_v25 = vadd.f32 %v2702_v38, %v2479_v8  ;;  %v1926_v58 = vadd.f32 %v1876_v56, %v4258_v14 }
 0x2b8   : > { %2788 = vst [vmem:[%s4351_s17 + $0xa8] sm:$0xff] %v2756_v25  ;;  %v2819_v16 = vadd.f32 %v2818_v52, %v2756_v25  ;;  %v2858_v9 = vmul.f32 %v2756_v25, %v2756_v25 }
 0x2b9   : > { %v2151_v51 = vpop.f32.mrf.mxu2 }
 0x2ba   : > { %v2889_v47 = vadd.f32 %v2888_v35, %v2858_v9  ;;  %v2203_v63 = vadd.f32 %v2151_v51, %v1925_v27  ;;  %v2428_v55 = vpop.f32.mrf.mxu3  ;;  %v2708_v31 = vpop.f32.mrf.mxu0 }
 0x2bc   : > { %v2480_v39 = vadd.f32 %v2428_v55, %v2203_v63 }
 0x2bd   : > { %v1879_v3 = vpop.f32.mrf.mxu1 }
 0x2be   : > { %v2757_v33 = vadd.f32 %v2705_v54, %v2480_v39  ;;  %v1927_v12 = vadd.f32 %v1879_v3, %v4268_v34 }
 0x2c0   : > { %2789 = vst [vmem:[%s4351_s17 + $0xb0] sm:$0xff] %v2757_v33  ;;  %v2820_v36 = vadd.f32 %v2819_v16, %v2757_v33  ;;  %v2859_v62 = vmul.f32 %v2757_v33, %v2757_v33 }
 0x2c1   : > { %v2154_v15 = vpop.f32.mrf.mxu2 }
 0x2c2   : > { %v2890_v45 = vadd.f32 %v2889_v47, %v2859_v62  ;;  %v2204_v6 = vadd.f32 %v2154_v15, %v1926_v58  ;;  %v2431_v53 = vpop.f32.mrf.mxu3  ;;  %v2711_v29 = vpop.f32.mrf.mxu0 }
 0x2c4   : > { %v2481_v20 = vadd.f32 %v2431_v53, %v2204_v6 }
 0x2c5   : > { %v1882_v41 = vpop.f32.mrf.mxu1 }
 0x2c6   : > { %v2758_v17 = vadd.f32 %v2708_v31, %v2481_v20  ;;  %v1928_v48 = vadd.f32 %v1882_v41, %v4278_v40 }
 0x2c8   : > { %2790 = vst [vmem:[%s4351_s17 + $0xb8] sm:$0xff] %v2758_v17  ;;  %v2821_v26 = vadd.f32 %v2820_v36, %v2758_v17  ;;  %v2860_v61 = vmul.f32 %v2758_v17, %v2758_v17 }
 0x2c9   : > { %v2157_v7 = vpop.f32.mrf.mxu2 }
 0x2ca   : > { %v2891_v60 = vadd.f32 %v2890_v45, %v2860_v61  ;;  %v2205_v14 = vadd.f32 %v2157_v7, %v1927_v12  ;;  %v2434_v37 = vpop.f32.mrf.mxu3  ;;  %v2714_v10 = vpop.f32.mrf.mxu0 }
 0x2cc   : > { %v2482_v30 = vadd.f32 %v2434_v37, %v2205_v14 }
 0x2cd   : > { %v1885_v22 = vpop.f32.mrf.mxu1 }
 0x2ce   : > { %v2759_v44 = vadd.f32 %v2711_v29, %v2482_v30  ;;  %v1929_v43 = vadd.f32 %v1885_v22, %v4288_v21 }
 0x2d0   : > { %2791 = vst [vmem:[%s4351_s17 + $0xc0] sm:$0xff] %v2759_v44  ;;  %v2822_v13 = vadd.f32 %v2821_v26, %v2759_v44  ;;  %v2861_v4 = vmul.f32 %v2759_v44, %v2759_v44 }
 0x2d1   : > { %v2160_v42 = vpop.f32.mrf.mxu2 }
 0x2d2   : > { %v2892_v1 = vadd.f32 %v2891_v60, %v2861_v4  ;;  %v2206_v34 = vadd.f32 %v2160_v42, %v1928_v48  ;;  %v2437_v59 = vpop.f32.mrf.mxu3  ;;  %v2717_v18 = vpop.f32.mrf.mxu0 }
 0x2d4   : > { %v2483_v49 = vadd.f32 %v2437_v59, %v2206_v34 }
 0x2d5   : > { %v1888_v38 = vpop.f32.mrf.mxu1 }
 0x2d6   : > { %v2760_v24 = vadd.f32 %v2714_v10, %v2483_v49  ;;  %v1930_v8 = vadd.f32 %v1888_v38, %v4298_v5 }
 0x2d8   : > { %2792 = vst [vmem:[%s4351_s17 + $0xc8] sm:$0xff] %v2760_v24  ;;  %v2823_v28 = vadd.f32 %v2822_v13, %v2760_v24  ;;  %v2862_v46 = vmul.f32 %v2760_v24, %v2760_v24 }
 0x2d9   : > { %v2163_v52 = vpop.f32.mrf.mxu2 }
 0x2da   : > { %v2893_v2 = vadd.f32 %v2892_v1, %v2862_v46  ;;  %v2207_v40 = vadd.f32 %v2163_v52, %v1929_v43  ;;  %v2440_v57 = vpop.f32.mrf.mxu3  ;;  %v2720_v35 = vpop.f32.mrf.mxu0 }
 0x2dc   : > { %v2484_v19 = vadd.f32 %v2440_v57, %v2207_v40 }
 0x2dd   : > { %v1891_v54 = vpop.f32.mrf.mxu1 }
 0x2de   : > { %v2761_v0 = vadd.f32 %v2717_v18, %v2484_v19  ;;  %v1931_v55 = vadd.f32 %v1891_v54, %v4308_v32 }
 0x2e0   : > { %2793 = vst [vmem:[%s4351_s17 + $0xd0] sm:$0xff] %v2761_v0  ;;  %v2824_v56 = vadd.f32 %v2823_v28, %v2761_v0  ;;  %v2863_v25 = vmul.f32 %v2761_v0, %v2761_v0 }
 0x2e1   : > { %v2166_v27 = vpop.f32.mrf.mxu2 }
 0x2e2   : > { %v2894_v16 = vadd.f32 %v2893_v2, %v2863_v25  ;;  %v2208_v21 = vadd.f32 %v2166_v27, %v1930_v8  ;;  %v2443_v9 = vpop.f32.mrf.mxu3  ;;  %v2723_v47 = vpop.f32.mrf.mxu0 }
 0x2e4   : > { %v2485_v51 = vadd.f32 %v2443_v9, %v2208_v21 }
 0x2e5   : > { %v1894_v33 = vpop.f32.mrf.mxu1 }
 0x2e6   : > { %v2762_v63 = vadd.f32 %v2720_v35, %v2485_v51  ;;  %v1932_v6 = vadd.f32 %v1894_v33, %v4318_v23 }
 0x2e8   : > { %2794 = vst [vmem:[%s4351_s17 + $0xd8] sm:$0xff] %v2762_v63  ;;  %v2825_v31 = vadd.f32 %v2824_v56, %v2762_v63  ;;  %v2864_v39 = vmul.f32 %v2762_v63, %v2762_v63 }
 0x2e9   : > { %v2169_v3 = vpop.f32.mrf.mxu2 }
 0x2ea   : > { %v2895_v58 = vadd.f32 %v2894_v16, %v2864_v39  ;;  %v2209_v5 = vadd.f32 %v2169_v3, %v1931_v55  ;;  %v2446_v36 = vpop.f32.mrf.mxu3  ;;  %v2726_v45 = vpop.f32.mrf.mxu0 }
 0x2ec   : > { %v2486_v62 = vadd.f32 %v2446_v36, %v2209_v5 }
 0x2ed   : > { %v1897_v12 = vpop.f32.mrf.mxu1 }
 0x2ee   : > { %v2763_v15 = vadd.f32 %v2723_v47, %v2486_v62  ;;  %v1933_v7 = vadd.f32 %v1897_v12, %v4328_v11 }
 0x2f0   : > { %2795 = vst [vmem:[%s4351_s17 + $0xe0] sm:$0xff] %v2763_v15  ;;  %v2826_v53 = vadd.f32 %v2825_v31, %v2763_v15  ;;  %v2865_v29 = vmul.f32 %v2763_v15, %v2763_v15 }
 0x2f1   : > { %v2172_v20 = vpop.f32.mrf.mxu2 }
 0x2f2   : > { %v2896_v41 = vadd.f32 %v2895_v58, %v2865_v29  ;;  %v2210_v32 = vadd.f32 %v2172_v20, %v1932_v6  ;;  %v2449_v17 = vpop.f32.mrf.mxu3  ;;  %v2729_v10 = vpop.f32.mrf.mxu0 }
 0x2f4   : > { %v2487_v26 = vadd.f32 %v2449_v17, %v2210_v32 }
 0x2f5   : > { %v1900_v48 = vpop.f32.mrf.mxu1 }
 0x2f6   : > { %v2764_v61 = vadd.f32 %v2726_v45, %v2487_v26  ;;  %v1934_v4 = vadd.f32 %v1900_v48, %v4338_v50 }
 0x2f8   : > { %2796 = vst [vmem:[%s4351_s17 + $0xe8] sm:$0xff] %v2764_v61  ;;  %v2827_v60 = vadd.f32 %v2826_v53, %v2764_v61  ;;  %v2866_v14 = vmul.f32 %v2764_v61, %v2764_v61 }
 0x2f9   : > { %v2175_v37 = vpop.f32.mrf.mxu2 }
 0x2fa   : > { %v2897_v30 = vadd.f32 %v2896_v41, %v2866_v14  ;;  %v2211_v23 = vadd.f32 %v2175_v37, %v1933_v7  ;;  %v2452_v22 = vpop.f32.mrf.mxu3  ;;  %v2732_v49 = vpop.f32.mrf.mxu0 }
 0x2fc   : > { %v2488_v44 = vadd.f32 %v2452_v22, %v2211_v23 }
 0x2fe   : > { %v2765_v13 = vadd.f32 %v2729_v10, %v2488_v44 }
 0x300   : > { %2797 = vst [vmem:[%s4351_s17 + $0xf0] sm:$0xff] %v2765_v13  ;;  %v2828_v42 = vadd.f32 %v2827_v60, %v2765_v13  ;;  %v2867_v1 = vmul.f32 %v2765_v13, %v2765_v13 }
 0x301   : > { %v2178_v34 = vpop.f32.mrf.mxu2 }
 0x302   : > { %v2898_v59 = vadd.f32 %v2897_v30, %v2867_v1  ;;  %v2212_v11 = vadd.f32 %v2178_v34, %v1934_v4  ;;  %v2455_v18 = vpop.f32.mrf.mxu3 }
 0x304   : > { %v2489_v38 = vadd.f32 %v2455_v18, %v2212_v11 }
 0x306   : > { %v2766_v24 = vadd.f32 %v2732_v49, %v2489_v38 }
 0x308   : > { %2798 = vst [vmem:[%s4351_s17 + $0xf8] sm:$0xff] %v2766_v24  ;;  %v2829_v43 = vadd.f32 %v2828_v42, %v2766_v24  ;;  %v2868_v28 = vmul.f32 %v2766_v24, %v2766_v24 }
 0x30a   : > { %v2830_v46 = vrot.slane %v2829_v43, 4  ;;  %v2899_v52 = vadd.f32 %v2898_v59, %v2868_v28 }
 0x30c   : > { %v2831_v2 = vadd.f32 %v2830_v46, %v2829_v43  ;;  %v2900_v40 = vrot.slane %v2899_v52, 4 }
 0x30e   : > { %v2832_v50 = vrot.slane %v2831_v2, 2  ;;  %v2901_v57 = vadd.f32 %v2900_v40, %v2899_v52 }
 0x310   : > { %v2833_v35 = vadd.f32 %v2832_v50, %v2831_v2  ;;  %v2902_v19 = vrot.slane %v2901_v57, 2 }
 0x312   : > { %v2834_v0 = vrot.slane %v2833_v35, 1  ;;  %v2903_v54 = vadd.f32 %v2902_v19, %v2901_v57 }
 0x314   : > { %v2835_v8 = vadd.f32 %v2834_v0, %v2833_v35  ;;  %v2904_v56 = vrot.slane %v2903_v54, 1 }
 0x316   : > { %2836 = vst [vmem:[%s211_s20] sm:$0x1] %v2835_v8  ;;  %v2905_v25 = vadd.f32 %v2904_v56, %v2903_v54 }
 0x318   : > { %2906 = vst [vmem:[%s214_s23] sm:$0x1] %v2905_v25 }
 0x319 PF: > { %s15_s15 = sadd.s32 1, %s3340_s15  }
 0x31a   : > { %p12_p4 = scmp.ge.s32.totalorder %s15_s15, 4  }
 0x31c   :  { %14 = sbr.rel (!%p12_p4) target bundleno = 1 (0x1), region = 84 }

</bundles_post_ra>
